<compile_context>
chip_gen: v6e
topology: v6e:2x2x1
jax: 0.10.0
libtpu: 0.0.40
codegen_flags: <defaults>
</compile_context>

<pallas_src>
import jax
import jax.numpy as jnp
from jax.experimental import pallas as pl
from jax.experimental.pallas import tpu as pltpu


def _basic_block_kernel(x_ref, w1_ref, b1_ref, w2_ref, b2_ref,
                        out_ref, xpad_s, mid_s):
    """One grid step = one batch element.

    x_ref  : (1, H, W, Cin)  input block (NHWC, f32) -- also the residual
    w1_ref : (3, 3*Cin, C)   conv1 weights, BN1 scale folded, kj-stacked (bf16)
    b1_ref : (1, C)          folded BN1 bias (f32)
    w2_ref : (3, 3*C, C)     conv2 weights, BN2 scale folded, kj-stacked (bf16)
    b2_ref : (1, C)          folded BN2 bias (f32)
    out_ref: (1, C, H*W)     NCHW (spatially flattened) output block (f32)
    xpad_s : VMEM (H+2, W+2, Cin)  zero-bordered conv1 input scratch
    mid_s  : VMEM (H+2, W+2, C)    zero-bordered conv2 input scratch
    """
    H, W, Cin = x_ref.shape[1], x_ref.shape[2], x_ref.shape[3]
    C = out_ref.shape[1]
    cdt = w1_ref.dtype          # MXU input dtype (bf16 by default)

    x = x_ref[0]                # (H, W, Cin) f32, stays in VMEM; reused as residual

    def zero_border(pad_ref):
        # Interior is fully overwritten each step; only the border must be
        # zero.  (Done every step -- not gated on program_id -- because with
        # "parallel" batch sharding a core may never see step 0.)
        ch = pad_ref.shape[2]
        zrow = jnp.zeros((1, W + 2, ch), pad_ref.dtype)
        pad_ref[0:1] = zrow
        pad_ref[H + 1:H + 2] = zrow
        zcol = jnp.zeros((H, 1, ch), pad_ref.dtype)
        pad_ref[1:H + 1, 0:1] = zcol
        pad_ref[1:H + 1, W + 1:W + 2] = zcol

    zero_border(xpad_s)
    zero_border(mid_s)
    xpad_s[1:H + 1, 1:W + 1, :] = x.astype(cdt)

    def conv3x3(pad_ref, w_ref):
        # kj taps merged into the contraction axis (K = 3*ch); ki taps are
        # cheap leading-dim slices -> 3 fat matmuls instead of 9 skinny ones.
        ch = pad_ref.shape[2]
        cols = jnp.concatenate(
            [pad_ref[:, 0:W, :], pad_ref[:, 1:W + 1, :], pad_ref[:, 2:W + 2, :]],
            axis=-1)                                     # (H+2, W, 3*ch)
        acc = jnp.dot(cols[0:H].reshape(H * W, 3 * ch), w_ref[0],
                      preferred_element_type=jnp.float32)
        for ki in (1, 2):
            acc += jnp.dot(cols[ki:ki + H].reshape(H * W, 3 * ch), w_ref[ki],
                           preferred_element_type=jnp.float32)
        return acc                                       # (H*W, C) f32

    # ---- conv1 + folded bn1 + relu -----------------------------------------
    act1 = jnp.maximum(conv3x3(xpad_s, w1_ref) + b1_ref[0], 0.0)
    mid_s[1:H + 1, 1:W + 1, :] = act1.reshape(H, W, C).astype(cdt)

    # ---- conv2 + folded bn2 + residual + relu --------------------------------
    out = conv3x3(mid_s, w2_ref) + b2_ref[0] + x.reshape(H * W, Cin)
    # Lane-dense NCHW store: (H*W, C) -> (C, H*W).
    out_ref[0] = jnp.maximum(out, 0.0).T


def basic_block_pallas(x_nchw, w1_oihw, bn1, w2_oihw, bn2, eps=1e-5,
                       compute_dtype=jnp.bfloat16):
    """BasicBlock forward.  x_nchw: (N, Cin, H, W) float32 (PyTorch layout).

    bn1 / bn2: dicts with 'gamma', 'beta', 'mean', 'var' (each shape (C,)),
    interpreted as inference-mode (running) statistics.
    """
    N, Cin, H, W = x_nchw.shape
    Cout = w1_oihw.shape[0]
    assert Cin == Cout, "residual path requires inplanes == planes (no downsample)"

    # NCHW -> NHWC for the kernel (channels on the lane axis).
    # TODO(synk): accept/return NHWC end-to-end to drop this input transpose.
    x_nhwc = jnp.transpose(x_nchw, (0, 2, 3, 1)).astype(jnp.float32)

    # Fold inference-mode BatchNorm: scale into conv weights, keep bias.
    def fold(bn):
        scale = bn["gamma"] / jnp.sqrt(bn["var"] + eps)
        bias = bn["beta"] - bn["mean"] * scale
        return scale.astype(jnp.float32), bias.reshape(1, -1).astype(jnp.float32)

    s1, b1 = fold(bn1)
    s2, b2 = fold(bn2)

    def prep_w(w_oihw, scale, cin):
        # OIHW -> HWIO, fold BN scale into output channels, stack the 3 kj taps
        # along the contraction axis -> (3, 3*cin, Cout), cast to bf16.
        w = jnp.transpose(w_oihw, (2, 3, 1, 0)).astype(jnp.float32)
        w = w * scale[None, None, None, :]
        return w.reshape(3, 3 * cin, Cout).astype(compute_dtype)

    w1s = prep_w(w1_oihw, s1, Cin)
    w2s = prep_w(w2_oihw, s2, Cout)

    # TODO(synk): for large spatial sizes (real ResNet blocks) add an H-row
    # grid axis with a 2-row halo so the per-step VMEM footprint fits v7x.
    grid_spec = pltpu.PrefetchScalarGridSpec(
        num_scalar_prefetch=0,
        grid=(N,),
        in_specs=[
            pl.BlockSpec((1, H, W, Cin), lambda n: (n, 0, 0, 0)),
            pl.BlockSpec((3, 3 * Cin, Cout), lambda n: (0, 0, 0)),
            pl.BlockSpec((1, Cout), lambda n: (0, 0)),
            pl.BlockSpec((3, 3 * Cout, Cout), lambda n: (0, 0, 0)),
            pl.BlockSpec((1, Cout), lambda n: (0, 0)),
        ],
        out_specs=pl.BlockSpec((1, Cout, H * W), lambda n: (n, 0, 0)),
        scratch_shapes=[
            pltpu.VMEM((H + 2, W + 2, Cin), compute_dtype),
            pltpu.VMEM((H + 2, W + 2, Cout), compute_dtype),
        ],
    )

    out_flat = pl.pallas_call(
        _basic_block_kernel,
        out_shape=jax.ShapeDtypeStruct((N, Cout, H * W), jnp.float32),
        grid_spec=grid_spec,
        compiler_params=pltpu.CompilerParams(
            dimension_semantics=("parallel",)),
    )(x_nhwc, w1s, b1, w2s, b2)

    # (N, C, H*W) -> (N, C, H, W): pure reshape, no transpose pass.
    return out_flat.reshape(N, Cout, H, W)


def basic_block_reference(x, w1, bn1, w2, bn2, eps=1e-5):
    """Plain-JAX f32 reference in NCHW, matching PyTorch eval-mode semantics."""
    def conv(x, w):
        return jax.lax.conv_general_dilated(
            x, w, window_strides=(1, 1), padding=((1, 1), (1, 1)),
            dimension_numbers=("NCHW", "OIHW", "NCHW"))

    def bn(x, p):
        scale = (p["gamma"] / jnp.sqrt(p["var"] + eps))[None, :, None, None]
        bias = (p["beta"] - p["mean"] * p["gamma"]
                / jnp.sqrt(p["var"] + eps))[None, :, None, None]
        return x * scale + bias

    out = jax.nn.relu(bn(conv(x, w1), bn1))
    out = bn(conv(out, w2), bn2)
    return jax.nn.relu(out + x)


if __name__ == "__main__":
    # TODO(synk): training-mode BatchNorm (batch statistics) not implemented;
    # inference-mode running stats are folded instead.
    N, C, H, W = 2, 4, 16, 16
    key = jax.random.PRNGKey(0)
    kx, kw1, kw2, kg1, kb1, km1, kv1, kg2, kb2, km2, kv2 = jax.random.split(key, 11)

    x = jax.random.normal(kx, (N, C, H, W), jnp.float32)
    w1 = jax.random.normal(kw1, (C, C, 3, 3), jnp.float32) * 0.1  # OIHW
    w2 = jax.random.normal(kw2, (C, C, 3, 3), jnp.float32) * 0.1  # OIHW

    bn1 = {
        "gamma": 1.0 + 0.1 * jax.random.normal(kg1, (C,), jnp.float32),
        "beta": 0.1 * jax.random.normal(kb1, (C,), jnp.float32),
        "mean": 0.1 * jax.random.normal(km1, (C,), jnp.float32),
        "var": jnp.abs(1.0 + 0.1 * jax.random.normal(kv1, (C,), jnp.float32)),
    }
    bn2 = {
        "gamma": 1.0 + 0.1 * jax.random.normal(kg2, (C,), jnp.float32),
        "beta": 0.1 * jax.random.normal(kb2, (C,), jnp.float32),
        "mean": 0.1 * jax.random.normal(km2, (C,), jnp.float32),
        "var": jnp.abs(1.0 + 0.1 * jax.random.normal(kv2, (C,), jnp.float32)),
    }

    out = jax.block_until_ready(basic_block_pallas(x, w1, bn1, w2, bn2))
    ref = jax.block_until_ready(basic_block_reference(x, w1, bn1, w2, bn2))

    assert out.shape == (N, C, H, W)
    # bf16 matmul operands (f32 accumulation) vs. f32 reference -> loose tol.
    assert jnp.allclose(out, ref, rtol=5e-2, atol=5e-2), \
        f"max abs err {jnp.max(jnp.abs(out - ref))}"

    print("KERNEL_OK")
</pallas_src>

<mosaic_0001>
module attributes {stable_mosaic.version = 11 : i64} {
  func.func @_basic_block_kernel(%arg0: i32, %arg1: memref<1x16x16x4xf32, #tpu.memory_space<vmem>>, %arg2: memref<3x12x4xbf16, #tpu.memory_space<vmem>>, %arg3: memref<1x4xf32, #tpu.memory_space<vmem>>, %arg4: memref<3x12x4xbf16, #tpu.memory_space<vmem>>, %arg5: memref<1x4xf32, #tpu.memory_space<vmem>>, %arg6: memref<1x4x256xf32, #tpu.memory_space<vmem>>, %arg7: memref<18x18x4xbf16, #tpu.memory_space<vmem>>, %arg8: memref<18x18x4xbf16, #tpu.memory_space<vmem>>) attributes {dimension_semantics = [#tpu.dimension_semantics<parallel>], iteration_bounds = array<i64: 2>, scalar_prefetch = 0 : i64, scratch_operands = 2 : i64, tpu.core_type = #tpu.core_type<tc>, window_params = [{transform_indices = @transform_0, window_bounds = array<i64: 1, 16, 16, 4>}, {pipeline_mode = #tpu.pipeline_mode<synchronous>, transform_indices = @transform_1, window_bounds = array<i64: 3, 12, 4>}, {pipeline_mode = #tpu.pipeline_mode<synchronous>, transform_indices = @transform_2, window_bounds = array<i64: 1, 4>}, {pipeline_mode = #tpu.pipeline_mode<synchronous>, transform_indices = @transform_3, window_bounds = array<i64: 3, 12, 4>}, {pipeline_mode = #tpu.pipeline_mode<synchronous>, transform_indices = @transform_4, window_bounds = array<i64: 1, 4>}, {transform_indices = @transform_5, window_bounds = array<i64: 1, 4, 256>}]} {
    %c0 = arith.constant 0 : index
    %c0_0 = arith.constant 0 : index
    %c0_1 = arith.constant 0 : index
    %c0_2 = arith.constant 0 : index
    %0 = vector.load %arg1[%c0, %c0_0, %c0_1, %c0_2] : memref<1x16x16x4xf32, #tpu.memory_space<vmem>>, vector<1x16x16x4xf32>
    %1 = vector.shape_cast %0 : vector<1x16x16x4xf32> to vector<16x16x4xf32>
    %cst = arith.constant 0.000000e+00 : bf16
    %2 = vector.broadcast %cst : bf16 to vector<1x18x4xbf16>
    %c0_3 = arith.constant 0 : index
    %c0_4 = arith.constant 0 : index
    %c0_5 = arith.constant 0 : index
    %3 = vector.load %arg7[%c0_3, %c0_4, %c0_5] : memref<18x18x4xbf16, #tpu.memory_space<vmem>>, vector<1x18x4xbf16>
    tpu.vector_store %arg7[%c0_3, %c0_4, %c0_5], %2 {strides = array<i32>} : memref<18x18x4xbf16, #tpu.memory_space<vmem>>, vector<1x18x4xbf16>,
    %c17 = arith.constant 17 : index
    %c0_6 = arith.constant 0 : index
    %c0_7 = arith.constant 0 : index
    %4 = vector.load %arg7[%c17, %c0_6, %c0_7] : memref<18x18x4xbf16, #tpu.memory_space<vmem>>, vector<1x18x4xbf16>
    tpu.vector_store %arg7[%c17, %c0_6, %c0_7], %2 {strides = array<i32>} : memref<18x18x4xbf16, #tpu.memory_space<vmem>>, vector<1x18x4xbf16>,
    %cst_8 = arith.constant 0.000000e+00 : bf16
    %5 = vector.broadcast %cst_8 : bf16 to vector<16x1x4xbf16>
    %c1 = arith.constant 1 : index
    %c0_9 = arith.constant 0 : index
    %c0_10 = arith.constant 0 : index
    %6 = vector.load %arg7[%c1, %c0_9, %c0_10] : memref<18x18x4xbf16, #tpu.memory_space<vmem>>, vector<16x1x4xbf16>
    tpu.vector_store %arg7[%c1, %c0_9, %c0_10], %5 {strides = array<i32>} : memref<18x18x4xbf16, #tpu.memory_space<vmem>>, vector<16x1x4xbf16>,
    %c1_11 = arith.constant 1 : index
    %c17_12 = arith.constant 17 : index
    %c0_13 = arith.constant 0 : index
    %7 = vector.load %arg7[%c1_11, %c17_12, %c0_13] : memref<18x18x4xbf16, #tpu.memory_space<vmem>>, vector<16x1x4xbf16>
    tpu.vector_store %arg7[%c1_11, %c17_12, %c0_13], %5 {strides = array<i32>} : memref<18x18x4xbf16, #tpu.memory_space<vmem>>, vector<16x1x4xbf16>,
    %cst_14 = arith.constant 0.000000e+00 : bf16
    %8 = vector.broadcast %cst_14 : bf16 to vector<1x18x4xbf16>
    %c0_15 = arith.constant 0 : index
    %c0_16 = arith.constant 0 : index
    %c0_17 = arith.constant 0 : index
    %9 = vector.load %arg8[%c0_15, %c0_16, %c0_17] : memref<18x18x4xbf16, #tpu.memory_space<vmem>>, vector<1x18x4xbf16>
    tpu.vector_store %arg8[%c0_15, %c0_16, %c0_17], %8 {strides = array<i32>} : memref<18x18x4xbf16, #tpu.memory_space<vmem>>, vector<1x18x4xbf16>,
    %c17_18 = arith.constant 17 : index
    %c0_19 = arith.constant 0 : index
    %c0_20 = arith.constant 0 : index
    %10 = vector.load %arg8[%c17_18, %c0_19, %c0_20] : memref<18x18x4xbf16, #tpu.memory_space<vmem>>, vector<1x18x4xbf16>
    tpu.vector_store %arg8[%c17_18, %c0_19, %c0_20], %8 {strides = array<i32>} : memref<18x18x4xbf16, #tpu.memory_space<vmem>>, vector<1x18x4xbf16>,
    %cst_21 = arith.constant 0.000000e+00 : bf16
    %11 = vector.broadcast %cst_21 : bf16 to vector<16x1x4xbf16>
    %c1_22 = arith.constant 1 : index
    %c0_23 = arith.constant 0 : index
    %c0_24 = arith.constant 0 : index
    %12 = vector.load %arg8[%c1_22, %c0_23, %c0_24] : memref<18x18x4xbf16, #tpu.memory_space<vmem>>, vector<16x1x4xbf16>
    tpu.vector_store %arg8[%c1_22, %c0_23, %c0_24], %11 {strides = array<i32>} : memref<18x18x4xbf16, #tpu.memory_space<vmem>>, vector<16x1x4xbf16>,
    %c1_25 = arith.constant 1 : index
    %c17_26 = arith.constant 17 : index
    %c0_27 = arith.constant 0 : index
    %13 = vector.load %arg8[%c1_25, %c17_26, %c0_27] : memref<18x18x4xbf16, #tpu.memory_space<vmem>>, vector<16x1x4xbf16>
    tpu.vector_store %arg8[%c1_25, %c17_26, %c0_27], %11 {strides = array<i32>} : memref<18x18x4xbf16, #tpu.memory_space<vmem>>, vector<16x1x4xbf16>,
    %14 = arith.truncf %1 : vector<16x16x4xf32> to vector<16x16x4xbf16>
    %c1_28 = arith.constant 1 : index
    %c1_29 = arith.constant 1 : index
    %c0_30 = arith.constant 0 : index
    %15 = vector.load %arg7[%c1_28, %c1_29, %c0_30] : memref<18x18x4xbf16, #tpu.memory_space<vmem>>, vector<16x16x4xbf16>
    tpu.vector_store %arg7[%c1_28, %c1_29, %c0_30], %14 {strides = array<i32>} : memref<18x18x4xbf16, #tpu.memory_space<vmem>>, vector<16x16x4xbf16>,
    %c0_31 = arith.constant 0 : index
    %c0_32 = arith.constant 0 : index
    %c0_33 = arith.constant 0 : index
    %16 = vector.load %arg7[%c0_31, %c0_32, %c0_33] : memref<18x18x4xbf16, #tpu.memory_space<vmem>>, vector<18x16x4xbf16>
    %c0_34 = arith.constant 0 : index
    %c1_35 = arith.constant 1 : index
    %c0_36 = arith.constant 0 : index
    %17 = vector.load %arg7[%c0_34, %c1_35, %c0_36] : memref<18x18x4xbf16, #tpu.memory_space<vmem>>, vector<18x16x4xbf16>
    %c0_37 = arith.constant 0 : index
    %c2 = arith.constant 2 : index
    %c0_38 = arith.constant 0 : index
    %18 = vector.load %arg7[%c0_37, %c2, %c0_38] : memref<18x18x4xbf16, #tpu.memory_space<vmem>>, vector<18x16x4xbf16>
    %19 = tpu.concatenate %16, %17, %18 in 2 : vector<18x16x4xbf16>, vector<18x16x4xbf16>, vector<18x16x4xbf16> -> vector<18x16x12xbf16>
    %20 = vector.extract_strided_slice %19 {offsets = [0, 0, 0], sizes = [16, 16, 12], strides = [1, 1, 1]} : vector<18x16x12xbf16> to vector<16x16x12xbf16>
    %21 = vector.shape_cast %20 : vector<16x16x12xbf16> to vector<256x12xbf16>
    %c0_39 = arith.constant 0 : index
    %c0_40 = arith.constant 0 : index
    %c0_41 = arith.constant 0 : index
    %22 = vector.load %arg2[%c0_39, %c0_40, %c0_41] : memref<3x12x4xbf16, #tpu.memory_space<vmem>>, vector<1x12x4xbf16>
    %23 = vector.shape_cast %22 : vector<1x12x4xbf16> to vector<12x4xbf16>
    %cst_42 = arith.constant dense<0.000000e+00> : vector<256x4xf32>
    %24 = tpu.matmul %21, %23, %cst_42 {dimension_numbers = #tpu.dot_dimension_numbers<[1], [0], [0], [1], [0, 0, 1, 1], [], []>} : vector<256x12xbf16>, vector<12x4xbf16>, vector<256x4xf32> -> vector<256x4xf32>
    %25 = vector.extract_strided_slice %19 {offsets = [1, 0, 0], sizes = [16, 16, 12], strides = [1, 1, 1]} : vector<18x16x12xbf16> to vector<16x16x12xbf16>
    %26 = vector.shape_cast %25 : vector<16x16x12xbf16> to vector<256x12xbf16>
    %c1_43 = arith.constant 1 : index
    %c0_44 = arith.constant 0 : index
    %c0_45 = arith.constant 0 : index
    %27 = vector.load %arg2[%c1_43, %c0_44, %c0_45] : memref<3x12x4xbf16, #tpu.memory_space<vmem>>, vector<1x12x4xbf16>
    %28 = vector.shape_cast %27 : vector<1x12x4xbf16> to vector<12x4xbf16>
    %cst_46 = arith.constant dense<0.000000e+00> : vector<256x4xf32>
    %29 = tpu.matmul %26, %28, %cst_46 {dimension_numbers = #tpu.dot_dimension_numbers<[1], [0], [0], [1], [0, 0, 1, 1], [], []>} : vector<256x12xbf16>, vector<12x4xbf16>, vector<256x4xf32> -> vector<256x4xf32>
    %30 = arith.addf %24, %29 : vector<256x4xf32>
    %31 = vector.extract_strided_slice %19 {offsets = [2, 0, 0], sizes = [16, 16, 12], strides = [1, 1, 1]} : vector<18x16x12xbf16> to vector<16x16x12xbf16>
    %32 = vector.shape_cast %31 : vector<16x16x12xbf16> to vector<256x12xbf16>
    %c2_47 = arith.constant 2 : index
    %c0_48 = arith.constant 0 : index
    %c0_49 = arith.constant 0 : index
    %33 = vector.load %arg2[%c2_47, %c0_48, %c0_49] : memref<3x12x4xbf16, #tpu.memory_space<vmem>>, vector<1x12x4xbf16>
    %34 = vector.shape_cast %33 : vector<1x12x4xbf16> to vector<12x4xbf16>
    %cst_50 = arith.constant dense<0.000000e+00> : vector<256x4xf32>
    %35 = tpu.matmul %32, %34, %cst_50 {dimension_numbers = #tpu.dot_dimension_numbers<[1], [0], [0], [1], [0, 0, 1, 1], [], []>} : vector<256x12xbf16>, vector<12x4xbf16>, vector<256x4xf32> -> vector<256x4xf32>
    %36 = arith.addf %30, %35 : vector<256x4xf32>
    %c0_51 = arith.constant 0 : index
    %c0_52 = arith.constant 0 : index
    %37 = vector.load %arg3[%c0_51, %c0_52] : memref<1x4xf32, #tpu.memory_space<vmem>>, vector<1x4xf32>
    %38 = vector.shape_cast %37 : vector<1x4xf32> to vector<4xf32>
    %39 = vector.shape_cast %38 : vector<4xf32> to vector<1x4xf32>
    %40 = vector.broadcast %39 : vector<1x4xf32> to vector<256x4xf32>
    %41 = arith.addf %36, %40 : vector<256x4xf32>
    %cst_53 = arith.constant 0.000000e+00 : f32
    %42 = vector.broadcast %cst_53 : f32 to vector<256x4xf32>
    %43 = arith.maximumf %41, %42 : vector<256x4xf32>
    %44 = vector.shape_cast %43 : vector<256x4xf32> to vector<16x16x4xf32>
    %45 = arith.truncf %44 : vector<16x16x4xf32> to vector<16x16x4xbf16>
    %c1_54 = arith.constant 1 : index
    %c1_55 = arith.constant 1 : index
    %c0_56 = arith.constant 0 : index
    %46 = vector.load %arg8[%c1_54, %c1_55, %c0_56] : memref<18x18x4xbf16, #tpu.memory_space<vmem>>, vector<16x16x4xbf16>
    tpu.vector_store %arg8[%c1_54, %c1_55, %c0_56], %45 {strides = array<i32>} : memref<18x18x4xbf16, #tpu.memory_space<vmem>>, vector<16x16x4xbf16>,
    %c0_57 = arith.constant 0 : index
    %c0_58 = arith.constant 0 : index
    %c0_59 = arith.constant 0 : index
    %47 = vector.load %arg8[%c0_57, %c0_58, %c0_59] : memref<18x18x4xbf16, #tpu.memory_space<vmem>>, vector<18x16x4xbf16>
    %c0_60 = arith.constant 0 : index
    %c1_61 = arith.constant 1 : index
    %c0_62 = arith.constant 0 : index
    %48 = vector.load %arg8[%c0_60, %c1_61, %c0_62] : memref<18x18x4xbf16, #tpu.memory_space<vmem>>, vector<18x16x4xbf16>
    %c0_63 = arith.constant 0 : index
    %c2_64 = arith.constant 2 : index
    %c0_65 = arith.constant 0 : index
    %49 = vector.load %arg8[%c0_63, %c2_64, %c0_65] : memref<18x18x4xbf16, #tpu.memory_space<vmem>>, vector<18x16x4xbf16>
    %50 = tpu.concatenate %47, %48, %49 in 2 : vector<18x16x4xbf16>, vector<18x16x4xbf16>, vector<18x16x4xbf16> -> vector<18x16x12xbf16>
    %51 = vector.extract_strided_slice %50 {offsets = [0, 0, 0], sizes = [16, 16, 12], strides = [1, 1, 1]} : vector<18x16x12xbf16> to vector<16x16x12xbf16>
    %52 = vector.shape_cast %51 : vector<16x16x12xbf16> to vector<256x12xbf16>
    %c0_66 = arith.constant 0 : index
    %c0_67 = arith.constant 0 : index
    %c0_68 = arith.constant 0 : index
    %53 = vector.load %arg4[%c0_66, %c0_67, %c0_68] : memref<3x12x4xbf16, #tpu.memory_space<vmem>>, vector<1x12x4xbf16>
    %54 = vector.shape_cast %53 : vector<1x12x4xbf16> to vector<12x4xbf16>
    %cst_69 = arith.constant dense<0.000000e+00> : vector<256x4xf32>
    %55 = tpu.matmul %52, %54, %cst_69 {dimension_numbers = #tpu.dot_dimension_numbers<[1], [0], [0], [1], [0, 0, 1, 1], [], []>} : vector<256x12xbf16>, vector<12x4xbf16>, vector<256x4xf32> -> vector<256x4xf32>
    %56 = vector.extract_strided_slice %50 {offsets = [1, 0, 0], sizes = [16, 16, 12], strides = [1, 1, 1]} : vector<18x16x12xbf16> to vector<16x16x12xbf16>
    %57 = vector.shape_cast %56 : vector<16x16x12xbf16> to vector<256x12xbf16>
    %c1_70 = arith.constant 1 : index
    %c0_71 = arith.constant 0 : index
    %c0_72 = arith.constant 0 : index
    %58 = vector.load %arg4[%c1_70, %c0_71, %c0_72] : memref<3x12x4xbf16, #tpu.memory_space<vmem>>, vector<1x12x4xbf16>
    %59 = vector.shape_cast %58 : vector<1x12x4xbf16> to vector<12x4xbf16>
    %cst_73 = arith.constant dense<0.000000e+00> : vector<256x4xf32>
    %60 = tpu.matmul %57, %59, %cst_73 {dimension_numbers = #tpu.dot_dimension_numbers<[1], [0], [0], [1], [0, 0, 1, 1], [], []>} : vector<256x12xbf16>, vector<12x4xbf16>, vector<256x4xf32> -> vector<256x4xf32>
    %61 = arith.addf %55, %60 : vector<256x4xf32>
    %62 = vector.extract_strided_slice %50 {offsets = [2, 0, 0], sizes = [16, 16, 12], strides = [1, 1, 1]} : vector<18x16x12xbf16> to vector<16x16x12xbf16>
    %63 = vector.shape_cast %62 : vector<16x16x12xbf16> to vector<256x12xbf16>
    %c2_74 = arith.constant 2 : index
    %c0_75 = arith.constant 0 : index
    %c0_76 = arith.constant 0 : index
    %64 = vector.load %arg4[%c2_74, %c0_75, %c0_76] : memref<3x12x4xbf16, #tpu.memory_space<vmem>>, vector<1x12x4xbf16>
    %65 = vector.shape_cast %64 : vector<1x12x4xbf16> to vector<12x4xbf16>
    %cst_77 = arith.constant dense<0.000000e+00> : vector<256x4xf32>
    %66 = tpu.matmul %63, %65, %cst_77 {dimension_numbers = #tpu.dot_dimension_numbers<[1], [0], [0], [1], [0, 0, 1, 1], [], []>} : vector<256x12xbf16>, vector<12x4xbf16>, vector<256x4xf32> -> vector<256x4xf32>
    %67 = arith.addf %61, %66 : vector<256x4xf32>
    %c0_78 = arith.constant 0 : index
    %c0_79 = arith.constant 0 : index
    %68 = vector.load %arg5[%c0_78, %c0_79] : memref<1x4xf32, #tpu.memory_space<vmem>>, vector<1x4xf32>
    %69 = vector.shape_cast %68 : vector<1x4xf32> to vector<4xf32>
    %70 = vector.shape_cast %69 : vector<4xf32> to vector<1x4xf32>
    %71 = vector.broadcast %70 : vector<1x4xf32> to vector<256x4xf32>
    %72 = arith.addf %67, %71 : vector<256x4xf32>
    %73 = vector.shape_cast %1 : vector<16x16x4xf32> to vector<256x4xf32>
    %74 = arith.addf %72, %73 : vector<256x4xf32>
    %cst_80 = arith.constant 0.000000e+00 : f32
    %75 = vector.broadcast %cst_80 : f32 to vector<256x4xf32>
    %76 = arith.maximumf %74, %75 : vector<256x4xf32>
    %77 = tpu.transpose %76, [1, 0] : vector<256x4xf32> -> vector<4x256xf32>
    %c0_81 = arith.constant 0 : index
    %c0_82 = arith.constant 0 : index
    %c0_83 = arith.constant 0 : index
    %78 = vector.load %arg6[%c0_81, %c0_82, %c0_83] : memref<1x4x256xf32, #tpu.memory_space<vmem>>, vector<1x4x256xf32>
    %79 = vector.shape_cast %78 : vector<1x4x256xf32> to vector<4x256xf32>
    %80 = vector.shape_cast %77 : vector<4x256xf32> to vector<1x4x256xf32>
    tpu.vector_store %arg6[%c0_81, %c0_82, %c0_83], %80 {strides = array<i32>} : memref<1x4x256xf32, #tpu.memory_space<vmem>>, vector<1x4x256xf32>,
    return
  }
  func.func @transform_0(%arg0: i32) -> (i32, i32, i32, i32) {
    %c0_i32 = arith.constant 0 : i32
    %c0_i32_0 = arith.constant 0 : i32
    %c0_i32_1 = arith.constant 0 : i32
    %c0_i32_2 = arith.constant 0 : i32
    return %arg0, %c0_i32, %c0_i32_0, %c0_i32_1 : i32, i32, i32, i32
  }
  func.func @transform_1(%arg0: i32) -> (i32, i32, i32) {
    %c0_i32 = arith.constant 0 : i32
    %c0_i32_0 = arith.constant 0 : i32
    %c0_i32_1 = arith.constant 0 : i32
    %c0_i32_2 = arith.constant 0 : i32
    return %c0_i32, %c0_i32_0, %c0_i32_1 : i32, i32, i32
  }
  func.func @transform_2(%arg0: i32) -> (i32, i32) {
    %c0_i32 = arith.constant 0 : i32
    %c0_i32_0 = arith.constant 0 : i32
    %c0_i32_1 = arith.constant 0 : i32
    return %c0_i32, %c0_i32_0 : i32, i32
  }
  func.func @transform_3(%arg0: i32) -> (i32, i32, i32) {
    %c0_i32 = arith.constant 0 : i32
    %c0_i32_0 = arith.constant 0 : i32
    %c0_i32_1 = arith.constant 0 : i32
    %c0_i32_2 = arith.constant 0 : i32
    return %c0_i32, %c0_i32_0, %c0_i32_1 : i32, i32, i32
  }
  func.func @transform_4(%arg0: i32) -> (i32, i32) {
    %c0_i32 = arith.constant 0 : i32
    %c0_i32_0 = arith.constant 0 : i32
    %c0_i32_1 = arith.constant 0 : i32
    return %c0_i32, %c0_i32_0 : i32, i32
  }
  func.func @transform_5(%arg0: i32) -> (i32, i32, i32) {
    %c0_i32 = arith.constant 0 : i32
    %c0_i32_0 = arith.constant 0 : i32
    %c0_i32_1 = arith.constant 0 : i32
    return %arg0, %c0_i32, %c0_i32_0 : i32, i32, i32
  }
}

</mosaic_0001>

<bundles_post_ra>
// kernel: tpu_custom_call.1
= control target key start
LH: loop header
LB: loop body
LE: loop exit
PB: predicated region body
PF: predicated region fallthrough
CT: control target
= control target key end

     0   :  { %10 = vsyncpa [#allocation5], 0  ;;  %s7049_s0 = inlined_call_operand.vmem [shape: f32[2,16,16,4], index: 0, kind: input, shape index: {}]   ;;  %s7050_s1 = inlined_call_operand.vmem [shape: bf16[3,12,4], index: 1, kind: input, shape index: {}]   ;;  %s7051_s2 = inlined_call_operand.vmem [shape: f32[1,4], index: 2, kind: input, shape index: {}]   ;;  %s7052_s3 = inlined_call_operand.vmem [shape: bf16[3,12,4], index: 3, kind: input, shape index: {}]   ;;  %s7053_s4 = inlined_call_operand.vmem [shape: f32[1,4], index: 4, kind: input, shape index: {}]   ;;  %s7054_s5 = inlined_call_operand.hbm [shape: f32[2,4,256], index: 5, kind: output, shape index: {}]  }
   0x1   :  { %12 = vsyncpa [#allocation5 + $0x1], 0  ;;  %s5336_s18 = smov 0   ;;  %s5338_s19 = smov 0  }
   0x2   :  { %s5340_s20 = smov 0   ;;  %s5342_s21 = smov 0  }
   0x3 LB: > { %s5357_s22 = sadd.s32 4294967295, %s5300_s21   ;;  %s4388_s23 = sadd.s32 4294967294, %s5300_s21   ;;  %s5300_s21 = sphi %s5342_s21, %s7068_s21   ;;  %s5296_s20 = sphi %s5340_s20, %s7067_s20   ;;  %s5292_s19 = sphi %s5338_s19, %s7066_s19   ;;  %s5288_s18 = sphi %s5336_s18, %s7065_s18  }
   0x4   : > { %s5361_s24 = sadd.s32 1, %s5300_s21   ;;  %s135_s25 = sadd.s32 1, %s5296_s20 }
   0x5   : > { %s132_s26 = ssub.s32 %s5300_s21, %s5361_s24  ;;  %p145_p0 = scmp.ne.s32.totalorder %s5296_s20, %s5292_s19 }
   0x6   : > { %p133_p1 = scmp.eq.s32.totalorder %s132_s26, 0  ;;  %p146_p2 = scmp.eq.s32.totalorder %s5357_s22, 1 }
   0x7   : > { %p151_p3 = scmp.ne.s32.totalorder %s5292_s19, %s5288_s18  ;;  %p152_p4 = scmp.eq.s32.totalorder %s4388_s23, 1 }
   0x8   : > { %s5372_s27 = scalar_select %p133_p1, %s5296_s20, %s135_s25  }
   0x9   : > { %p5374_p5 = por %p146_p2, %p145_p0  ;;  %p5378_p6 = por %p152_p4, %p151_p3 }
   0xa   : > { %p4391_p7 = scmp.ge.s32.totalorder %s5300_s21, 1  ;;  %p190_p8 = scmp.lt.s32.totalorder %s5300_s21, 3 }
   0xc   : > { %p191_p9 = pnand %p4391_p7, %p190_p8 }
   0xd   : > { %p218_p10 = scmp.lt.s32.totalorder (!%p191_p9), %s5357_s22, 1  ;;  %s5303_s10 = smov (!%p191_p9), 8  }
   0xe   : > { %194 = sbr.rel (%p191_p9) target bundleno = 1143 (0x477), region = 40  ;;  %s5304_s11 = smov (!%p191_p9), 4  }
   0xf   : > { %s215_s17 = sand.u32 (!%p191_p9), 1, %s5292_s19   ;;  %s4749_s25 = sshll.u32 (!%p191_p9), %s5357_s22, 7 }
  0x10   : > { %s4392_s23 = sshll.u32 (!%p191_p9), %s215_s17, 3  ;;  %s4327_s8 = scalar_lea.hbm (!%p191_p9), %s7054_s5, %s4749_s25 }
  0x11   : > { %s217_s26 = scalar_lea.vmem (!%p191_p9), [#allocation4], %s4392_s23  ;;  %s5305_s13 = smov (!%p191_p9), [#allocation4]  }
  0x12   : > { %s5244_s14 = sshll.u32 (!%p191_p9), %s5305_s13, 4  ;;  %s5245_s14 = int_to_ptr.vmem [resolvable:$false] %s5244_s14 }
  0x13   : > { %vm259_vm0 = vcmask 24576   ;;  %vm267_vm1 = vsmask.f32 256  ;;  %v269_v1 = vld [vmem:[#allocation2 + $0xc] sm:$0x1]  ;;  %s219_s30 = scalar_select %p218_p10, %s5357_s22, 1 }
  0x14   : > { %vm5387_vm2 = vmand %vm259_vm0, %vm267_vm1  ;;  %vm317_vm3 = vsmask.f32 7938  ;;  %v319_v2 = vld [vmem:[#allocation2 + $0x14] sm:$0x1]  ;;  %vm256_vm5 = vcmask 27648   ;;  %v5302_v10 = vmov 0  }
  0x15   : > { %v270_v3 = vsel %vm5387_vm2, 0, %v269_v1  ;;  %vm5396_vm4 = vmand %vm259_vm0, %vm317_vm3  ;;  %v272_v6 = vld [vmem:[#allocation2 + $0x18] sm:$0x1]  ;;  %s4684_s6 = sshll.u32 %s219_s30, 8  ;;  %v322_v8 = vld [vmem:[#allocation2 + $0x20] sm:$0x1] }
  0x16   : > { %271 = vst [vmem:[#allocation2 + $0xc] sm:$0x1] %v270_v3  ;;  %v320_v5 = vsel %vm5396_vm4, 0, %v319_v2  ;;  %v273_v7 = vsel %vm5387_vm2, 0, %v272_v6  ;;  %v278_v9 = vld [vmem:[#allocation2 + $0x30] sm:$0x1]  ;;  %s5419_s9 = scalar_lea.vmem %s7049_s0, %s4684_s6  ;;  %vm5442_vm8 = vmand %vm256_vm5, %vm317_vm3 }
  0x17   : > { %321 = vst [vmem:[#allocation2 + $0x14] sm:$0x1] %v320_v5  ;;  %257 = vst.msk [vmem:[#allocation2] sm:$0xf] %vm256_vm5, %v5302_v10  ;;  %v323_v11 = vsel %vm5396_vm4, 0, %v322_v8  ;;  %v279_v12 = vsel %vm5387_vm2, 0, %v278_v9 }
  0x18   : > { %258 = vst.msk [vmem:[#allocation2 + $0x4] sm:$0xf] %vm256_vm5, %v5302_v10  ;;  %262 = vst.msk [vmem:[#allocation2 + $0xcc] sm:$0xf] %vm256_vm5, %v5302_v10  ;;  %v328_v13 = vld [vmem:[#allocation2 + $0x38] sm:$0x1] }
  0x19   : > { %260 = vst.msk [vmem:[#allocation2 + $0x8] sm:$0x1] %vm259_vm0, %v5302_v10  ;;  %264 = vst.msk [vmem:[#allocation2 + $0xd4] sm:$0x1] %vm259_vm0, %v5302_v10  ;;  %v275_v14 = vld [vmem:[#allocation2 + $0x24] sm:$0x1] }
  0x1a   : > { %263 = vst.msk [vmem:[#allocation2 + $0xd0] sm:$0xf] %vm256_vm5, %v5302_v10  ;;  %367 = vst.msk [vmem:[#allocation3] sm:$0xf] %vm256_vm5, %v5302_v10  ;;  %v224_v15 = vld [vmem:[%s5419_s9] sm:$0xff]  ;;  %v225_v16 = vld [vmem:[%s5419_s9 + $0x8] sm:$0xff] }
  0x1b   : > { %368 = vst.msk [vmem:[#allocation3 + $0x4] sm:$0xf] %vm256_vm5, %v5302_v10  ;;  %371 = vst.msk [vmem:[#allocation3 + $0xcc] sm:$0xf] %vm256_vm5, %v5302_v10  ;;  %v226_v17 = vld [vmem:[%s5419_s9 + $0x10] sm:$0xff]  ;;  %v329_v18 = vsel %vm5396_vm4, 0, %v328_v13  ;;  %v4685_v20 = vpack.c.bf16 %v224_v15, %v224_v15  ;;  %v4686_v21 = vpack.c.bf16 %v225_v16, %v225_v16 }
  0x1c   : > { %369 = vst.msk [vmem:[#allocation3 + $0x8] sm:$0x1] %vm259_vm0, %v5302_v10  ;;  %373 = vst.msk [vmem:[#allocation3 + $0xd4] sm:$0x1] %vm259_vm0, %v5302_v10  ;;  %v276_v19 = vsel %vm5387_vm2, 0, %v275_v14  ;;  %v227_v22 = vld [vmem:[%s5419_s9 + $0x18] sm:$0xff]  ;;  %v4687_v23 = vpack.c.bf16 %v226_v17, %v226_v17 }
  0x1d   : > { %372 = vst.msk [vmem:[#allocation3 + $0xd0] sm:$0xf] %vm256_vm5, %v5302_v10  ;;  %274 = vst [vmem:[#allocation2 + $0x18] sm:$0x1] %v273_v7  ;;  %v230_v24 = vld [vmem:[%s5419_s9 + $0x30] sm:$0xff]  ;;  %v231_v25 = vld [vmem:[%s5419_s9 + $0x38] sm:$0xff]  ;;  %v4688_v26 = vpack.c.bf16 %v227_v22, %v227_v22 }
  0x1e   : > { %324 = vst [vmem:[#allocation2 + $0x20] sm:$0x1] %v323_v11  ;;  %280 = vst [vmem:[#allocation2 + $0x30] sm:$0x1] %v279_v12  ;;  %vm567_vm6 = vsmask.f32 4368  ;;  %v4691_v27 = vpack.c.bf16 %v230_v24, %v230_v24  ;;  %v4692_v28 = vpack.c.bf16 %v231_v25, %v231_v25 }
  0x1f   : > { %330 = vst [vmem:[#allocation2 + $0x38] sm:$0x1] %v329_v18  ;;  %277 = vst [vmem:[#allocation2 + $0x24] sm:$0x1] %v276_v19  ;;  %v570_v29 = vshrl.u32 %v4685_v20, 16  ;;  %v573_v30 = vshll.u32 %v4685_v20, 16 }
  0x20   : > { %v578_v31 = vshrl.u32 %v4686_v21, 16  ;;  %v581_v32 = vshll.u32 %v4686_v21, 16  ;;  %v587_v33 = vshrl.u32 %v4687_v23, 16  ;;  %v590_v34 = vshll.u32 %v4687_v23, 16  ;;  %vm5436_vm7 = vmor %vm267_vm1, %vm567_vm6  ;;  %v891_v40 = vld [vmem:[#allocation2 + $0xc] sm:$0xf] }
  0x21   : > { %v595_v35 = vshrl.u32 %v4688_v26, 16  ;;  %v598_v36 = vshll.u32 %v4688_v26, 16  ;;  %v572_v38 = vrot.slane %v570_v29, 7  ;;  %v621_v41 = vshrl.u32 %v4691_v27, 16  ;;  %v895_v44 = vld [vmem:[#allocation2 + $0x14] sm:$0x1] }
  0x22   : > { %v580_v39 = vrot.slane %v578_v31, 7  ;;  %v624_v42 = vshll.u32 %v4691_v27, 16  ;;  %v589_v45 = vrot.slane %v587_v33, 7  ;;  %v629_v47 = vshrl.u32 %v4692_v28, 16  ;;  %v228_v59 = vld [vmem:[%s5419_s9 + $0x20] sm:$0xff]  ;;  %v229_v2 = vld [vmem:[%s5419_s9 + $0x28] sm:$0xff] }
  0x23   : > { %v597_v46 = vrot.slane %v595_v35, 7  ;;  %v632_v48 = vshll.u32 %v4692_v28, 16  ;;  %v575_v49 = vor.u32 %v573_v30, %v572_v38  ;;  %v576_v50 = vrot.slane %v572_v38, 4  ;;  %v325_v60 = vld [vmem:[#allocation2 + $0x2c] sm:$0x1]  ;;  %v234_v30 = vld [vmem:[%s5419_s9 + $0x50] sm:$0xff] }
  0x24   : > { %v583_v51 = vor.u32 %v581_v32, %v580_v39  ;;  %v585_v52 = vrot.slane %v580_v39, 4  ;;  %v898_v53 = vld [vmem:[#allocation2 + $0x18] sm:$0xf]  ;;  %v592_v55 = vor.u32 %v590_v34, %v589_v45  ;;  %v593_v56 = vrot.slane %v589_v45, 4  ;;  %v284_v3 = vld [vmem:[#allocation2 + $0x48] sm:$0x1] }
  0x25   : > { %v902_v54 = vld [vmem:[#allocation2 + $0x20] sm:$0x1]  ;;  %v600_v57 = vor.u32 %v598_v36, %v597_v46  ;;  %v602_v58 = vrot.slane %v597_v46, 4  ;;  %v892_v62 = vsel %vm5442_vm8, %v575_v49, %v891_v40  ;;  %v623_v1 = vrot.slane %v621_v41, 7  ;;  %v912_v9 = vld [vmem:[#allocation2 + $0x30] sm:$0xf] }
  0x26   : > { %v584_v61 = vsel %vm5436_vm7, %v576_v50, %v583_v51  ;;  %v896_v63 = vsel %vm5387_vm2, %v585_v52, %v895_v44  ;;  %893 = vst [vmem:[#allocation2 + $0xc] sm:$0xf] %v892_v62  ;;  %v899_v6 = vsel %vm5442_vm8, %v592_v55, %v898_v53  ;;  %v631_v8 = vrot.slane %v629_v47, 7  ;;  %v334_v10 = vld [vmem:[#allocation2 + $0x50] sm:$0x1]  ;;  %v235_v31 = vld [vmem:[%s5419_s9 + $0x58] sm:$0xff] }
  0x27   : > { %894 = vst.msk [vmem:[#allocation2 + $0x10] sm:$0xf] %vm256_vm5, %v584_v61  ;;  %897 = vst [vmem:[#allocation2 + $0x14] sm:$0x1] %v896_v63  ;;  %v601_v5 = vsel %vm5436_vm7, %v593_v56, %v600_v57  ;;  %v903_v7 = vsel %vm5387_vm2, %v602_v58, %v902_v54  ;;  %v626_v11 = vor.u32 %v624_v42, %v623_v1  ;;  %v627_v12 = vrot.slane %v623_v1, 4  ;;  %v232_v33 = vld [vmem:[%s5419_s9 + $0x40] sm:$0xff] }
  0x28   : > { %900 = vst [vmem:[#allocation2 + $0x18] sm:$0xf] %v899_v6  ;;  %901 = vst.msk [vmem:[#allocation2 + $0x1c] sm:$0xf] %vm256_vm5, %v601_v5  ;;  %v916_v13 = vld [vmem:[#allocation2 + $0x38] sm:$0x1]  ;;  %v4689_v15 = vpack.c.bf16 %v228_v59, %v228_v59  ;;  %v634_v16 = vor.u32 %v632_v48, %v631_v8  ;;  %v4690_v18 = vpack.c.bf16 %v229_v2, %v229_v2 }
  0x29   : > { %904 = vst [vmem:[#allocation2 + $0x20] sm:$0x1] %v903_v7  ;;  %v326_v14 = vsel %vm5396_vm4, 0, %v325_v60  ;;  %v636_v17 = vrot.slane %v631_v8, 4  ;;  %v285_v19 = vsel %vm5387_vm2, 0, %v284_v3  ;;  %v913_v21 = vsel %vm5442_vm8, %v626_v11, %v912_v9  ;;  %v233_v38 = vld [vmem:[%s5419_s9 + $0x48] sm:$0xff] }
  0x2a   : > { %327 = vst [vmem:[#allocation2 + $0x2c] sm:$0x1] %v326_v14  ;;  %v281_v20 = vld [vmem:[#allocation2 + $0x3c] sm:$0x1]  ;;  %v604_v22 = vshrl.u32 %v4689_v15, 16  ;;  %v607_v23 = vshll.u32 %v4689_v15, 16  ;;  %v635_v26 = vsel %vm5436_vm7, %v627_v12, %v634_v16  ;;  %v5486_v45 = vpack.c.bf16 %v234_v30, %v234_v30 }
  0x2b   : > { %286 = vst [vmem:[#allocation2 + $0x48] sm:$0x1] %v285_v19  ;;  %v335_v24 = vsel %vm5396_vm4, 0, %v334_v10  ;;  %v331_v25 = vld [vmem:[#allocation2 + $0x44] sm:$0x1]  ;;  %v917_v27 = vsel %vm5387_vm2, %v636_v17, %v916_v13  ;;  %v612_v28 = vshrl.u32 %v4690_v18, 16  ;;  %v5488_v46 = vpack.c.bf16 %v235_v31, %v235_v31 }
  0x2c   : > { %914 = vst [vmem:[#allocation2 + $0x30] sm:$0xf] %v913_v21  ;;  %v615_v29 = vshll.u32 %v4690_v18, 16  ;;  %336 = vst [vmem:[#allocation2 + $0x50] sm:$0x1] %v335_v24  ;;  %vm1526_vm9 = vcmask 1046528   ;;  %v5491_v52 = vpack.c.bf16 %v232_v33, %v232_v33  ;;  %v5497_v57 = vpack.c.bf16 %v233_v38, %v233_v38 }
  0x2d   : > { %915 = vst.msk [vmem:[#allocation2 + $0x34] sm:$0xf] %vm256_vm5, %v635_v26  ;;  %918 = vst [vmem:[#allocation2 + $0x38] sm:$0x1] %v917_v27  ;;  %v606_v32 = vrot.slane %v604_v22, 7  ;;  %v282_v34 = vsel %vm5387_vm2, 0, %v281_v20 }
  0x2e   : > { %vm1219_vm10 = vsmask.f32 7424  ;;  %v5480_v35 = vrot.slane %v612_v28, 7  ;;  %v905_v36 = vld [vmem:[#allocation2 + $0x24] sm:$0xf]  ;;  %v332_v39 = vsel %vm5396_vm4, 0, %v331_v25 }
  0x2f   : > { %283 = vst [vmem:[#allocation2 + $0x3c] sm:$0x1] %v282_v34  ;;  %v238_v40 = vld [vmem:[%s5419_s9 + $0x70] sm:$0xff]  ;;  %v1058_v42 = vld [vmem:[#allocation2 + $0xc] sm:$0xe]  ;;  %v609_v44 = vor.u32 %v607_v23, %v606_v32  ;;  %v610_v50 = vrot.slane %v606_v32, 4 }
  0x30   : > { %v1006_v41 = vld [vmem:[#allocation2 + $0x10] sm:$0xf]  ;;  %333 = vst [vmem:[#allocation2 + $0x44] sm:$0x1] %v332_v39  ;;  %v1005_v49 = vld [vmem:[#allocation2 + $0xc] sm:$0xf]  ;;  %v617_v51 = vor.u32 %v615_v29, %v5480_v35  ;;  %v5499_v58 = vpack.c.bf16 %v238_v40, %v238_v40 }
  0x31   : > { %v5104_v47 = vld [vmem:[#allocation2 + $0x14] ss:$0 sps:$4 sm:$0x11]   ;;  %v4464_v48 = vcombine.low %v1058_v42, %v1006_v41  ;;  %v5493_v53 = vcombine.low %v1005_v49, %v1006_v41  ;;  %v1007_v54 = vld [vmem:[#allocation2 + $0x18] sm:$0xf]  ;;  %v906_v56 = vsel %vm5442_vm8, %v609_v44, %v905_v36  ;;  %v236_v8 = vld [vmem:[%s5419_s9 + $0x60] sm:$0xff] }
  0x32   : > { %v1008_v55 = vld [vmem:[#allocation2 + $0x1c] sm:$0xf]  ;;  %v1531_v60 = vrot.slane %v5104_v47, 1  ;;  %v1240_v61 = vshll.u32 %v5104_v47, 16  ;;  %v1059_v62 = vld [vmem:[#allocation2 + $0x18] sm:$0xe]  ;;  %v618_v7 = vsel %vm5436_vm7, %v610_v50, %v617_v51  ;;  %v5518_v23 = vpack.c.bf16 %v236_v8, %v236_v8 }
  0x33   : > { %v1530_v59 = vrot.slane %v4464_v48, 1  ;;  %v5501_v63 = vcombine.low %v1007_v54, %v1008_v55  ;;  %907 = vst [vmem:[#allocation2 + $0x24] sm:$0xf] %v906_v56  ;;  %v239_v1 = vld [vmem:[%s5419_s9 + $0x78] sm:$0xff]  ;;  %v1233_v2 = vshrl.u32 %v5493_v53, 16  ;;  %v1235_v3 = vshll.u32 %v5493_v53, 16 }
  0x34   : > { %v5108_v5 = vld [vmem:[#allocation2 + $0x20] ss:$0 sps:$4 sm:$0x11]   ;;  %v4465_v6 = vcombine.low %v1059_v62, %v1008_v55  ;;  %v1242_v10 = vrot.slane %v1240_v61, 1  ;;  %v1011_v13 = vld [vmem:[#allocation2 + $0x30] sm:$0xf]  ;;  %v5516_v22 = vpack.c.bf16 %v239_v1, %v239_v1 }
  0x35   : > { %v1532_v9 = vsel %vm1526_vm9, %v1530_v59, %v1531_v60  ;;  %v1245_v11 = vshrl.u32 %v5501_v63, 16  ;;  %v1247_v12 = vshll.u32 %v5501_v63, 16  ;;  %908 = vst.msk [vmem:[#allocation2 + $0x28] sm:$0xf] %vm256_vm5, %v618_v7  ;;  %v1237_v14 = vrot.slane %v1235_v3, 1  ;;  %v237_v41 = vld [vmem:[%s5419_s9 + $0x68] sm:$0xff] }
  0x36   : > { %1583 = vrot.lane.b32.xlu1 %v1532_v9, %s5303_s10  ;;  %v1533_v15 = vrot.slane %v4465_v6, 1  ;;  %v1534_v16 = vrot.slane %v5108_v5, 1  ;;  %v1252_v17 = vshll.u32 %v5108_v5, 16  ;;  %v1012_v18 = vld [vmem:[#allocation2 + $0x34] sm:$0xf]  ;;  %v619_v27 = vrot.slane %v5480_v35, 4 }
  0x37   : > { %v1249_v19 = vrot.slane %v1247_v12, 1  ;;  %v5514_v20 = vcombine.low %v1011_v13, %v1012_v18  ;;  %v5111_v21 = vld [vmem:[#allocation2 + $0x38] ss:$0 sps:$4 sm:$0x11]   ;;  %v1238_v24 = vor.u32 %v1237_v14, %v1233_v2  ;;  %v909_v28 = vld [vmem:[#allocation2 + $0x2c] sm:$0x1]  ;;  %v5537_v61 = vpack.c.bf16 %v237_v41, %v237_v41 }
  0x38   : > { %v1535_v25 = vsel %vm1526_vm9, %v1533_v15, %v1534_v16  ;;  %v1254_v26 = vrot.slane %v1252_v17, 1  ;;  %v1061_v29 = vld [vmem:[#allocation2 + $0x30] sm:$0xe]  ;;  %v1276_v33 = vshll.u32 %v5111_v21, 16  ;;  %v910_v36 = vsel %vm5387_vm2, %v619_v27, %v909_v28  ;;  %v926_v3 = vld [vmem:[#allocation2 + $0x48] sm:$0xf] }
  0x39   : > { %v1250_v30 = vor.u32 %v1249_v19, %v1245_v11  ;;  %v1269_v31 = vshrl.u32 %v5514_v20, 16  ;;  %v1271_v32 = vshll.u32 %v5514_v20, 16  ;;  %v1243_v34 = vsel %vm1219_vm10, %v1238_v24, %v1242_v10  ;;  %911 = vst [vmem:[#allocation2 + $0x2c] sm:$0x1] %v910_v36  ;;  %v290_v6 = vld [vmem:[#allocation2 + $0x60] sm:$0x1] }
  0x3a   : > { %1585 = vrot.lane.b32.xlu1 %v1535_v25, %s5303_s10  ;;  %v1009_v38 = vld [vmem:[#allocation2 + $0x24] sm:$0xf]  ;;  %v4467_v39 = vcombine.low %v1061_v29, %v1012_v18  ;;  %v1540_v40 = vrot.slane %v5111_v21, 1  ;;  %1438 = vrot.lane.b32.xlu0 %v1243_v34, %s5304_s11  ;;  %v1278_v44 = vrot.slane %v1276_v33, 1  ;;  %v655_v48 = vshrl.u32 %v5486_v45, 16  ;;  %s4329_s30 = sshll.u32 %s217_s26, 4  ;;  %s4330_s30 = int_to_ptr.vmem [resolvable:$true] %s4329_s30 }
  0x3b   : > { %v1255_v35 = vsel %vm1219_vm10, %v1250_v30, %v1254_v26  ;;  %v1273_v42 = vrot.slane %v1271_v32, 1  ;;  %v1060_v47 = vld [vmem:[#allocation2 + $0x24] sm:$0xe]  ;;  %v658_v51 = vshll.u32 %v5486_v45, 16  ;;  %v663_v54 = vshrl.u32 %v5488_v46, 16  ;;  %s5240_s12 = scalar_lea.vmem %s4330_s30, 128  ;;  %p5247_p0 = scmp.lt.s32.totalorder %s4330_s30, %s5245_s14 }
  0x3c   : > { %v1010_v49 = vld [vmem:[#allocation2 + $0x28] sm:$0xf]  ;;  %v1539_v50 = vrot.slane %v4467_v39, 1  ;;  %v666_v55 = vshll.u32 %v5488_v46, 16  ;;  %v657_v60 = vrot.slane %v655_v48, 7  ;;  %v638_v5 = vshrl.u32 %v5491_v52, 16  ;;  %p5241_p11 = scmp.ne.s32.totalorder %s4330_s30, %s5240_s12 }
  0x3d   : > { %v1274_v56 = vor.u32 %v1273_v42, %v1269_v31  ;;  %v5535_v59 = vcombine.low %v1009_v38, %v1010_v49  ;;  %v4466_v1 = vcombine.low %v1060_v47, %v1010_v49  ;;  %v665_v2 = vrot.slane %v663_v54, 7  ;;  %v930_v8 = vld [vmem:[#allocation2 + $0x50] sm:$0x1]  ;;  %v340_v14 = vld [vmem:[#allocation2 + $0x68] sm:$0x1]  ;;  %s5246_s22 = scalar_lea.vmem %s5245_s14, 256 }
  0x3e   : > { %v1541_v62 = vsel %vm1526_vm9, %v1539_v50, %v1540_v40  ;;  %1440 = vrot.lane.b32.xlu0 %v1255_v35, %s5304_s11  ;;  %v641_v9 = vshll.u32 %v5491_v52, 16  ;;  %v660_v10 = vor.u32 %v658_v51, %v657_v60  ;;  %v661_v11 = vrot.slane %v657_v60, 4  ;;  %v919_v19 = vld [vmem:[#allocation2 + $0x3c] sm:$0xf]  ;;  %v287_v30 = vld [vmem:[#allocation2 + $0x54] sm:$0x1]  ;;  %p5242_p12 = pnand %p5241_p11, %p5374_p5  ;;  %p5248_p1 = scmp.lt.s32.totalorder %s5246_s22, %s5240_s12 }
  0x3f   : > { %v1279_v45 = vsel %vm1219_vm10, %v1274_v56, %v1278_v44  ;;  %v1257_v46 = vshrl.u32 %v5535_v59, 16  ;;  %v1259_v7 = vshll.u32 %v5535_v59, 16  ;;  %v668_v12 = vor.u32 %v666_v55, %v665_v2  ;;  %v923_v33 = vld [vmem:[#allocation2 + $0x44] sm:$0x1]  ;;  %v337_v48 = vld [vmem:[#allocation2 + $0x5c] sm:$0x1] }
  0x40   : > { %1444 = vrot.lane.b32.xlu1 %v1279_v45, %s5304_s11  ;;  %v670_v13 = vrot.slane %v665_v2, 4  ;;  %v640_v16 = vrot.slane %v638_v5, 7  ;;  %v646_v17 = vshrl.u32 %v5497_v57, 16  ;;  %v649_v18 = vshll.u32 %v5497_v57, 16  ;;  %v242_v60 = vld [vmem:[%s5419_s9 + $0x90] sm:$0xff]  ;;  %p5243_p13 = pneg %p5242_p12  ;;  %p5249_p2 = por %p5248_p1, %p5247_p0 }
  0x41   : > { %v1261_v15 = vrot.slane %v1259_v7, 1  ;;  %v5113_v21 = vld [vmem:[#allocation2 + $0x2c] ss:$0 sps:$4 sm:$0x11]   ;;  %v669_v24 = vsel %vm5436_vm7, %v661_v11, %v668_v12  ;;  %v927_v52 = vsel %vm5442_vm8, %v660_v10, %v926_v3  ;;  %v291_v26 = vsel %vm5387_vm2, 0, %v290_v6  ;;  %v243_v7 = vld [vmem:[%s5419_s9 + $0x98] sm:$0xff] }
  0x42   : > { %v931_v25 = vsel %vm5387_vm2, %v670_v13, %v930_v8  ;;  %v1536_v27 = vrot.slane %v4466_v1, 1  ;;  %928 = vst [vmem:[#allocation2 + $0x48] sm:$0xf] %v927_v52  ;;  %929 = vst.msk [vmem:[#allocation2 + $0x4c] sm:$0xf] %vm256_vm5, %v669_v24  ;;  %v643_v57 = vor.u32 %v641_v9, %v640_v16  ;;  %v644_v28 = vrot.slane %v640_v16, 4  ;;  %p5250_p3 = pnand %p5249_p2, %p5243_p13 }
  0x43   : > { %932 = vst [vmem:[#allocation2 + $0x50] sm:$0x1] %v931_v25  ;;  %v648_v29 = vrot.slane %v646_v17, 7  ;;  %292 = vst [vmem:[#allocation2 + $0x60] sm:$0x1] %v291_v26  ;;  %v1262_v31 = vor.u32 %v1261_v15, %v1257_v46  ;;  %v1264_v32 = vshll.u32 %v5113_v21, 16  ;;  %v5589_v13 = vpack.c.bf16 %v242_v60, %v242_v60 }
  0x44   : > { %1589 = vrot.lane.b32.xlu1 %v1541_v62, %s5303_s10  ;;  %v341_v34 = vsel %vm5396_vm4, 0, %v340_v14  ;;  %v689_v36 = vshrl.u32 %v5499_v58, 16  ;;  %v1537_v38 = vrot.slane %v5113_v21, 1  ;;  %v920_v41 = vsel %vm5442_vm8, %v643_v57, %v919_v19  ;;  %v240_v8 = vld [vmem:[%s5419_s9 + $0x80] sm:$0xff] }
  0x45   : > { %v651_v39 = vor.u32 %v649_v18, %v648_v29  ;;  %v653_v40 = vrot.slane %v648_v29, 4  ;;  %342 = vst [vmem:[#allocation2 + $0x68] sm:$0x1] %v341_v34  ;;  %v1266_v35 = vrot.slane %v1264_v32, 1  ;;  %921 = vst [vmem:[#allocation2 + $0x3c] sm:$0xf] %v920_v41 }
  0x46   : > { %v691_v42 = vrot.slane %v689_v36, 7  ;;  %v692_v44 = vshll.u32 %v5499_v58, 16  ;;  %v697_v47 = vshrl.u32 %v5516_v22, 16  ;;  %v700_v51 = vshll.u32 %v5516_v22, 16  ;;  %v296_v34 = vld [vmem:[#allocation2 + $0x78] sm:$0x1] }
  0x47   : > { %v652_v49 = vsel %vm5436_vm7, %v644_v28, %v651_v39  ;;  %v924_v50 = vsel %vm5387_vm2, %v653_v40, %v923_v33  ;;  %v288_v54 = vsel %vm5387_vm2, 0, %v287_v30  ;;  %v1267_v55 = vsel %vm1219_vm10, %v1262_v31, %v1266_v35 }
  0x48   : > { %922 = vst.msk [vmem:[#allocation2 + $0x40] sm:$0xf] %vm256_vm5, %v652_v49  ;;  %925 = vst [vmem:[#allocation2 + $0x44] sm:$0x1] %v924_v50  ;;  %v695_v58 = vrot.slane %v691_v42, 4  ;;  %v699_v56 = vrot.slane %v697_v47, 7  ;;  %1442 = vrot.lane.b32.xlu0 %v1267_v55, %s5304_s11  ;;  %v1538_v3 = vsel %vm1526_vm9, %v1536_v27, %v1537_v38  ;;  %v694_v45 = vor.u32 %v692_v44, %v691_v42 }
  0x49   : > { %289 = vst [vmem:[#allocation2 + $0x54] sm:$0x1] %v288_v54  ;;  %v338_v62 = vsel %vm5396_vm4, 0, %v337_v48  ;;  %v672_v22 = vshrl.u32 %v5518_v23, 16  ;;  %v675_v1 = vshll.u32 %v5518_v23, 16  ;;  %v680_v2 = vshrl.u32 %v5537_v61, 16 }
  0x4a   : > { %v1015_v5 = vld [vmem:[#allocation2 + $0x48] sm:$0xf]  ;;  %v1016_v6 = vld [vmem:[#allocation2 + $0x4c] sm:$0xf]  ;;  %v702_v46 = vor.u32 %v700_v51, %v699_v56  ;;  %339 = vst [vmem:[#allocation2 + $0x5c] sm:$0x1] %v338_v62  ;;  %v5604_v36 = vpack.c.bf16 %v243_v7, %v243_v7  ;;  %v5606_v38 = vpack.c.bf16 %v240_v8, %v240_v8 }
  0x4b   : > { %v5585_v9 = vcombine.low %v1015_v5, %v1016_v6  ;;  %v5587_v10 = vld [vmem:[#allocation2 + $0x50] ss:$0 sps:$4 sm:$0x11]   ;;  %v1063_v11 = vld [vmem:[#allocation2 + $0x48] sm:$0xe]  ;;  %v704_v12 = vrot.slane %v699_v56, 4 }
  0x4c   : > { %v241_v23 = vld [vmem:[%s5419_s9 + $0x88] sm:$0xff]  ;;  %v4469_v14 = vcombine.low %v1063_v11, %v1016_v6  ;;  %v703_v15 = vsel %vm5436_vm7, %v695_v58, %v702_v46  ;;  %v940_v16 = vld [vmem:[#allocation2 + $0x60] sm:$0xf]  ;;  %v674_v18 = vrot.slane %v672_v22, 7  ;;  %v682_v19 = vrot.slane %v680_v2, 7  ;;  %1587 = vrot.lane.b32.xlu0 %v1538_v3, %s5303_s10  ;;  %v246_v3 = vld [vmem:[%s5419_s9 + $0xb0] sm:$0xff] }
  0x4d   : > { %v944_v17 = vld [vmem:[#allocation2 + $0x68] sm:$0x1]  ;;  %v1293_v21 = vshrl.u32 %v5585_v9, 16  ;;  %v1295_v24 = vshll.u32 %v5585_v9, 16  ;;  %v1300_v52 = vshll.u32 %v5587_v10, 16  ;;  %v1546_v26 = vrot.slane %v5587_v10, 1 }
  0x4e   : > { %v1013_v25 = vld [vmem:[#allocation2 + $0x3c] sm:$0xf]  ;;  %943 = vst.msk [vmem:[#allocation2 + $0x64] sm:$0xf] %vm256_vm5, %v703_v15  ;;  %v1545_v27 = vrot.slane %v4469_v14, 1  ;;  %v941_v28 = vsel %vm5442_vm8, %v694_v45, %v940_v16  ;;  %v945_v29 = vsel %vm5387_vm2, %v704_v12, %v944_v17  ;;  %v677_v30 = vor.u32 %v675_v1, %v674_v18 }
  0x4f   : > { %v1062_v57 = vld [vmem:[#allocation2 + $0x3c] sm:$0xe]  ;;  %v1297_v31 = vrot.slane %v1295_v24, 1  ;;  %v1302_v32 = vrot.slane %v1300_v52, 1  ;;  %v1014_v33 = vld [vmem:[#allocation2 + $0x40] sm:$0xf]  ;;  %v5610_v44 = vpack.c.bf16 %v241_v23, %v241_v23 }
  0x50   : > { %942 = vst [vmem:[#allocation2 + $0x60] sm:$0xf] %v941_v28  ;;  %946 = vst [vmem:[#allocation2 + $0x68] sm:$0x1] %v945_v29  ;;  %v5608_v39 = vcombine.low %v1013_v25, %v1014_v33  ;;  %v4468_v41 = vcombine.low %v1062_v57, %v1014_v33  ;;  %v678_v35 = vrot.slane %v674_v18, 4  ;;  %v683_v48 = vshll.u32 %v5537_v61, 16 }
  0x51   : > { %v5118_v40 = vld [vmem:[#allocation2 + $0x44] ss:$0 sps:$4 sm:$0x11]   ;;  %v933_v42 = vld [vmem:[#allocation2 + $0x54] sm:$0xf]  ;;  %v1298_v47 = vor.u32 %v1297_v31, %v1293_v21  ;;  %v687_v49 = vrot.slane %v682_v19, 4  ;;  %v1547_v10 = vsel %vm1526_vm9, %v1545_v27, %v1546_v26 }
  0x52   : > { %v934_v50 = vsel %vm5442_vm8, %v677_v30, %v933_v42  ;;  %v937_v51 = vld [vmem:[#allocation2 + $0x5c] sm:$0x1]  ;;  %v346_v54 = vld [vmem:[#allocation2 + $0x80] sm:$0x1]  ;;  %v1281_v55 = vshrl.u32 %v5608_v39, 16  ;;  %v1283_v58 = vshll.u32 %v5608_v39, 16  ;;  %v685_v1 = vor.u32 %v683_v48, %v682_v19 }
  0x53   : > { %v1288_v56 = vshll.u32 %v5118_v40, 16  ;;  %v1542_v60 = vrot.slane %v4468_v41, 1  ;;  %935 = vst [vmem:[#allocation2 + $0x54] sm:$0xf] %v934_v50  ;;  %v1303_v62 = vsel %vm1219_vm10, %v1298_v47, %v1302_v32  ;;  %v1543_v22 = vrot.slane %v5118_v40, 1  ;;  %v247_v5 = vld [vmem:[%s5419_s9 + $0xb8] sm:$0xff] }
  0x54   : > { %v938_v61 = vsel %vm5387_vm2, %v687_v49, %v937_v51  ;;  %v293_v2 = vld [vmem:[#allocation2 + $0x6c] sm:$0x1]  ;;  %1448 = vrot.lane.b32.xlu1 %v1303_v62, %s5304_s11  ;;  %v1285_v6 = vrot.slane %v1283_v58, 1  ;;  %v297_v7 = vsel %vm5387_vm2, 0, %v296_v34  ;;  %v347_v8 = vsel %vm5396_vm4, 0, %v346_v54  ;;  %v244_v27 = vld [vmem:[%s5419_s9 + $0xa0] sm:$0xff] }
  0x55   : > { %v1290_v45 = vrot.slane %v1288_v56, 1  ;;  %v1020_v46 = vld [vmem:[#allocation2 + $0x64] sm:$0xf]  ;;  %939 = vst [vmem:[#allocation2 + $0x5c] sm:$0x1] %v938_v61  ;;  %v686_v11 = vsel %vm5436_vm7, %v678_v35, %v685_v1  ;;  %v723_v12 = vshrl.u32 %v5589_v13, 16  ;;  %v1544_v16 = vsel %vm1526_vm9, %v1542_v60, %v1543_v22 }
  0x56   : > { %298 = vst [vmem:[#allocation2 + $0x78] sm:$0x1] %v297_v7  ;;  %348 = vst [vmem:[#allocation2 + $0x80] sm:$0x1] %v347_v8  ;;  %v726_v23 = vshll.u32 %v5589_v13, 16  ;;  %v1286_v15 = vor.u32 %v1285_v6, %v1281_v55  ;;  %v5634_v19 = vpack.c.bf16 %v246_v3, %v246_v3  ;;  %v5636_v21 = vpack.c.bf16 %v247_v5, %v247_v5  ;;  %v245_v31 = vld [vmem:[%s5419_s9 + $0xa8] sm:$0xff] }
  0x57   : > { %v343_v14 = vld [vmem:[#allocation2 + $0x74] sm:$0x1]  ;;  %v1019_v17 = vld [vmem:[#allocation2 + $0x60] sm:$0xf]  ;;  %936 = vst.msk [vmem:[#allocation2 + $0x58] sm:$0xf] %vm256_vm5, %v686_v11  ;;  %v5657_v62 = vpack.c.bf16 %v244_v27, %v244_v27  ;;  %v5659_v22 = vpack.c.bf16 %v245_v31, %v245_v31 }
  0x58   : > { %v1065_v18 = vld [vmem:[#allocation2 + $0x60] sm:$0xe]  ;;  %v5638_v24 = vcombine.low %v1019_v17, %v1020_v46  ;;  %v5121_v52 = vld [vmem:[#allocation2 + $0x68] ss:$0 sps:$4 sm:$0x11]   ;;  %v725_v26 = vrot.slane %v723_v12, 7  ;;  %v1291_v57 = vsel %vm1219_vm10, %v1286_v15, %v1290_v45  ;;  %1593 = vrot.lane.b32.xlu1 %v1547_v10, %s5303_s10 }
  0x59   : > { %v4471_v25 = vcombine.low %v1065_v18, %v1020_v46  ;;  %v731_v13 = vshrl.u32 %v5604_v36, 16  ;;  %v734_v28 = vshll.u32 %v5604_v36, 16  ;;  %v294_v29 = vsel %vm5387_vm2, 0, %v293_v2  ;;  %1446 = vrot.lane.b32.xlu0 %v1291_v57, %s5304_s11  ;;  %v302_v8 = vld [vmem:[#allocation2 + $0x90] sm:$0x1] }
  0x5a   : > { %v344_v30 = vsel %vm5396_vm4, 0, %v343_v14  ;;  %v1317_v32 = vshrl.u32 %v5638_v24, 16  ;;  %v1319_v33 = vshll.u32 %v5638_v24, 16  ;;  %v1324_v34 = vshll.u32 %v5121_v52, 16  ;;  %v1017_v40 = vld [vmem:[#allocation2 + $0x54] sm:$0xf] }
  0x5b   : > { %v1551_v41 = vrot.slane %v4471_v25, 1  ;;  %295 = vst [vmem:[#allocation2 + $0x6c] sm:$0x1] %v294_v29  ;;  %345 = vst [vmem:[#allocation2 + $0x74] sm:$0x1] %v344_v30  ;;  %v1552_v35 = vrot.slane %v5121_v52, 1  ;;  %v728_v42 = vor.u32 %v726_v23, %v725_v26 }
  0x5c   : > { %v1064_v36 = vld [vmem:[#allocation2 + $0x54] sm:$0xe]  ;;  %v729_v47 = vrot.slane %v725_v26, 4  ;;  %v733_v48 = vrot.slane %v731_v13, 7  ;;  %v1321_v49 = vrot.slane %v1319_v33, 1  ;;  %v1326_v50 = vrot.slane %v1324_v34, 1 }
  0x5d   : > { %v706_v51 = vshrl.u32 %v5606_v38, 16  ;;  %v709_v54 = vshll.u32 %v5606_v38, 16  ;;  %v5655_v55 = vld [vmem:[#allocation2 + $0x5c] ss:$0 sps:$4 sm:$0x11]   ;;  %1591 = vrot.lane.b32.xlu0 %v1544_v16, %s5303_s10  ;;  %v714_v38 = vshrl.u32 %v5610_v44, 16  ;;  %v1553_v46 = vsel %vm1526_vm9, %v1551_v41, %v1552_v35 }
  0x5e   : > { %v736_v58 = vor.u32 %v734_v28, %v733_v48  ;;  %v738_v56 = vrot.slane %v733_v48, 4  ;;  %v954_v60 = vld [vmem:[#allocation2 + $0x78] sm:$0xf]  ;;  %v1322_v1 = vor.u32 %v1321_v49, %v1317_v32  ;;  %v958_v3 = vld [vmem:[#allocation2 + $0x80] sm:$0x1]  ;;  %v1312_v45 = vshll.u32 %v5655_v55, 16 }
  0x5f   : > { %v1018_v61 = vld [vmem:[#allocation2 + $0x58] sm:$0xf]  ;;  %v955_v2 = vsel %vm5442_vm8, %v728_v42, %v954_v60  ;;  %v708_v5 = vrot.slane %v706_v51, 7  ;;  %v299_v15 = vld [vmem:[#allocation2 + $0x84] sm:$0x1]  ;;  %v1549_v52 = vrot.slane %v5655_v55, 1 }
  0x60   : > { %v5665_v6 = vcombine.low %v1017_v40, %v1018_v61  ;;  %v4470_v7 = vcombine.low %v1064_v36, %v1018_v61  ;;  %956 = vst [vmem:[#allocation2 + $0x78] sm:$0xf] %v955_v2  ;;  %v1327_v10 = vsel %vm1219_vm10, %v1322_v1, %v1326_v50  ;;  %v737_v11 = vsel %vm5436_vm7, %v729_v47, %v736_v58  ;;  %v352_v14 = vld [vmem:[#allocation2 + $0x98] sm:$0x1]  ;;  %v349_v28 = vld [vmem:[#allocation2 + $0x8c] sm:$0x1] }
  0x61   : > { %v959_v12 = vsel %vm5387_vm2, %v738_v56, %v958_v3  ;;  %v711_v23 = vor.u32 %v709_v54, %v708_v5  ;;  %1452 = vrot.lane.b32.xlu1 %v1327_v10, %s5304_s11  ;;  %v1314_v18 = vrot.slane %v1312_v45, 1  ;;  %957 = vst.msk [vmem:[#allocation2 + $0x7c] sm:$0xf] %vm256_vm5, %v737_v11  ;;  %v712_v26 = vrot.slane %v708_v5, 4  ;;  %v250_v48 = vld [vmem:[%s5419_s9 + $0xd0] sm:$0xff]  ;;  %v251_v1 = vld [vmem:[%s5419_s9 + $0xd8] sm:$0xff] }
  0x62   : > { %v1305_v16 = vshrl.u32 %v5665_v6, 16  ;;  %v1307_v17 = vshll.u32 %v5665_v6, 16  ;;  %960 = vst [vmem:[#allocation2 + $0x80] sm:$0x1] %v959_v12  ;;  %v947_v25 = vld [vmem:[#allocation2 + $0x6c] sm:$0xf] }
  0x63   : > { %v716_v13 = vrot.slane %v714_v38, 7  ;;  %v717_v27 = vshll.u32 %v5610_v44, 16  ;;  %v948_v57 = vsel %vm5442_vm8, %v711_v23, %v947_v25  ;;  %v1548_v30 = vrot.slane %v4470_v7, 1  ;;  %v951_v31 = vld [vmem:[#allocation2 + $0x74] sm:$0x1] }
  0x64   : > { %v1309_v29 = vrot.slane %v1307_v17, 1  ;;  %949 = vst [vmem:[#allocation2 + $0x6c] sm:$0xf] %v948_v57  ;;  %v303_v32 = vsel %vm5387_vm2, 0, %v302_v8  ;;  %v353_v33 = vsel %vm5396_vm4, 0, %v352_v14  ;;  %v757_v44 = vshrl.u32 %v5634_v19, 16 }
  0x65   : > { %v719_v34 = vor.u32 %v717_v27, %v716_v13  ;;  %v721_v40 = vrot.slane %v716_v13, 4  ;;  %304 = vst [vmem:[#allocation2 + $0x90] sm:$0x1] %v303_v32  ;;  %354 = vst [vmem:[#allocation2 + $0x98] sm:$0x1] %v353_v33  ;;  %v760_v41 = vshll.u32 %v5634_v19, 16  ;;  %1597 = vrot.lane.b32.xlu1 %v1553_v46, %s5303_s10  ;;  %v1550_v61 = vsel %vm1526_vm9, %v1548_v30, %v1549_v52 }
  0x66   : > { %v1310_v35 = vor.u32 %v1309_v29, %v1305_v16  ;;  %v765_v36 = vshrl.u32 %v5636_v21, 16  ;;  %v768_v42 = vshll.u32 %v5636_v21, 16  ;;  %v300_v47 = vsel %vm5387_vm2, 0, %v299_v15  ;;  %v308_v14 = vld [vmem:[#allocation2 + $0xa8] sm:$0x1] }
  0x67   : > { %v1023_v49 = vld [vmem:[#allocation2 + $0x78] sm:$0xf]  ;;  %v720_v50 = vsel %vm5436_vm7, %v712_v26, %v719_v34  ;;  %v952_v51 = vsel %vm5387_vm2, %v721_v40, %v951_v31  ;;  %v759_v54 = vrot.slane %v757_v44, 7  ;;  %301 = vst [vmem:[#allocation2 + $0x84] sm:$0x1] %v300_v47  ;;  %v350_v55 = vsel %vm5396_vm4, 0, %v349_v28 }
  0x68   : > { %v1067_v19 = vld [vmem:[#allocation2 + $0x78] sm:$0xe]  ;;  %v1315_v21 = vsel %vm1219_vm10, %v1310_v35, %v1314_v18  ;;  %950 = vst.msk [vmem:[#allocation2 + $0x70] sm:$0xf] %vm256_vm5, %v720_v50  ;;  %953 = vst [vmem:[#allocation2 + $0x74] sm:$0x1] %v952_v51  ;;  %v5710_v15 = vpack.c.bf16 %v250_v48, %v250_v48  ;;  %v5712_v16 = vpack.c.bf16 %v251_v1, %v251_v1 }
  0x69   : > { %v767_v58 = vrot.slane %v765_v36, 7  ;;  %351 = vst [vmem:[#allocation2 + $0x8c] sm:$0x1] %v350_v55  ;;  %v740_v56 = vshrl.u32 %v5657_v62, 16  ;;  %v743_v60 = vshll.u32 %v5657_v62, 16  ;;  %1450 = vrot.lane.b32.xlu0 %v1315_v21, %s5304_s11  ;;  %v762_v3 = vor.u32 %v760_v41, %v759_v54 }
  0x6a   : > { %v1024_v2 = vld [vmem:[#allocation2 + $0x7c] sm:$0xf]  ;;  %v763_v5 = vrot.slane %v759_v54, 4  ;;  %v748_v38 = vshrl.u32 %v5659_v22, 16  ;;  %v358_v13 = vld [vmem:[#allocation2 + $0xb0] sm:$0x1] }
  0x6b   : > { %v5708_v45 = vcombine.low %v1023_v49, %v1024_v2  ;;  %v5126_v46 = vld [vmem:[#allocation2 + $0x80] ss:$0 sps:$4 sm:$0x11]   ;;  %v4473_v7 = vcombine.low %v1067_v19, %v1024_v2  ;;  %v770_v8 = vor.u32 %v768_v42, %v767_v58  ;;  %v772_v10 = vrot.slane %v767_v58, 4  ;;  %v1021_v11 = vld [vmem:[#allocation2 + $0x6c] sm:$0xf] }
  0x6c   : > { %v1066_v12 = vld [vmem:[#allocation2 + $0x6c] sm:$0xe]  ;;  %v742_v23 = vrot.slane %v740_v56, 7  ;;  %v750_v62 = vrot.slane %v748_v38, 7  ;;  %v1348_v52 = vshll.u32 %v5126_v46, 16  ;;  %v1558_v27 = vrot.slane %v5126_v46, 1 }
  0x6d   : > { %v1341_v17 = vshrl.u32 %v5708_v45, 16  ;;  %v1343_v18 = vshll.u32 %v5708_v45, 16  ;;  %v1557_v25 = vrot.slane %v4473_v7, 1  ;;  %v968_v26 = vld [vmem:[#allocation2 + $0x90] sm:$0xf]  ;;  %1595 = vrot.lane.b32.xlu0 %v1550_v61, %s5303_s10  ;;  %v771_v57 = vsel %vm5436_vm7, %v763_v5, %v770_v8  ;;  %v248_v61 = vld [vmem:[%s5419_s9 + $0xc0] sm:$0xff] }
  0x6e   : > { %v969_v28 = vsel %vm5442_vm8, %v762_v3, %v968_v26  ;;  %v972_v29 = vld [vmem:[#allocation2 + $0x98] sm:$0x1]  ;;  %v745_v30 = vor.u32 %v743_v60, %v742_v23  ;;  %v1350_v32 = vrot.slane %v1348_v52, 1  ;;  %971 = vst.msk [vmem:[#allocation2 + $0x94] sm:$0xf] %vm256_vm5, %v771_v57  ;;  %v746_v34 = vrot.slane %v742_v23, 4 }
  0x6f   : > { %v1345_v31 = vrot.slane %v1343_v18, 1  ;;  %970 = vst [vmem:[#allocation2 + $0x90] sm:$0xf] %v969_v28  ;;  %v973_v33 = vsel %vm5387_vm2, %v772_v10, %v972_v29  ;;  %v961_v40 = vld [vmem:[#allocation2 + $0x84] sm:$0xf]  ;;  %v1559_v41 = vsel %vm1526_vm9, %v1557_v25, %v1558_v27  ;;  %v751_v35 = vshll.u32 %v5659_v22, 16 }
  0x70   : > { %v1022_v44 = vld [vmem:[#allocation2 + $0x70] sm:$0xf]  ;;  %974 = vst [vmem:[#allocation2 + $0x98] sm:$0x1] %v973_v33  ;;  %v755_v36 = vrot.slane %v750_v62, 4  ;;  %v962_v42 = vsel %vm5442_vm8, %v745_v30, %v961_v40  ;;  %v309_v19 = vsel %vm5387_vm2, 0, %v308_v14  ;;  %v5755_v57 = vpack.c.bf16 %v248_v61, %v248_v61 }
  0x71   : > { %v1346_v47 = vor.u32 %v1345_v31, %v1341_v17  ;;  %v5728_v48 = vcombine.low %v1021_v11, %v1022_v44  ;;  %v5128_v49 = vld [vmem:[#allocation2 + $0x74] ss:$0 sps:$4 sm:$0x11]   ;;  %v4472_v50 = vcombine.low %v1066_v12, %v1022_v44  ;;  %963 = vst [vmem:[#allocation2 + $0x84] sm:$0xf] %v962_v42  ;;  %v753_v54 = vor.u32 %v751_v35, %v750_v62  ;;  %v249_v46 = vld [vmem:[%s5419_s9 + $0xc8] sm:$0xff] }
  0x72   : > { %v965_v51 = vld [vmem:[#allocation2 + $0x8c] sm:$0x1]  ;;  %310 = vst [vmem:[#allocation2 + $0xa8] sm:$0x1] %v309_v19  ;;  %v359_v22 = vsel %vm5396_vm4, 0, %v358_v13  ;;  %v791_v21 = vshrl.u32 %v5710_v15, 16  ;;  %v5757_v28 = vpack.c.bf16 %v249_v46, %v249_v46 }
  0x73   : > { %v966_v55 = vsel %vm5387_vm2, %v755_v36, %v965_v51  ;;  %v1351_v58 = vsel %vm1219_vm10, %v1346_v47, %v1350_v32  ;;  %v1329_v56 = vshrl.u32 %v5728_v48, 16  ;;  %v1331_v60 = vshll.u32 %v5728_v48, 16  ;;  %360 = vst [vmem:[#allocation2 + $0xb0] sm:$0x1] %v359_v22  ;;  %v254_v26 = vld [vmem:[%s5419_s9 + $0xf0] sm:$0xff]  ;;  %v255_v29 = vld [vmem:[%s5419_s9 + $0xf8] sm:$0xff] }
  0x74   : > { %v1336_v1 = vshll.u32 %v5128_v49, 16  ;;  %967 = vst [vmem:[#allocation2 + $0x8c] sm:$0x1] %v966_v55  ;;  %1456 = vrot.lane.b32.xlu1 %v1351_v58, %s5304_s11  ;;  %v1554_v2 = vrot.slane %v4472_v50, 1  ;;  %v1555_v3 = vrot.slane %v5128_v49, 1  ;;  %v754_v5 = vsel %vm5436_vm7, %v746_v34, %v753_v54  ;;  %v252_v35 = vld [vmem:[%s5419_s9 + $0xe0] sm:$0xff] }
  0x75   : > { %v5744_v38 = vrot.slane %v791_v21, 7  ;;  %v1333_v7 = vrot.slane %v1331_v60, 1  ;;  %964 = vst.msk [vmem:[#allocation2 + $0x88] sm:$0xf] %vm256_vm5, %v754_v5  ;;  %v794_v10 = vshll.u32 %v5710_v15, 16  ;;  %v799_v11 = vshrl.u32 %v5712_v16, 16 }
  0x76   : > { %v1338_v8 = vrot.slane %v1336_v1, 1  ;;  %v1027_v12 = vld [vmem:[#allocation2 + $0x90] sm:$0xf]  ;;  %v1028_v23 = vld [vmem:[#allocation2 + $0x94] sm:$0xf]  ;;  %v5770_v49 = vpack.c.bf16 %v254_v26, %v254_v26  ;;  %v802_v54 = vshll.u32 %v5712_v16, 16  ;;  %v5776_v60 = vpack.c.bf16 %v255_v29, %v255_v29 }
  0x77   : > { %v1069_v62 = vld [vmem:[#allocation2 + $0x90] sm:$0xe]  ;;  %v1334_v14 = vor.u32 %v1333_v7, %v1329_v56  ;;  %v5750_v17 = vcombine.low %v1027_v12, %v1028_v23  ;;  %v5131_v18 = vld [vmem:[#allocation2 + $0x98] ss:$0 sps:$4 sm:$0x11]   ;;  %v796_v25 = vor.u32 %v794_v10, %v5744_v38  ;;  %v801_v27 = vrot.slane %v799_v11, 7 }
  0x78   : > { %v4475_v52 = vcombine.low %v1069_v62, %v1028_v23  ;;  %1601 = vrot.lane.b32.xlu1 %v1559_v41, %s5303_s10  ;;  %v1025_v13 = vld [vmem:[#allocation2 + $0x84] sm:$0xf]  ;;  %v305_v15 = vld [vmem:[#allocation2 + $0x9c] sm:$0x1]  ;;  %v1372_v33 = vshll.u32 %v5131_v18, 16  ;;  %v1556_v41 = vsel %vm1526_vm9, %v1554_v2, %v1555_v3  ;;  %v1564_v19 = vrot.slane %v5131_v18, 1 }
  0x79   : > { %v1339_v30 = vsel %vm1219_vm10, %v1334_v14, %v1338_v8  ;;  %v1365_v31 = vshrl.u32 %v5750_v17, 16  ;;  %v1367_v32 = vshll.u32 %v5750_v17, 16  ;;  %v1068_v34 = vld [vmem:[#allocation2 + $0x84] sm:$0xe]  ;;  %v982_v40 = vld [vmem:[#allocation2 + $0xa8] sm:$0xf]  ;;  %v5781_v3 = vpack.c.bf16 %v252_v35, %v252_v35 }
  0x7a   : > { %v355_v44 = vld [vmem:[#allocation2 + $0xa4] sm:$0x1]  ;;  %1454 = vrot.lane.b32.xlu0 %v1339_v30, %s5304_s11  ;;  %v1563_v42 = vrot.slane %v4475_v52, 1  ;;  %v983_v47 = vsel %vm5442_vm8, %v796_v25, %v982_v40  ;;  %v1374_v51 = vrot.slane %v1372_v33, 1  ;;  %v986_v55 = vld [vmem:[#allocation2 + $0xb0] sm:$0x1]  ;;  %v804_v5 = vor.u32 %v802_v54, %v801_v27 }
  0x7b   : > { %v5766_v36 = vld [vmem:[#allocation2 + $0x8c] ss:$0 sps:$4 sm:$0x11]   ;;  %v1369_v50 = vrot.slane %v1367_v32, 1  ;;  %984 = vst [vmem:[#allocation2 + $0xa8] sm:$0xf] %v983_v47 }
  0x7c   : > { %v1026_v22 = vld [vmem:[#allocation2 + $0x88] sm:$0xf]  ;;  %v797_v21 = vrot.slane %v5744_v38, 4  ;;  %v806_v58 = vrot.slane %v801_v27, 4  ;;  %v306_v56 = vsel %vm5387_vm2, 0, %v305_v15  ;;  %v1360_v2 = vshll.u32 %v5766_v36, 16 }
  0x7d   : > { %v1370_v1 = vor.u32 %v1369_v50, %v1365_v31  ;;  %v5778_v61 = vcombine.low %v1025_v13, %v1026_v22  ;;  %307 = vst [vmem:[#allocation2 + $0x9c] sm:$0x1] %v306_v56  ;;  %v4474_v16 = vcombine.low %v1068_v34, %v1026_v22  ;;  %v356_v46 = vsel %vm5396_vm4, 0, %v355_v44  ;;  %v314_v7 = vld [vmem:[#allocation2 + $0xc0] sm:$0x1] }
  0x7e   : > { %1599 = vrot.lane.b32.xlu0 %v1556_v41, %s5303_s10  ;;  %v987_v38 = vsel %vm5387_vm2, %v806_v58, %v986_v55  ;;  %v1565_v12 = vsel %vm1526_vm9, %v1563_v42, %v1564_v19  ;;  %357 = vst [vmem:[#allocation2 + $0xa4] sm:$0x1] %v356_v46  ;;  %v805_v23 = vsel %vm5436_vm7, %v797_v21, %v804_v5  ;;  %v774_v62 = vshrl.u32 %v5755_v57, 16  ;;  %v364_v52 = vld [vmem:[#allocation2 + $0xc8] sm:$0x1] }
  0x7f   : > { %v1375_v8 = vsel %vm1219_vm10, %v1370_v1, %v1374_v51  ;;  %v1353_v10 = vshrl.u32 %v5778_v61, 16  ;;  %v1355_v11 = vshll.u32 %v5778_v61, 16  ;;  %988 = vst [vmem:[#allocation2 + $0xb0] sm:$0x1] %v987_v38  ;;  %v777_v14 = vshll.u32 %v5755_v57, 16  ;;  %v253_v55 = vld [vmem:[%s5419_s9 + $0xe8] sm:$0xff] }
  0x80   : > { %1460 = vrot.lane.b32.xlu1 %v1375_v8, %s5304_s11  ;;  %v782_v18 = vshrl.u32 %v5757_v28, 16  ;;  %v1362_v26 = vrot.slane %v1360_v2, 1  ;;  %985 = vst.msk [vmem:[#allocation2 + $0xac] sm:$0xf] %vm256_vm5, %v805_v23  ;;  %v785_v13 = vshll.u32 %v5757_v28, 16  ;;  %v315_v27 = vsel %vm5387_vm2, 0, %v314_v7 }
  0x81   : > { %v1357_v25 = vrot.slane %v1355_v11, 1  ;;  %v1560_v15 = vrot.slane %v4474_v16, 1  ;;  %v1561_v29 = vrot.slane %v5766_v36, 1  ;;  %v776_v30 = vrot.slane %v774_v62, 7  ;;  %316 = vst [vmem:[#allocation2 + $0xc0] sm:$0x1] %v315_v27 }
  0x82   : > { %v784_v31 = vrot.slane %v782_v18, 7  ;;  %v365_v57 = vsel %vm5396_vm4, 0, %v364_v52  ;;  %v825_v33 = vshrl.u32 %v5770_v49, 16  ;;  %v828_v34 = vshll.u32 %v5770_v49, 16  ;;  %v311_v40 = vld [vmem:[#allocation2 + $0xb4] sm:$0x1] }
  0x83   : > { %v1358_v32 = vor.u32 %v1357_v25, %v1353_v10  ;;  %v779_v28 = vor.u32 %v777_v14, %v776_v30  ;;  %v780_v44 = vrot.slane %v776_v30, 4  ;;  %366 = vst [vmem:[#allocation2 + $0xc8] sm:$0x1] %v365_v57  ;;  %v361_v42 = vld [vmem:[#allocation2 + $0xbc] sm:$0x1]  ;;  %v833_v19 = vshrl.u32 %v5776_v60, 16 }
  0x84   : > { %1605 = vrot.lane.b32.xlu1 %v1565_v12, %s5303_s10  ;;  %v787_v35 = vor.u32 %v785_v13, %v784_v31  ;;  %v789_v41 = vrot.slane %v784_v31, 4  ;;  %v975_v36 = vld [vmem:[#allocation2 + $0x9c] sm:$0xf]  ;;  %v1031_v50 = vld [vmem:[#allocation2 + $0xa8] sm:$0xf]  ;;  %v827_v51 = vrot.slane %v825_v33, 7  ;;  %v1562_v49 = vsel %vm1526_vm9, %v1560_v15, %v1561_v29 }
  0x85   : > { %v1363_v47 = vsel %vm1219_vm10, %v1358_v32, %v1362_v26  ;;  %v836_v54 = vshll.u32 %v5776_v60, 16  ;;  %v976_v58 = vsel %vm5442_vm8, %v779_v28, %v975_v36  ;;  %v312_v56 = vsel %vm5387_vm2, 0, %v311_v40  ;;  %v979_v60 = vld [vmem:[#allocation2 + $0xa4] sm:$0x1]  ;;  %v1071_v7 = vld [vmem:[#allocation2 + $0xa8] sm:$0xe] }
  0x86   : > { %1458 = vrot.lane.b32.xlu0 %v1363_v47, %s5304_s11  ;;  %v5814_v22 = vld [vmem:[#allocation2 + $0xb0] ss:$0 sps:$4 sm:$0x11]   ;;  %v788_v21 = vsel %vm5436_vm7, %v780_v44, %v787_v35  ;;  %977 = vst [vmem:[#allocation2 + $0x9c] sm:$0xf] %v976_v58  ;;  %v830_v1 = vor.u32 %v828_v34, %v827_v51  ;;  %v831_v2 = vrot.slane %v827_v51, 4  ;;  %v980_v46 = vsel %vm5387_vm2, %v789_v41, %v979_v60 }
  0x87   : > { %978 = vst.msk [vmem:[#allocation2 + $0xa0] sm:$0xf] %vm256_vm5, %v788_v21  ;;  %v835_v16 = vrot.slane %v833_v19, 7  ;;  %313 = vst [vmem:[#allocation2 + $0xb4] sm:$0x1] %v312_v56  ;;  %v362_v5 = vsel %vm5396_vm4, 0, %v361_v42  ;;  %v4714_v8 = vpack.c.bf16 %v253_v55, %v253_v55 }
  0x88   : > { %v1032_v38 = vld [vmem:[#allocation2 + $0xac] sm:$0xf]  ;;  %363 = vst [vmem:[#allocation2 + $0xbc] sm:$0x1] %v362_v5  ;;  %v808_v10 = vshrl.u32 %v5781_v3, 16  ;;  %v1396_v12 = vshll.u32 %v5814_v22, 16 }
  0x89   : > { %v5828_v11 = vcombine.low %v1031_v50, %v1032_v38  ;;  %981 = vst [vmem:[#allocation2 + $0xa4] sm:$0x1] %v980_v46  ;;  %v838_v23 = vor.u32 %v836_v54, %v835_v16  ;;  %v840_v62 = vrot.slane %v835_v16, 4  ;;  %v996_v14 = vld [vmem:[#allocation2 + $0xc0] sm:$0xf]  ;;  %v811_v25 = vshll.u32 %v5781_v3, 16 }
  0x8a   : > { %1603 = vrot.lane.b32.xlu0 %v1562_v49, %s5303_s10  ;;  %v997_v18 = vsel %vm5442_vm8, %v830_v1, %v996_v14  ;;  %v810_v52 = vrot.slane %v808_v10, 7  ;;  %v4477_v27 = vcombine.low %v1071_v7, %v1032_v38  ;;  %v1000_v29 = vld [vmem:[#allocation2 + $0xc8] sm:$0x1]  ;;  %v816_v32 = vshrl.u32 %v4714_v8, 16 }
  0x8b   : > { %v1389_v26 = vshrl.u32 %v5828_v11, 16  ;;  %v1391_v13 = vshll.u32 %v5828_v11, 16  ;;  %v839_v15 = vsel %vm5436_vm7, %v831_v2, %v838_v23  ;;  %998 = vst [vmem:[#allocation2 + $0xc0] sm:$0xf] %v997_v18  ;;  %v1001_v30 = vsel %vm5387_vm2, %v840_v62, %v1000_v29  ;;  %v1003_v18 = vld [vmem:[#allocation2] sm:$0xf] }
  0x8c   : > { %999 = vst.msk [vmem:[#allocation2 + $0xc4] sm:$0xf] %vm256_vm5, %v839_v15  ;;  %v813_v31 = vor.u32 %v811_v25, %v810_v52  ;;  %v1398_v33 = vrot.slane %v1396_v12, 1  ;;  %v1570_v3 = vrot.slane %v5814_v22, 1  ;;  %1002 = vst [vmem:[#allocation2 + $0xc8] sm:$0x1] %v1001_v30 }
  0x8d   : > { %v1393_v57 = vrot.slane %v1391_v13, 1  ;;  %v819_v34 = vshll.u32 %v4714_v8, 16  ;;  %v1029_v40 = vld [vmem:[#allocation2 + $0x9c] sm:$0xf]  ;;  %v1569_v36 = vrot.slane %v4477_v27, 1  ;;  %v818_v42 = vrot.slane %v816_v32, 7 }
  0x8e   : > { %v1030_v28 = vld [vmem:[#allocation2 + $0xa0] sm:$0xf]  ;;  %v1070_v44 = vld [vmem:[#allocation2 + $0x9c] sm:$0xe]  ;;  %v989_v47 = vld [vmem:[#allocation2 + $0xb4] sm:$0xf] }
  0x8f   : > { %v1394_v35 = vor.u32 %v1393_v57, %v1389_v26  ;;  %v5843_v41 = vcombine.low %v1029_v40, %v1030_v28  ;;  %v814_v51 = vrot.slane %v810_v52, 4  ;;  %v990_v19 = vsel %vm5442_vm8, %v813_v31, %v989_v47  ;;  %v993_v1 = vld [vmem:[#allocation2 + $0xbc] sm:$0x1]  ;;  %v1004_v52 = vld [vmem:[#allocation2 + $0x4] sm:$0xf] }
  0x90   : > { %v5138_v50 = vld [vmem:[#allocation2 + $0xa4] ss:$0 sps:$4 sm:$0x11]   ;;  %v4476_v22 = vcombine.low %v1070_v44, %v1030_v28  ;;  %991 = vst [vmem:[#allocation2 + $0xb4] sm:$0xf] %v990_v19  ;;  %v821_v56 = vor.u32 %v819_v34, %v818_v42  ;;  %v823_v60 = vrot.slane %v818_v42, 4  ;;  %v1571_v16 = vsel %vm1526_vm9, %v1569_v36, %v1570_v3 }
  0x91   : > { %v1399_v54 = vsel %vm1219_vm10, %v1394_v35, %v1398_v33  ;;  %v1377_v55 = vshrl.u32 %v5843_v41, 16  ;;  %v1379_v49 = vshll.u32 %v5843_v41, 16  ;;  %v1384_v21 = vshll.u32 %v5138_v50, 16  ;;  %v1057_v15 = vld [vmem:[#allocation2] sm:$0xe] }
  0x92   : > { %1464 = vrot.lane.b32.xlu1 %v1399_v54, %s5304_s11  ;;  %v1035_v58 = vld [vmem:[#allocation2 + $0xc0] sm:$0xf]  ;;  %v822_v10 = vsel %vm5436_vm7, %v814_v51, %v821_v56  ;;  %v1566_v23 = vrot.slane %v4476_v22, 1  ;;  %v1567_v62 = vrot.slane %v5138_v50, 1  ;;  %v994_v14 = vsel %vm5387_vm2, %v823_v60, %v993_v1  ;;  %v5147_v30 = vld [vmem:[%s7050_s1 + $0x8] sm:$0x3f]  }
  0x93   : > { %v1381_v2 = vrot.slane %v1379_v49, 1  ;;  %v1036_v5 = vld [vmem:[#allocation2 + $0xc4] sm:$0xf]  ;;  %v1073_v38 = vld [vmem:[#allocation2 + $0xc0] sm:$0xe]  ;;  %v1386_v46 = vrot.slane %v1384_v21, 1  ;;  %v5868_v33 = vcombine.low %v1003_v18, %v1004_v52  ;;  %v4463_v3 = vcombine.low %v1057_v15, %v1004_v52 }
  0x94   : > { %v5852_v7 = vcombine.low %v1035_v58, %v1036_v5  ;;  %v5141_v8 = vld [vmem:[#allocation2 + $0xc8] ss:$0 sps:$4 sm:$0x11]   ;;  %992 = vst.msk [vmem:[#allocation2 + $0xb8] sm:$0xf] %vm256_vm5, %v822_v10  ;;  %v4479_v27 = vcombine.low %v1073_v38, %v1036_v5  ;;  %v1568_v57 = vsel %vm1526_vm9, %v1566_v23, %v1567_v62  ;;  %vm1734_vm11 = vcmask 1045504  }
  0x95   : > { %v1382_v12 = vor.u32 %v1381_v2, %v1377_v55  ;;  %v1420_v13 = vshll.u32 %v5141_v8, 16  ;;  %995 = vst [vmem:[#allocation2 + $0xbc] sm:$0x1] %v994_v14  ;;  %v5873_v34 = vld [vmem:[%s7050_s1 + $0x10] sm:$0x3f]   ;;  %v1576_v42 = vrot.slane %v5141_v8, 1  ;;  %5056 = vmatprep.subr.msk.bf16.mxu0 %vm1734_vm11, %v5147_v30 }
  0x96   : > { %1609 = vrot.lane.b32.xlu1 %v1571_v16, %s5303_s10  ;;  %v1413_v25 = vshrl.u32 %v5852_v7, 16  ;;  %v1415_v26 = vshll.u32 %v5852_v7, 16  ;;  %v1037_v40 = vld [vmem:[#allocation2 + $0xcc] sm:$0xf]  ;;  %v1038_v28 = vld [vmem:[#allocation2 + $0xd0] sm:$0xf] }
  0x97   : > { %v1387_v29 = vsel %vm1219_vm10, %v1382_v12, %v1386_v46  ;;  %v1422_v32 = vrot.slane %v1420_v13, 1  ;;  %v1033_v35 = vld [vmem:[#allocation2 + $0xb4] sm:$0xf]  ;;  %v1575_v36 = vrot.slane %v4479_v27, 1  ;;  %v1736_v50 = vsel %vm1734_vm11, %v5147_v30, 0 }
  0x98   : > { %1462 = vrot.lane.b32.xlu0 %v1387_v29, %s5304_s11  ;;  %v1417_v31 = vrot.slane %v1415_v26, 1  ;;  %v5146_v47 = vld [vmem:[#allocation2 + $0x8] ss:$0 sps:$4 sm:$0x11]   ;;  %v1074_v51 = vld [vmem:[#allocation2 + $0xcc] sm:$0xe]  ;;  %4853 = vmatpush3.bf16.msra.mxu0 %v1736_v50  ;;  %v5885_v58 = vcombine.low %v1037_v40, %v1038_v28 }
  0x99   : > { %v1072_v55 = vld [vmem:[#allocation2 + $0xb4] sm:$0xe]  ;;  %v1223_v21 = vshll.u32 %v5868_v33, 16  ;;  %5058 = vmatprep.subr.msk.bf16.mxu0 %vm1734_vm11, %v5873_v34  ;;  %v1577_v56 = vsel %vm1526_vm9, %v1575_v36, %v1576_v42  ;;  %v1527_v60 = vrot.slane %v4463_v3, 1  ;;  %v1528_v1 = vrot.slane %v5146_v47, 1 }
  0x9a   : > { %v1418_v44 = vor.u32 %v1417_v31, %v1413_v25  ;;  %v4480_v2 = vcombine.low %v1074_v51, %v1038_v28  ;;  %v5152_v16 = vld [vmem:[%s7050_s1] sm:$0x3f]   ;;  %v5150_v10 = vld [vmem:[#allocation2 + $0xd4] ss:$0 sps:$4 sm:$0x11]   ;;  %v1221_v14 = vshrl.u32 %v5868_v33, 16 }
  0x9b   : > { %v1034_v54 = vld [vmem:[#allocation2 + $0xb8] sm:$0xf]  ;;  %5057 = vmatprep.subr.msk.bf16.mxu1 %vm1734_vm11, %v5152_v16  ;;  %v1907_v12 = vsel %vm1734_vm11, %v5152_v16, 0  ;;  %v1225_v18 = vrot.slane %v1223_v21, 1  ;;  %v1228_v52 = vshll.u32 %v5146_v47, 16  ;;  %v1529_v25 = vsel %vm1526_vm9, %v1527_v60, %v1528_v1 }
  0x9c   : > { %1607 = vrot.lane.b32.xlu0 %v1568_v57, %s5303_s10  ;;  %v1423_v19 = vsel %vm1219_vm10, %v1418_v44, %v1422_v32  ;;  %v5880_v49 = vcombine.low %v1033_v35, %v1034_v54  ;;  %v5143_v22 = vld [vmem:[#allocation2 + $0xbc] ss:$0 sps:$4 sm:$0x11]   ;;  %v4478_v8 = vcombine.low %v1072_v55, %v1034_v54  ;;  %4887 = vmatpush3.bf16.msra.mxu1 %v1907_v12  ;;  %v1578_v26 = vrot.slane %v4480_v2, 1 }
  0x9d   : > { %1468 = vrot.lane.b32.xlu1 %v1423_v19, %s5304_s11  ;;  %v1408_v46 = vshll.u32 %v5143_v22, 16  ;;  %v1579_v13 = vrot.slane %v5150_v10, 1  ;;  %v1573_v29 = vrot.slane %v5143_v22, 1  ;;  %v1427_v30 = vshll.u32 %v5885_v58, 16 }
  0x9e   : > { %v1401_v5 = vshrl.u32 %v5880_v49, 16  ;;  %v1403_v38 = vshll.u32 %v5880_v49, 16  ;;  %v1572_v15 = vrot.slane %v4478_v8, 1  ;;  %v1226_v32 = vor.u32 %v1225_v18, %v1221_v14 }
  0x9f   : > { %v1410_v62 = vrot.slane %v1408_v46, 1  ;;  %v1230_v57 = vrot.slane %v1228_v52, 1  ;;  %v1580_v3 = vsel %vm1526_vm9, %v1578_v26, %v1579_v13  ;;  %v1425_v28 = vshrl.u32 %v5885_v58, 16 }
  0xa0   : > { %v1405_v23 = vrot.slane %v1403_v38, 1  ;;  %v1574_v40 = vsel %vm1526_vm9, %v1572_v15, %v1573_v29  ;;  %v1429_v44 = vrot.slane %v1427_v30, 1  ;;  %v1432_v35 = vshll.u32 %v5150_v10, 16 }
  0xa1   : > { %1613 = vrot.lane.b32.xlu1 %v1577_v56, %s5303_s10  ;;  %v1231_v36 = vsel %vm1219_vm10, %v1226_v32, %v1230_v57  ;;  %vm1617_vm12 = vcmask 31744   ;;  %vm1654_vm13 = vcmask 64512   ;;  %vm1701_vm14 = vcmask 97280  }
  0xa2   : > { %v1406_v27 = vor.u32 %v1405_v23, %v1401_v5  ;;  %v1430_v42 = vor.u32 %v1429_v44, %v1425_v28  ;;  %v1434_v47 = vrot.slane %v1432_v35, 1  ;;  %v2081_v60 = vsel %vm1734_vm11, %v5873_v34, 0 }
  0xa4   : > { %v1411_v31 = vsel %vm1219_vm10, %v1406_v27, %v1410_v62  ;;  %v1435_v51 = vsel %vm1219_vm10, %v1430_v42, %v1434_v47 }
  0xa5   : > { %1581 = vrot.lane.b32.xlu1 %v1529_v25, %s5303_s10  ;;  %1466 = vrot.lane.b32.xlu0 %v1411_v31, %s5304_s11 }
  0xa8   : > { %v1584_v50 = vpop.permute.xlu1 %1583 }
  0xa9   : > { %1615 = vrot.lane.b32.xlu1 %v1580_v3, %s5303_s10  ;;  %1611 = vrot.lane.b32.xlu0 %v1574_v40, %s5303_s10 }
  0xac   : > { %v1439_v19 = vpop.permute.xlu0 %1438  ;;  %v1586_v21 = vpop.permute.xlu1 %1585 }
  0xad   : > { %1436 = vrot.lane.b32.xlu0 %v1231_v36, %s5304_s11  ;;  %v1621_v54 = vsel %vm1617_vm12, %v5493_v53, %v1439_v19 }
  0xae   : > { %v5913_v55 = vsel %vm1654_vm13, %v1621_v54, %v1584_v50 }
  0xaf   : > { %4854 = vmatprep.mubr.msk.bf16.mxu0 %vm1701_vm14, %v5913_v55 }
  0xb0   : > { %v1441_v22 = vpop.permute.xlu0 %1440 }
  0xb1   : > { %1470 = vrot.lane.b32.xlu0 %v1435_v51, %s5304_s11  ;;  %v1623_v56 = vsel %vm1617_vm12, %v5501_v63, %v1441_v22 }
  0xb2   : > { %v5923_v1 = vsel %vm1654_vm13, %v1623_v56, %v1586_v21  ;;  %v1445_v53 = vpop.permute.xlu1 %1444 }
  0xb3   : > { %4855 = vmatmul.mubr.msk.bf16.vlgmr.msra.gmra.mxu0 %vm1701_vm14, %v5923_v1  ;;  %v1627_v16 = vsel %vm1617_vm12, %v5514_v20, %v1445_v53 }
  0xb4   : > { %4921 = vmatpush3.bf16.msra.mxu0 %v2081_v60 }
  0xb6   : > { %v1590_v5 = vpop.permute.xlu1 %1589 }
  0xb7   : > { %v5935_v34 = vsel %vm1654_vm13, %v1627_v16, %v1590_v5 }
  0xba   : > { %v1443_v2 = vpop.permute.xlu0 %1442 }
  0xbb   : > { %v1625_v38 = vsel %vm1617_vm12, %v5535_v59, %v1443_v2 }
  0xbe   : > { %v1588_v63 = vpop.permute.xlu0 %1587 }
  0xbf   : > { %v5932_v46 = vsel %vm1654_vm13, %v1625_v38, %v1588_v63  ;;  %v378_v63 = vld [vmem:[#allocation3 + $0x18] sm:$0x1] }
  0xc0   : > { %4858 = vmatprep.mubr.msk.bf16.mxu0 %vm1701_vm14, %v5932_v46 }
  0xc1   : > { %4859 = vmatmul.mubr.msk.bf16.gmra.mxu0 %vm1701_vm14, %v5935_v34 }
  0xc6   : > { %v1449_v8 = vpop.permute.xlu1 %1448 }
  0xc7   : > { %v1631_v20 = vsel %vm1617_vm12, %v5585_v9, %v1449_v8 }
  0xca   : > { %v1594_v12 = vpop.permute.xlu1 %1593 }
  0xcb   : > { %v1447_v10 = vpop.permute.xlu0 %1446  ;;  %v5949_v14 = vsel %vm1654_vm13, %v1631_v20, %v1594_v12  ;;  %v423_v20 = vld [vmem:[#allocation3 + $0x14] sm:$0x1] }
  0xcc   : > { %v1629_v59 = vsel %vm1617_vm12, %v5608_v39, %v1447_v10  ;;  %v426_v10 = vld [vmem:[#allocation3 + $0x20] sm:$0x1]  ;;  %v424_v12 = vsel %vm5396_vm4, 0, %v423_v20 }
  0xcd   : > { %425 = vst [vmem:[#allocation3 + $0x14] sm:$0x1] %v424_v12 }
  0xcf   : > { %v1592_v23 = vpop.permute.xlu0 %1591 }
  0xd0   : > { %v5946_v62 = vsel %vm1654_vm13, %v1629_v59, %v1592_v23  ;;  %v384_v59 = vld [vmem:[#allocation3 + $0x30] sm:$0x1] }
  0xd1   : > { %4862 = vmatprep.mubr.msk.bf16.mxu0 %vm1701_vm14, %v5946_v62  ;;  %v385_v23 = vsel %vm5387_vm2, 0, %v384_v59 }
  0xd2   : > { %4863 = vmatmul.mubr.msk.bf16.gmra.mxu0 %vm1701_vm14, %v5949_v14  ;;  %386 = vst [vmem:[#allocation3 + $0x30] sm:$0x1] %v385_v23  ;;  %v414_v23 = vld [vmem:[#allocation3 + $0xa8] sm:$0x1] }
  0xd3   : > { %v1453_v18 = vpop.permute.xlu1 %1452 }
  0xd4   : > { %v1635_v9 = vsel %vm1617_vm12, %v5638_v24, %v1453_v18 }
  0xd7   : > { %v1598_v25 = vpop.permute.xlu1 %1597 }
  0xd8   : > { %v1672_v27 = vsel %vm1654_vm13, %v1635_v9, %v1598_v25  ;;  %v432_v9 = vld [vmem:[#allocation3 + $0x38] sm:$0x1] }
  0xd9   : > { %v433_v25 = vsel %vm5396_vm4, 0, %v432_v9  ;;  %v411_v9 = vld [vmem:[#allocation3 + $0x9c] sm:$0x1] }
  0xda   : > { %434 = vst [vmem:[#allocation3 + $0x38] sm:$0x1] %v433_v25  ;;  %v412_v25 = vsel %vm5387_vm2, 0, %v411_v9 }
  0xdb   : > { %v1451_v52 = vpop.permute.xlu0 %1450  ;;  %413 = vst [vmem:[#allocation3 + $0x9c] sm:$0x1] %v412_v25 }
  0xdc   : > { %v1633_v39 = vsel %vm1617_vm12, %v5665_v6, %v1451_v52 }
  0xdf   : > { %v1596_v26 = vpop.permute.xlu0 %1595 }
  0xe0   : > { %v1670_v13 = vsel %vm1654_vm13, %v1633_v39, %v1596_v26  ;;  %v429_v26 = vld [vmem:[#allocation3 + $0x2c] sm:$0x1] }
  0xe1   : > { %4866 = vmatprep.mubr.msk.bf16.mxu0 %vm1701_vm14, %v1670_v13 }
  0xe2   : > { %4867 = vmatmul.mubr.msk.bf16.gmra.mxu0 %vm1701_vm14, %v1672_v27 }
  0xe6   : > { %v1457_v15 = vpop.permute.xlu1 %1456 }
  0xe7   : > { %v1639_v30 = vsel %vm1617_vm12, %v5708_v45, %v1457_v15  ;;  %v390_v15 = vld [vmem:[#allocation3 + $0x48] sm:$0x1] }
  0xea   : > { %v1602_v31 = vpop.permute.xlu1 %1601 }
  0xeb   : > { %v1676_v57 = vsel %vm1654_vm13, %v1639_v30, %v1602_v31  ;;  %v387_v31 = vld [vmem:[#allocation3 + $0x3c] sm:$0x1] }
  0xec   : > { %v1455_v29 = vpop.permute.xlu0 %1454 }
  0xed   : > { %v1637_v24 = vsel %vm1617_vm12, %v5728_v48, %v1455_v29  ;;  %v391_v29 = vsel %vm5387_vm2, 0, %v390_v15 }
  0xee   : > { %392 = vst [vmem:[#allocation3 + $0x48] sm:$0x1] %v391_v29 }
  0xf0   : > { %v1600_v32 = vpop.permute.xlu0 %1599 }
  0xf1   : > { %v1674_v6 = vsel %vm1654_vm13, %v1637_v24, %v1600_v32  ;;  %v388_v24 = vsel %vm5387_vm2, 0, %v387_v31  ;;  %v438_v32 = vld [vmem:[#allocation3 + $0x50] sm:$0x1]  ;;  %v459_v31 = vld [vmem:[#allocation3 + $0xa4] sm:$0x1] }
  0xf2   : > { %4870 = vmatprep.mubr.msk.bf16.mxu0 %vm1701_vm14, %v1674_v6  ;;  %v1461_v3 = vpop.permute.xlu1 %1460  ;;  %389 = vst [vmem:[#allocation3 + $0x3c] sm:$0x1] %v388_v24  ;;  %v460_v24 = vsel %vm5396_vm4, 0, %v459_v31 }
  0xf3   : > { %4871 = vmatmul.mubr.msk.bf16.gmra.mxu0 %vm1701_vm14, %v1676_v57  ;;  %v1643_v28 = vsel %vm1617_vm12, %v5750_v17, %v1461_v3  ;;  %v435_v3 = vld [vmem:[#allocation3 + $0x44] sm:$0x1]  ;;  %461 = vst [vmem:[#allocation3 + $0xa4] sm:$0x1] %v460_v24 }
  0xf6   : > { %v1606_v44 = vpop.permute.xlu1 %1605 }
  0xf7   : > { %v1680_v36 = vsel %vm1654_vm13, %v1643_v28, %v1606_v44  ;;  %v396_v28 = vld [vmem:[#allocation3 + $0x60] sm:$0x1] }
  0xf8   : > { %v1459_v40 = vpop.permute.xlu0 %1458  ;;  %v397_v44 = vsel %vm5387_vm2, 0, %v396_v28 }
  0xf9   : > { %v1641_v45 = vsel %vm1617_vm12, %v5778_v61, %v1459_v40  ;;  %v436_v40 = vsel %vm5396_vm4, 0, %v435_v3  ;;  %398 = vst [vmem:[#allocation3 + $0x60] sm:$0x1] %v397_v44  ;;  %v417_v44 = vld [vmem:[#allocation3 + $0xb4] sm:$0x1] }
  0xfa   : > { %437 = vst [vmem:[#allocation3 + $0x44] sm:$0x1] %v436_v40 }
  0xfc   : > { %v1604_v35 = vpop.permute.xlu0 %1603 }
  0xfd   : > { %v1678_v48 = vsel %vm1654_vm13, %v1641_v45, %v1604_v35 }
  0xfe   : > { %4874 = vmatprep.mubr.msk.bf16.mxu0 %vm1701_vm14, %v1678_v48 }
  0xff   : > { %4875 = vmatmul.mubr.msk.bf16.gmra.mxu0 %vm1701_vm14, %v1680_v36 }
 0x104   : > { %v1465_v42 = vpop.permute.xlu1 %1464 }
 0x105   : > { %v1647_v50 = vsel %vm1617_vm12, %v5828_v11, %v1465_v42  ;;  %v444_v42 = vld [vmem:[#allocation3 + $0x68] sm:$0x1] }
 0x108   : > { %v1610_v51 = vpop.permute.xlu1 %1609 }
 0x109   : > { %v1684_v54 = vsel %vm1654_vm13, %v1647_v50, %v1610_v51  ;;  %v445_v50 = vsel %vm5396_vm4, 0, %v444_v42  ;;  %v441_v51 = vld [vmem:[#allocation3 + $0x5c] sm:$0x1]  ;;  %v468_v42 = vld [vmem:[#allocation3 + $0xc8] sm:$0x1] }
 0x10a   : > { %v1463_v47 = vpop.permute.xlu0 %1462  ;;  %446 = vst [vmem:[#allocation3 + $0x68] sm:$0x1] %v445_v50  ;;  %v469_v50 = vsel %vm5396_vm4, 0, %v468_v42 }
 0x10b   : > { %v1645_v17 = vsel %vm1617_vm12, %v5843_v41, %v1463_v47  ;;  %470 = vst [vmem:[#allocation3 + $0xc8] sm:$0x1] %v469_v50 }
 0x10e   : > { %v1608_v19 = vpop.permute.xlu0 %1607 }
 0x10f   : > { %v1682_v61 = vsel %vm1654_vm13, %v1645_v17, %v1608_v19  ;;  %v1469_v22 = vpop.permute.xlu1 %1468  ;;  %v442_v19 = vsel %vm5396_vm4, 0, %v441_v51 }
 0x110   : > { %4878 = vmatprep.mubr.msk.bf16.mxu0 %vm1701_vm14, %v1682_v61  ;;  %v1651_v56 = vsel %vm1617_vm12, %v5852_v7, %v1469_v22  ;;  %443 = vst [vmem:[#allocation3 + $0x5c] sm:$0x1] %v442_v19  ;;  %v399_v22 = vld [vmem:[#allocation3 + $0x6c] sm:$0x1]  ;;  %v465_v19 = vld [vmem:[#allocation3 + $0xbc] sm:$0x1] }
 0x111   : > { %4879 = vmatmul.mubr.msk.bf16.gmra.mxu0 %vm1701_vm14, %v1684_v54 }
 0x113   : > { %v1614_v60 = vpop.permute.xlu1 %1613 }
 0x114   : > { %v1688_v2 = vsel %vm1654_vm13, %v1651_v56, %v1614_v60  ;;  %v400_v56 = vsel %vm5387_vm2, 0, %v399_v22  ;;  %v450_v60 = vld [vmem:[#allocation3 + $0x80] sm:$0x1] }
 0x115   : > { %401 = vst [vmem:[#allocation3 + $0x6c] sm:$0x1] %v400_v56 }
 0x117   : > { %v1467_v21 = vpop.permute.xlu0 %1466  ;;  %v1582_v16 = vpop.permute.xlu1 %1581 }
 0x118   : > { %v1649_v11 = vsel %vm1617_vm12, %v5880_v49, %v1467_v21 }
 0x11b   : > { %v1612_v53 = vpop.permute.xlu0 %1611 }
 0x11c   : > { %v1686_v41 = vsel %vm1654_vm13, %v1649_v11, %v1612_v53  ;;  %v451_v11 = vsel %vm5396_vm4, 0, %v450_v60 }
 0x11d   : > { %4882 = vmatprep.mubr.msk.bf16.mxu0 %vm1701_vm14, %v1686_v41  ;;  %452 = vst [vmem:[#allocation3 + $0x80] sm:$0x1] %v451_v11 }
 0x11e   : > { %4883 = vmatmul.mubr.msk.bf16.gmra.mxu0 %vm1701_vm14, %v1688_v2 }
 0x11f   : > { %4922 = vmatprep.mubr.msk.bf16.mxu0 %vm1701_vm14, %v5923_v1  ;;  %v1437_v5 = vpop.permute.xlu0 %1436 }
 0x120   : > { %v1619_v7 = vsel %vm1617_vm12, %v5868_v33, %v1437_v5 }
 0x121   : > { %v1656_v38 = vsel %vm1654_vm13, %v1619_v7, %v1582_v16  ;;  %v447_v16 = vld [vmem:[#allocation3 + $0x74] sm:$0x1] }
 0x122   : > { %4888 = vmatprep.mubr.msk.bf16.mxu1 %vm1701_vm14, %v1656_v38  ;;  %v448_v5 = vsel %vm5396_vm4, 0, %v447_v16 }
 0x123   : > { %4889 = vmatmul.mubr.msk.bf16.vlgmr.msra.gmra.mxu1 %vm1701_vm14, %v5913_v55  ;;  %v1471_v33 = vpop.permute.xlu0 %1470  ;;  %v1616_v55 = vpop.permute.xlu1 %1615  ;;  %449 = vst [vmem:[#allocation3 + $0x74] sm:$0x1] %v448_v5 }
 0x124   : > { %4892 = vmatprep.mubr.msk.bf16.mxu1 %vm1701_vm14, %v5923_v1  ;;  %v1653_v49 = vsel %vm1617_vm12, %v5885_v58, %v1471_v33  ;;  %v427_v58 = vsel %vm5396_vm4, 0, %v426_v10  ;;  %v408_v33 = vld [vmem:[#allocation3 + $0x90] sm:$0x1] }
 0x125   : > { %v1690_v1 = vsel %vm1654_vm13, %v1653_v49, %v1616_v55  ;;  %428 = vst [vmem:[#allocation3 + $0x20] sm:$0x1] %v427_v58  ;;  %v409_v55 = vsel %vm5387_vm2, 0, %v408_v33  ;;  %v453_v58 = vld [vmem:[#allocation3 + $0x8c] sm:$0x1] }
 0x126   : > { %4923 = vmatmul.mubr.msk.bf16.vlgmr.msra.gmra.mxu0 %vm1701_vm14, %v5932_v46  ;;  %410 = vst [vmem:[#allocation3 + $0x90] sm:$0x1] %v409_v55  ;;  %v454_v20 = vsel %vm5396_vm4, 0, %v453_v58  ;;  %v6177_v55 = vld [vmem:[%s7051_s2] ss:$0 sm:$0xff] }
 0x127   : > { %4926 = vmatprep.mubr.msk.bf16.mxu0 %vm1701_vm14, %v5935_v34  ;;  %455 = vst [vmem:[#allocation3 + $0x8c] sm:$0x1] %v454_v20 }
 0x12b   : > { %4893 = vmatmul.mubr.msk.bf16.gmra.mxu1 %vm1701_vm14, %v5932_v46  ;;  %v379_v46 = vsel %vm5387_vm2, 0, %v378_v63 }
 0x12c   : > { %4896 = vmatprep.mubr.msk.bf16.mxu1 %vm1701_vm14, %v5935_v34  ;;  %380 = vst [vmem:[#allocation3 + $0x18] sm:$0x1] %v379_v46  ;;  %v375_v34 = vld [vmem:[#allocation3 + $0xc] sm:$0x1] }
 0x12d   : > { %v376_v8 = vsel %vm5387_vm2, 0, %v375_v34 }
 0x12e   : > { %4927 = vmatmul.mubr.msk.bf16.gmra.mxu0 %vm1701_vm14, %v5946_v62  ;;  %377 = vst [vmem:[#allocation3 + $0xc] sm:$0x1] %v376_v8  ;;  %v456_v8 = vld [vmem:[#allocation3 + $0x98] sm:$0x1] }
 0x12f   : > { %4930 = vmatprep.mubr.msk.bf16.mxu0 %vm1701_vm14, %v5949_v14  ;;  %v457_v10 = vsel %vm5396_vm4, 0, %v456_v8 }
 0x130   : > { %458 = vst [vmem:[#allocation3 + $0x98] sm:$0x1] %v457_v10 }
 0x133   : > { %4897 = vmatmul.mubr.msk.bf16.gmra.mxu1 %vm1701_vm14, %v5946_v62 }
 0x134   : > { %4900 = vmatprep.mubr.msk.bf16.mxu1 %vm1701_vm14, %v5949_v14  ;;  %v381_v14 = vld [vmem:[#allocation3 + $0x24] sm:$0x1] }
 0x135   : > { %v382_v18 = vsel %vm5387_vm2, 0, %v381_v14  ;;  %v415_v14 = vsel %vm5387_vm2, 0, %v414_v23 }
 0x136   : > { %4931 = vmatmul.mubr.msk.bf16.gmra.mxu0 %vm1701_vm14, %v1670_v13  ;;  %383 = vst [vmem:[#allocation3 + $0x24] sm:$0x1] %v382_v18  ;;  %416 = vst [vmem:[#allocation3 + $0xa8] sm:$0x1] %v415_v14 }
 0x137   : > { %4934 = vmatprep.mubr.msk.bf16.mxu0 %vm1701_vm14, %v1672_v27 }
 0x13b   : > { %4901 = vmatmul.mubr.msk.bf16.gmra.mxu1 %vm1701_vm14, %v1670_v13  ;;  %v430_v13 = vsel %vm5396_vm4, 0, %v429_v26 }
 0x13c   : > { %4904 = vmatprep.mubr.msk.bf16.mxu1 %vm1701_vm14, %v1672_v27  ;;  %431 = vst [vmem:[#allocation3 + $0x2c] sm:$0x1] %v430_v13  ;;  %v462_v13 = vld [vmem:[#allocation3 + $0xb0] sm:$0x1] }
 0x13d   : > { %v463_v15 = vsel %vm5396_vm4, 0, %v462_v13 }
 0x13e   : > { %4935 = vmatmul.mubr.msk.bf16.gmra.mxu0 %vm1701_vm14, %v1674_v6  ;;  %464 = vst [vmem:[#allocation3 + $0xb0] sm:$0x1] %v463_v15 }
 0x13f   : > { %4938 = vmatprep.mubr.msk.bf16.mxu0 %vm1701_vm14, %v1676_v57 }
 0x143   : > { %4905 = vmatmul.mubr.msk.bf16.gmra.mxu1 %vm1701_vm14, %v1674_v6  ;;  %v439_v6 = vsel %vm5396_vm4, 0, %v438_v32 }
 0x144   : > { %4908 = vmatprep.mubr.msk.bf16.mxu1 %vm1701_vm14, %v1676_v57  ;;  %440 = vst [vmem:[#allocation3 + $0x50] sm:$0x1] %v439_v6  ;;  %v420_v6 = vld [vmem:[#allocation3 + $0xc0] sm:$0x1] }
 0x145   : > { %v421_v40 = vsel %vm5387_vm2, 0, %v420_v6 }
 0x146   : > { %4939 = vmatmul.mubr.msk.bf16.gmra.mxu0 %vm1701_vm14, %v1678_v48  ;;  %422 = vst [vmem:[#allocation3 + $0xc0] sm:$0x1] %v421_v40 }
 0x147   : > { %4942 = vmatprep.mubr.msk.bf16.mxu0 %vm1701_vm14, %v1680_v36 }
 0x14b   : > { %4909 = vmatmul.mubr.msk.bf16.gmra.mxu1 %vm1701_vm14, %v1678_v48  ;;  %v393_v48 = vld [vmem:[#allocation3 + $0x54] sm:$0x1] }
 0x14c   : > { %4912 = vmatprep.mubr.msk.bf16.mxu1 %vm1701_vm14, %v1680_v36  ;;  %v394_v36 = vsel %vm5387_vm2, 0, %v393_v48  ;;  %v418_v48 = vsel %vm5387_vm2, 0, %v417_v44 }
 0x14d   : > { %395 = vst [vmem:[#allocation3 + $0x54] sm:$0x1] %v394_v36  ;;  %419 = vst [vmem:[#allocation3 + $0xb4] sm:$0x1] %v418_v48 }
 0x14e   : > { %4943 = vmatmul.mubr.msk.bf16.gmra.mxu0 %vm1701_vm14, %v1682_v61 }
 0x14f   : > { %4946 = vmatprep.mubr.msk.bf16.mxu0 %vm1701_vm14, %v1684_v54 }
 0x153   : > { %4913 = vmatmul.mubr.msk.bf16.gmra.mxu1 %vm1701_vm14, %v1682_v61  ;;  %v402_v61 = vld [vmem:[#allocation3 + $0x78] sm:$0x1] }
 0x154   : > { %4916 = vmatprep.mubr.msk.bf16.mxu1 %vm1701_vm14, %v1684_v54  ;;  %v403_v54 = vsel %vm5387_vm2, 0, %v402_v61  ;;  %v466_v61 = vsel %vm5396_vm4, 0, %v465_v19 }
 0x155   : > { %404 = vst [vmem:[#allocation3 + $0x78] sm:$0x1] %v403_v54  ;;  %467 = vst [vmem:[#allocation3 + $0xbc] sm:$0x1] %v466_v61 }
 0x156   : > { %4947 = vmatmul.mubr.msk.bf16.gmra.mxu0 %vm1701_vm14, %v1686_v41 }
 0x157   : > { %4950 = vmatprep.mubr.msk.bf16.mxu0 %vm1701_vm14, %v1688_v2 }
 0x15b   : > { %4917 = vmatmul.mubr.msk.bf16.gmra.mxu1 %vm1701_vm14, %v1686_v41 }
 0x15e   : > { %4951 = vmatmul.mubr.msk.bf16.gmra.mxu0 %vm1701_vm14, %v1690_v1  ;;  %v405_v1 = vld [vmem:[#allocation3 + $0x84] sm:$0x1] }
 0x15f   : > { %v406_v46 = vsel %vm5387_vm2, 0, %v405_v1 }
 0x160   : > { %407 = vst [vmem:[#allocation3 + $0x84] sm:$0x1] %v406_v46 }
 0x173   : > { %v6054_v62 = vpop.f32.mrf.mxu0 }
 0x175   : > { %v6058_v52 = vpop.f32.mrf.mxu0 }
 0x177   : > { %v6062_v39 = vpop.f32.mrf.mxu0 }
 0x179   : > { %v6066_v27 = vpop.f32.mrf.mxu0 }
 0x181   : > { %v6070_v30 = vpop.f32.mrf.mxu0 }
 0x183   : > { %v6076_v57 = vpop.f32.mrf.mxu0 }
 0x185   : > { %v6082_v45 = vpop.f32.mrf.mxu0 }
 0x187   : > { %v6084_v35 = vpop.f32.mrf.mxu0 }
 0x192   : > { %v6088_v47 = vpop.f32.mrf.mxu0 }
 0x194   : > { %v6092_v17 = vpop.f32.mrf.mxu0 }
 0x196   : > { %v6098_v21 = vpop.f32.mrf.mxu0 }
 0x198   : > { %v6104_v53 = vpop.f32.mrf.mxu0 }
 0x1a2   : > { %v6106_v41 = vpop.f32.mrf.mxu0 }
 0x1a4   : > { %v6108_v2 = vpop.f32.mrf.mxu0 }
 0x1a6   : > { %v6112_v7 = vpop.f32.mrf.mxu0 }
 0x1a8   : > { %v6114_v38 = vpop.f32.mrf.mxu0 }
 0x1b3   : > { %v6116_v49 = vpop.f32.mrf.mxu0 }
 0x1b5   : > { %v6120_v63 = vpop.f32.mrf.mxu0 }
 0x1b7   : > { %v6124_v34 = vpop.f32.mrf.mxu0 }
 0x1b9   : > { %v6130_v12 = vpop.f32.mrf.mxu0 }
 0x1bf   : > { %v6132_v59 = vpop.f32.mrf.mxu0 }
 0x1c1   : > { %v6136_v18 = vpop.f32.mrf.mxu0 }
 0x1c3   : > { %v6140_v26 = vpop.f32.mrf.mxu0 }
 0x1c5   : > { %v6144_v29 = vpop.f32.mrf.mxu0 }
 0x1d1   : > { %v6148_v32 = vpop.f32.mrf.mxu0 }
 0x1d3   : > { %v6150_v3 = vpop.f32.mrf.mxu0 }
 0x1d5   : > { %v6154_v28 = vpop.f32.mrf.mxu0 }
 0x1d7   : > { %v6158_v36 = vpop.f32.mrf.mxu0 }
 0x1de   : > { %v6162_v51 = vpop.f32.mrf.mxu0 }
 0x1e0   : > { %v6166_v54 = vpop.f32.mrf.mxu0 }
 0x1e2   : > { %v6168_v22 = vpop.f32.mrf.mxu0 }
 0x1e3   : > { %v4890_v56 = vpop.f32.mrf.mxu1 }
 0x1e4   : > { %v1952_v60 = vadd.f32 %v4890_v56, %v6054_v62  ;;  %v6171_v11 = vpop.f32.mrf.mxu0 }
 0x1e5   : > { %v1943_v16 = vpop.f32.mrf.mxu1 }
 0x1e6   : > { %v1944_v5 = vadd.f32 %v1943_v16, %v6058_v52  ;;  %v4924_v33 = vpop.f32.mrf.mxu0 }
 0x1e7   : > { %v2246_v4 = vadd.f32 %v4924_v33, %v1952_v60  ;;  %v4891_v1 = vpop.f32.mrf.mxu1 }
 0x1e8   : > { %v1955_v46 = vadd.f32 %v4891_v1, %v6062_v39  ;;  %v2117_v8 = vpop.f32.mrf.mxu0 }
 0x1e9   : > { %v2285_v10 = vadd.f32 %v6177_v55, %v2246_v4  ;;  %v2244_v58 = vadd.f32 %v2117_v8, %v1944_v5  ;;  %v1946_v62 = vpop.f32.mrf.mxu1  ;;  %v2770_v8 = vld [vmem:[#allocation3 + $0x18] sm:$0xf] }
 0x1ea   : > { %v1947_v20 = vadd.f32 %v1946_v62, %v6066_v27  ;;  %v4925_v23 = vpop.f32.mrf.mxu0 }
 0x1eb   : > { %v2317_v14 = vmax.f32 %v2285_v10, 0.0  ;;  %v2283_v52 = vadd.f32 %v6177_v55, %v2244_v58  ;;  %v2247_v9 = vadd.f32 %v4925_v23, %v1955_v46  ;;  %v4894_v25 = vpop.f32.mrf.mxu1 }
 0x1ec   : > { %v1968_v13 = vadd.f32 %v4894_v25, %v6070_v30  ;;  %v2120_v15 = vpop.f32.mrf.mxu0 }
 0x1ed   : > { %v4719_v31 = vpack.c.bf16 %v2317_v14, %v2317_v14  ;;  %v2315_v24 = vmax.f32 %v2283_v52, 0.0  ;;  %v2286_v39 = vadd.f32 %v6177_v55, %v2247_v9  ;;  %v2245_v6 = vadd.f32 %v2120_v15, %v1947_v20  ;;  %v1959_v40 = vpop.f32.mrf.mxu1 }
 0x1ee   : > { %v1960_v44 = vadd.f32 %v1959_v40, %v6076_v57  ;;  %v4928_v48 = vpop.f32.mrf.mxu0 }
 0x1ef   : > { %v2461_v42 = vshrl.u32 %v4719_v31, 16  ;;  %v4717_v27 = vpack.c.bf16 %v2315_v24, %v2315_v24  ;;  %v2318_v50 = vmax.f32 %v2286_v39, 0.0  ;;  %v4895_v19 = vpop.f32.mrf.mxu1  ;;  %v2464_v61 = vshll.u32 %v4719_v31, 16 }
 0x1f0   : > { %v2284_v56 = vadd.f32 %v6177_v55, %v2245_v6  ;;  %v2250_v60 = vadd.f32 %v4928_v48, %v1968_v13  ;;  %v1971_v30 = vadd.f32 %v4895_v19, %v6082_v45  ;;  %v2133_v16 = vpop.f32.mrf.mxu0  ;;  %v2763_v45 = vld [vmem:[#allocation3 + $0xc] sm:$0xf] }
 0x1f1   : > { %v2463_v5 = vrot.slane %v2461_v42, 7  ;;  %v2444_v33 = vshrl.u32 %v4717_v27, 16  ;;  %v2447_v4 = vshll.u32 %v4717_v27, 16  ;;  %v4720_v1 = vpack.c.bf16 %v2318_v50, %v2318_v50  ;;  %v1962_v46 = vpop.f32.mrf.mxu1  ;;  %v2774_v42 = vld [vmem:[#allocation3 + $0x20] sm:$0x1] }
 0x1f2   : > { %v2316_v10 = vmax.f32 %v2284_v56, 0.0  ;;  %v2289_v57 = vadd.f32 %v6177_v55, %v2250_v60  ;;  %v2248_v58 = vadd.f32 %v2133_v16, %v1960_v44  ;;  %v1963_v62 = vadd.f32 %v1962_v46, %v6084_v35  ;;  %v4929_v20 = vpop.f32.mrf.mxu0 }
 0x1f3   : > { %v2466_v23 = vor.u32 %v2464_v61, %v2463_v5  ;;  %v2467_v14 = vrot.slane %v2463_v5, 4  ;;  %v2446_v52 = vrot.slane %v2444_v33, 7  ;;  %v2469_v9 = vshrl.u32 %v4720_v1, 16  ;;  %v4898_v25 = vpop.f32.mrf.mxu1 }
 0x1f4   : > { %v2472_v13 = vshll.u32 %v4720_v1, 16  ;;  %v4718_v15 = vpack.c.bf16 %v2316_v10, %v2316_v10  ;;  %v2321_v31 = vmax.f32 %v2289_v57, 0.0  ;;  %v2287_v24 = vadd.f32 %v6177_v55, %v2248_v58  ;;  %v2136_v39 = vpop.f32.mrf.mxu0 }
 0x1f5   : > { %v2771_v6 = vsel %vm5442_vm8, %v2466_v23, %v2770_v8  ;;  %v2449_v40 = vor.u32 %v2447_v4, %v2446_v52  ;;  %v2450_v44 = vrot.slane %v2446_v52, 4  ;;  %v2471_v48 = vrot.slane %v2469_v9, 7  ;;  %v1975_v35 = vpop.f32.mrf.mxu1  ;;  %v2767_v52 = vld [vmem:[#allocation3 + $0x14] sm:$0x1] }
 0x1f6   : > { %2772 = vst [vmem:[#allocation3 + $0x18] sm:$0xf] %v2771_v6  ;;  %v2452_v27 = vshrl.u32 %v4718_v15, 16  ;;  %v2455_v50 = vshll.u32 %v4718_v15, 16  ;;  %v4723_v19 = vpack.c.bf16 %v2321_v31, %v2321_v31  ;;  %v2319_v61 = vmax.f32 %v2287_v24, 0.0  ;;  %v4932_v56 = vpop.f32.mrf.mxu0 }
 0x1f7   : > { %v2764_v60 = vsel %vm5442_vm8, %v2449_v40, %v2763_v45  ;;  %v2474_v16 = vor.u32 %v2472_v13, %v2471_v48  ;;  %v2476_v5 = vrot.slane %v2471_v48, 4  ;;  %v2251_v33 = vadd.f32 %v4929_v20, %v1971_v30  ;;  %v4899_v1 = vpop.f32.mrf.mxu1  ;;  %v2784_v6 = vld [vmem:[#allocation3 + $0x30] sm:$0xf] }
 0x1f8   : > { %2765 = vst [vmem:[#allocation3 + $0xc] sm:$0xf] %v2764_v60  ;;  %v2454_v46 = vrot.slane %v2452_v27, 7  ;;  %v2495_v4 = vshrl.u32 %v4723_v19, 16  ;;  %v2498_v8 = vshll.u32 %v4723_v19, 16  ;;  %v4721_v10 = vpack.c.bf16 %v2319_v61, %v2319_v61  ;;  %v2149_v57 = vpop.f32.mrf.mxu0 }
 0x1f9   : > { %v2475_v58 = vsel %vm5436_vm7, %v2467_v14, %v2474_v16  ;;  %v2775_v23 = vsel %vm5387_vm2, %v2476_v5, %v2774_v42  ;;  %v2290_v9 = vadd.f32 %v6177_v55, %v2251_v33  ;;  %v1984_v45 = vadd.f32 %v4898_v25, %v6088_v47  ;;  %v1978_v13 = vpop.f32.mrf.mxu1  ;;  %v2777_v16 = vld [vmem:[#allocation3 + $0x24] sm:$0xf] }
 0x1fa   : > { %2773 = vst.msk [vmem:[#allocation3 + $0x1c] sm:$0xf] %vm256_vm5, %v2475_v58  ;;  %2776 = vst [vmem:[#allocation3 + $0x20] sm:$0x1] %v2775_v23  ;;  %v2457_v30 = vor.u32 %v2455_v50, %v2454_v46  ;;  %v2459_v20 = vrot.slane %v2454_v46, 4  ;;  %v6202_v15 = vrot.slane %v2495_v4, 7  ;;  %v4933_v24 = vpop.f32.mrf.mxu0  ;;  %v2249_v48 = vadd.f32 %v2136_v39, %v1963_v62 }
 0x1fb   : > { %v2478_v31 = vshrl.u32 %v4721_v10, 16  ;;  %v2481_v14 = vshll.u32 %v4721_v10, 16  ;;  %v2322_v40 = vmax.f32 %v2290_v9, 0.0  ;;  %v1976_v42 = vadd.f32 %v1975_v35, %v6092_v17  ;;  %v4902_v27 = vpop.f32.mrf.mxu1 }
 0x1fc   : > { %v2458_v47 = vsel %vm5436_vm7, %v2450_v44, %v2457_v30  ;;  %v2768_v25 = vsel %vm5387_vm2, %v2459_v20, %v2767_v52  ;;  %v2500_v50 = vor.u32 %v2498_v8, %v6202_v15  ;;  %v2501_v19 = vrot.slane %v6202_v15, 4  ;;  %v2152_v61 = vpop.f32.mrf.mxu0  ;;  %v5193_v8 = vld [vmem:[%s7052_s3 + $0x8] sm:$0x3f]  }
 0x1fd   : > { %2766 = vst.msk [vmem:[#allocation3 + $0x10] sm:$0xf] %vm256_vm5, %v2458_v47  ;;  %2769 = vst [vmem:[#allocation3 + $0x14] sm:$0x1] %v2768_v25  ;;  %v6212_v60 = vrot.slane %v2478_v31, 7  ;;  %v4724_v62 = vpack.c.bf16 %v2322_v40, %v2322_v40  ;;  %v2288_v17 = vadd.f32 %v6177_v55, %v2249_v48  ;;  %v2254_v39 = vadd.f32 %v4932_v56, %v1984_v45  ;;  %v1991_v35 = vpop.f32.mrf.mxu1 }
 0x1fe   : > { %v2785_v44 = vsel %vm5442_vm8, %v2500_v50, %v2784_v6  ;;  %v1987_v5 = vadd.f32 %v4899_v1, %v6098_v21  ;;  %v2252_v33 = vadd.f32 %v2149_v57, %v1976_v42  ;;  %v1979_v46 = vadd.f32 %v1978_v13, %v6104_v53  ;;  %v4936_v4 = vpop.f32.mrf.mxu0  ;;  %5059 = vmatprep.subr.msk.bf16.mxu1 %vm1734_vm11, %v5193_v8  ;;  %v2788_v31 = vld [vmem:[#allocation3 + $0x38] sm:$0x1]  ;;  %v2781_v8 = vld [vmem:[#allocation3 + $0x2c] sm:$0x1] }
 0x1ff   : > { %2786 = vst [vmem:[#allocation3 + $0x30] sm:$0xf] %v2785_v44  ;;  %v2483_v10 = vor.u32 %v2481_v14, %v6212_v60  ;;  %v2484_v56 = vrot.slane %v6212_v60, 4  ;;  %v2503_v58 = vshrl.u32 %v4724_v62, 16  ;;  %v2506_v23 = vshll.u32 %v4724_v62, 16  ;;  %v6224_v52 = vpop.f32.mrf.mxu1 }
 0x200   : > { %v2320_v9 = vmax.f32 %v2288_v17, 0.0  ;;  %v2293_v21 = vadd.f32 %v6177_v55, %v2254_v39  ;;  %v2291_v1 = vadd.f32 %v6177_v55, %v2252_v33  ;;  %v2255_v53 = vadd.f32 %v4933_v24, %v1987_v5  ;;  %v6228_v57 = vpop.f32.mrf.mxu0 }
 0x201   : > { %v2778_v45 = vsel %vm5442_vm8, %v2483_v10, %v2777_v16  ;;  %v2505_v13 = vrot.slane %v2503_v58, 7  ;;  %v2000_v30 = vadd.f32 %v4902_v27, %v6106_v41  ;;  %v2253_v20 = vadd.f32 %v2152_v61, %v1979_v46  ;;  %v6234_v15 = vpop.f32.mrf.mxu1 }
 0x202   : > { %2779 = vst [vmem:[#allocation3 + $0x24] sm:$0xf] %v2778_v45  ;;  %v4722_v6 = vpack.c.bf16 %v2320_v9, %v2320_v9  ;;  %v2325_v14 = vmax.f32 %v2293_v21, 0.0  ;;  %v2323_v40 = vmax.f32 %v2291_v1, 0.0  ;;  %v2294_v24 = vadd.f32 %v6177_v55, %v2255_v53  ;;  %v6237_v48 = vpop.f32.mrf.mxu0 }
 0x203   : > { %v2508_v42 = vor.u32 %v2506_v23, %v2505_v13  ;;  %v2510_v47 = vrot.slane %v2505_v13, 4  ;;  %v2292_v25 = vadd.f32 %v6177_v55, %v2253_v20  ;;  %v1992_v50 = vadd.f32 %v1991_v35, %v6108_v2  ;;  %v6241_v62 = vpop.f32.mrf.mxu1  ;;  %v2798_v13 = vld [vmem:[#allocation3 + $0x48] sm:$0xf] }
 0x204   : > { %v2486_v60 = vshrl.u32 %v4722_v6, 16  ;;  %v2489_v41 = vshll.u32 %v4722_v6, 16  ;;  %v4727_v27 = vpack.c.bf16 %v2325_v14, %v2325_v14  ;;  %v4725_v61 = vpack.c.bf16 %v2323_v40, %v2323_v40  ;;  %v2168_v46 = vpop.f32.mrf.mxu0 }
 0x205   : > { %v2509_v17 = vsel %vm5436_vm7, %v2501_v19, %v2508_v42  ;;  %v2789_v39 = vsel %vm5387_vm2, %v2510_v47, %v2788_v31  ;;  %v2326_v44 = vmax.f32 %v2294_v24, 0.0  ;;  %v2324_v16 = vmax.f32 %v2292_v25, 0.0  ;;  %v2007_v45 = vpop.f32.mrf.mxu1  ;;  %v2791_v25 = vld [vmem:[#allocation3 + $0x3c] sm:$0xf] }
 0x206   : > { %2787 = vst.msk [vmem:[#allocation3 + $0x34] sm:$0xf] %vm256_vm5, %v2509_v17  ;;  %2790 = vst [vmem:[#allocation3 + $0x38] sm:$0x1] %v2789_v39  ;;  %v2488_v5 = vrot.slane %v2486_v60, 7  ;;  %v2529_v33 = vshrl.u32 %v4727_v27, 16  ;;  %v2258_v9 = vadd.f32 %v4936_v4, %v2000_v30  ;;  %v4940_v4 = vpop.f32.mrf.mxu0  ;;  %v2003_v39 = vadd.f32 %v6224_v52, %v6112_v7 }
 0x207   : > { %v2532_v2 = vshll.u32 %v4727_v27, 16  ;;  %v2512_v35 = vshrl.u32 %v4725_v61, 16  ;;  %v2515_v10 = vshll.u32 %v4725_v61, 16  ;;  %v4728_v58 = vpack.c.bf16 %v2326_v44, %v2326_v44  ;;  %v2802_v17 = vld [vmem:[#allocation3 + $0x50] sm:$0x1] }
 0x208   : > { %v4726_v23 = vpack.c.bf16 %v2324_v16, %v2324_v16  ;;  %v2491_v21 = vor.u32 %v2489_v41, %v2488_v5  ;;  %v2493_v19 = vrot.slane %v2488_v5, 4  ;;  %v2531_v1 = vrot.slane %v2529_v33, 7  ;;  %v4907_v16 = vpop.f32.mrf.mxu1  ;;  %v2181_v7 = vpop.f32.mrf.mxu0 }
 0x209   : > { %v2514_v53 = vrot.slane %v2512_v35, 7  ;;  %v2537_v20 = vshrl.u32 %v4728_v58, 16  ;;  %v2540_v31 = vshll.u32 %v4728_v58, 16  ;;  %v2256_v44 = vadd.f32 %v6228_v57, %v1992_v50 }
 0x20a   : > { %v2520_v6 = vshrl.u32 %v4726_v23, 16  ;;  %v2523_v14 = vshll.u32 %v4726_v23, 16  ;;  %v2492_v40 = vsel %vm5436_vm7, %v2484_v56, %v2491_v21  ;;  %v2782_v24 = vsel %vm5387_vm2, %v2493_v19, %v2781_v8  ;;  %v2795_v8 = vld [vmem:[#allocation3 + $0x44] sm:$0x1] }
 0x20b   : > { %v2534_v42 = vor.u32 %v2532_v2, %v2531_v1  ;;  %v2535_v47 = vrot.slane %v2531_v1, 4  ;;  %2780 = vst.msk [vmem:[#allocation3 + $0x28] sm:$0xf] %vm256_vm5, %v2492_v40  ;;  %2783 = vst [vmem:[#allocation3 + $0x2c] sm:$0x1] %v2782_v24  ;;  %v2517_v30 = vor.u32 %v2515_v10, %v2514_v53  ;;  %v2518_v60 = vrot.slane %v2514_v53, 4  ;;  %v2010_v53 = vpop.f32.mrf.mxu1 }
 0x20c   : > { %v2539_v41 = vrot.slane %v2537_v20, 7  ;;  %v2522_v27 = vrot.slane %v2520_v6, 7  ;;  %v2297_v56 = vadd.f32 %v6177_v55, %v2258_v9  ;;  %v2295_v23 = vadd.f32 %v6177_v55, %v2256_v44  ;;  %v2805_v44 = vld [vmem:[#allocation3 + $0x54] sm:$0xf] }
 0x20d   : > { %v2799_v61 = vsel %vm5442_vm8, %v2534_v42, %v2798_v13  ;;  %v2792_v5 = vsel %vm5442_vm8, %v2517_v30, %v2791_v25  ;;  %v1995_v9 = vadd.f32 %v6234_v15, %v6114_v38  ;;  %v2259_v21 = vadd.f32 %v6237_v48, %v2003_v39  ;;  %v4941_v42 = vpop.f32.mrf.mxu0 }
 0x20e   : > { %2800 = vst [vmem:[#allocation3 + $0x48] sm:$0xf] %v2799_v61  ;;  %v2542_v33 = vor.u32 %v2540_v31, %v2539_v41  ;;  %v2544_v2 = vrot.slane %v2539_v41, 4  ;;  %v2525_v35 = vor.u32 %v2523_v14, %v2522_v27  ;;  %2793 = vst [vmem:[#allocation3 + $0x3c] sm:$0xf] %v2792_v5  ;;  %v2527_v10 = vrot.slane %v2522_v27, 4 }
 0x20f   : > { %v2329_v58 = vmax.f32 %v2297_v56, 0.0  ;;  %v2327_v19 = vmax.f32 %v2295_v23, 0.0  ;;  %v2016_v1 = vadd.f32 %v6241_v62, %v6116_v49  ;;  %v2298_v13 = vadd.f32 %v6177_v55, %v2259_v21  ;;  %v2816_v21 = vld [vmem:[#allocation3 + $0x68] sm:$0x1] }
 0x210   : > { %v2543_v52 = vsel %vm5436_vm7, %v2535_v47, %v2542_v33  ;;  %v2803_v57 = vsel %vm5387_vm2, %v2544_v2, %v2802_v17  ;;  %v2526_v50 = vsel %vm5436_vm7, %v2518_v60, %v2525_v35  ;;  %v2796_v38 = vsel %vm5387_vm2, %v2527_v10, %v2795_v8 }
 0x211   : > { %2801 = vst.msk [vmem:[#allocation3 + $0x4c] sm:$0xf] %vm256_vm5, %v2543_v52  ;;  %2804 = vst [vmem:[#allocation3 + $0x50] sm:$0x1] %v2803_v57  ;;  %v4731_v15 = vpack.c.bf16 %v2329_v58, %v2329_v58  ;;  %v2257_v20 = vadd.f32 %v2168_v46, %v1995_v9  ;;  %v2008_v48 = vadd.f32 %v2007_v45, %v6120_v63  ;;  %v2330_v47 = vmax.f32 %v2298_v13, 0.0  ;;  %v4910_v57 = vpop.f32.mrf.mxu1 }
 0x212   : > { %2794 = vst.msk [vmem:[#allocation3 + $0x40] sm:$0xf] %vm256_vm5, %v2526_v50  ;;  %2797 = vst [vmem:[#allocation3 + $0x44] sm:$0x1] %v2796_v38  ;;  %v2019_v31 = vadd.f32 %v4907_v16, %v6124_v34  ;;  %v4729_v40 = vpack.c.bf16 %v2327_v19, %v2327_v19  ;;  %v2262_v24 = vadd.f32 %v4940_v4, %v2016_v1  ;;  %v2812_v63 = vld [vmem:[#allocation3 + $0x60] sm:$0xf] }
 0x213   : > { %v2563_v6 = vshrl.u32 %v4731_v15, 16  ;;  %v2566_v14 = vshll.u32 %v4731_v15, 16  ;;  %v2296_v25 = vadd.f32 %v6177_v55, %v2257_v20  ;;  %v2260_v30 = vadd.f32 %v2181_v7, %v2008_v48  ;;  %v6288_v52 = vld [vmem:[#allocation3 + $0x1c] sm:$0xf]  ;;  %v2879_v48 = vld [vmem:[#allocation3 + $0x18] sm:$0xf] }
 0x214   : > { %v6282_v49 = vadd.f32 %v2010_v53, %v6130_v12  ;;  %v2546_v60 = vshrl.u32 %v4729_v40, 16  ;;  %v2549_v41 = vshll.u32 %v4729_v40, 16  ;;  %v2301_v46 = vadd.f32 %v6177_v55, %v2262_v24 }
 0x215   : > { %v2565_v62 = vrot.slane %v2563_v6, 7  ;;  %v4732_v45 = vpack.c.bf16 %v2330_v47, %v2330_v47  ;;  %v2328_v34 = vmax.f32 %v2296_v25, 0.0  ;;  %v2299_v27 = vadd.f32 %v6177_v55, %v2260_v30 }
 0x216   : > { %v2263_v61 = vadd.f32 %v4941_v42, %v2019_v31  ;;  %v2548_v56 = vrot.slane %v2546_v60, 7  ;;  %v2333_v39 = vmax.f32 %v2301_v46, 0.0  ;;  %v2809_v31 = vld [vmem:[#allocation3 + $0x5c] sm:$0x1]  ;;  %v6296_v24 = vcombine.low %v2879_v48, %v6288_v52  ;;  %v2184_v42 = vpop.f32.mrf.mxu0  ;;  %v2826_v60 = vld [vmem:[#allocation3 + $0x78] sm:$0xf]  ;;  %v2023_v46 = vpop.f32.mrf.mxu1 }
 0x217   : > { %v2568_v4 = vor.u32 %v2566_v14, %v2565_v62  ;;  %v2569_v17 = vrot.slane %v2565_v62, 4  ;;  %v2571_v16 = vshrl.u32 %v4732_v45, 16  ;;  %v2574_v5 = vshll.u32 %v4732_v45, 16 }
 0x218   : > { %v4730_v12 = vpack.c.bf16 %v2328_v34, %v2328_v34  ;;  %v2331_v33 = vmax.f32 %v2299_v27, 0.0  ;;  %v2551_v35 = vor.u32 %v2549_v41, %v2548_v56  ;;  %v2552_v8 = vrot.slane %v2548_v56, 4  ;;  %v6302_v41 = vld [vmem:[#allocation3 + $0x20] ss:$0 sps:$4 sm:$0x11]  }
 0x219   : > { %v2813_v2 = vsel %vm5442_vm8, %v2568_v4, %v2812_v63  ;;  %v4735_v10 = vpack.c.bf16 %v2333_v39, %v2333_v39  ;;  %v2573_v58 = vrot.slane %v2571_v16, 7  ;;  %v2302_v19 = vadd.f32 %v6177_v55, %v2263_v61  ;;  %v6309_v61 = vld [vmem:[#allocation3 + $0x14] ss:$0 sps:$4 sm:$0x11]   ;;  %v2819_v56 = vld [vmem:[#allocation3 + $0x6c] sm:$0xf] }
 0x21a   : > { %2814 = vst [vmem:[#allocation3 + $0x60] sm:$0xf] %v2813_v2  ;;  %v2554_v23 = vshrl.u32 %v4730_v12, 16  ;;  %v2557_v9 = vshll.u32 %v4730_v12, 16  ;;  %v4733_v7 = vpack.c.bf16 %v2331_v33, %v2331_v33  ;;  %v2806_v50 = vsel %vm5442_vm8, %v2551_v35, %v2805_v44  ;;  %v6320_v16 = vld [vmem:[%s7052_s3] sm:$0x3f]  }
 0x21b   : > { %v2597_v38 = vshrl.u32 %v4735_v10, 16  ;;  %v2600_v15 = vshll.u32 %v4735_v10, 16  ;;  %2807 = vst [vmem:[#allocation3 + $0x54] sm:$0xf] %v2806_v50  ;;  %v2576_v1 = vor.u32 %v2574_v5, %v2573_v58  ;;  %v2578_v53 = vrot.slane %v2573_v58, 4  ;;  %5060 = vmatprep.subr.msk.bf16.mxu0 %vm1734_vm11, %v6320_v16 }
 0x21c   : > { %v2556_v13 = vrot.slane %v2554_v23, 7  ;;  %v2580_v20 = vshrl.u32 %v4733_v7, 16  ;;  %v2583_v14 = vshll.u32 %v4733_v7, 16  ;;  %v2334_v40 = vmax.f32 %v2302_v19, 0.0  ;;  %v2878_v35 = vld [vmem:[#allocation3 + $0x10] sm:$0xf]  ;;  %v4911_v7 = vpop.f32.mrf.mxu1 }
 0x21d   : > { %v6293_v6 = vrot.slane %v2597_v38, 7  ;;  %v2577_v47 = vsel %vm5436_vm7, %v2569_v17, %v2576_v1  ;;  %v2817_v25 = vsel %vm5387_vm2, %v2578_v53, %v2816_v21  ;;  %v3116_v39 = vshrl.u32 %v6296_v24, 16  ;;  %v2877_v19 = vld [vmem:[#allocation3 + $0xc] sm:$0xf]  ;;  %v2830_v1 = vld [vmem:[#allocation3 + $0x80] sm:$0x1] }
 0x21e   : > { %v2559_v30 = vor.u32 %v2557_v9, %v2556_v13  ;;  %v2561_v62 = vrot.slane %v2556_v13, 4  ;;  %2815 = vst.msk [vmem:[#allocation3 + $0x64] sm:$0xf] %vm256_vm5, %v2577_v47  ;;  %2818 = vst [vmem:[#allocation3 + $0x68] sm:$0x1] %v2817_v25  ;;  %v6307_v34 = vrot.slane %v2580_v20, 7  ;;  %v4736_v27 = vpack.c.bf16 %v2334_v40, %v2334_v40  ;;  %v2026_v47 = vpop.f32.mrf.mxu1 }
 0x21f   : > { %v2602_v63 = vor.u32 %v2600_v15, %v6293_v6  ;;  %v2603_v45 = vrot.slane %v6293_v6, 4  ;;  %v3118_v44 = vshll.u32 %v6296_v24, 16  ;;  %v3123_v23 = vshll.u32 %v6302_v41, 16 }
 0x220   : > { %v2560_v4 = vsel %vm5436_vm7, %v2552_v8, %v2559_v30  ;;  %v2810_v17 = vsel %vm5387_vm2, %v2561_v62, %v2809_v31  ;;  %v2585_v12 = vor.u32 %v2583_v14, %v6307_v34  ;;  %v2586_v33 = vrot.slane %v6307_v34, 4  ;;  %v4944_v8 = vpop.f32.mrf.mxu0  ;;  %v6381_v34 = vld [vmem:[#allocation3 + $0x28] sm:$0xf] }
 0x221   : > { %2808 = vst.msk [vmem:[#allocation3 + $0x58] sm:$0xf] %vm256_vm5, %v2560_v4  ;;  %2811 = vst [vmem:[#allocation3 + $0x5c] sm:$0x1] %v2810_v17  ;;  %v2827_v5 = vsel %vm5442_vm8, %v2602_v63, %v2826_v60  ;;  %v2605_v2 = vshrl.u32 %v4736_v27, 16  ;;  %v2608_v10 = vshll.u32 %v4736_v27, 16  ;;  %v2032_v9 = vadd.f32 %v4910_v57, %v6132_v59 }
 0x222   : > { %2828 = vst [vmem:[#allocation3 + $0x78] sm:$0xf] %v2827_v5  ;;  %v3120_v58 = vrot.slane %v3118_v44, 1  ;;  %v2820_v50 = vsel %vm5442_vm8, %v2585_v12, %v2819_v56  ;;  %v2261_v38 = vadd.f32 %v2184_v42, %v6282_v49  ;;  %v2024_v15 = vadd.f32 %v2023_v46, %v6136_v18  ;;  %v2197_v14 = vpop.f32.mrf.mxu0  ;;  %v2931_v46 = vld [vmem:[#allocation3 + $0x18] sm:$0xe] }
 0x223   : > { %v2607_v21 = vrot.slane %v2605_v2, 7  ;;  %2821 = vst [vmem:[#allocation3 + $0x6c] sm:$0xf] %v2820_v50  ;;  %v3125_v13 = vrot.slane %v3123_v23, 1  ;;  %v6335_v20 = vcombine.low %v2877_v19, %v2878_v35  ;;  %v3111_v59 = vshll.u32 %v6309_v61, 16 }
 0x224   : > { %v3121_v53 = vor.u32 %v3120_v58, %v3116_v39  ;;  %v2300_v31 = vadd.f32 %v6177_v55, %v2261_v38  ;;  %v2266_v6 = vadd.f32 %v4944_v8, %v2032_v9  ;;  %v4607_v27 = vcombine.low %v2931_v46, %v6288_v52  ;;  %v2930_v5 = vld [vmem:[#allocation3 + $0xc] sm:$0xe]  ;;  %v4945_v12 = vpop.f32.mrf.mxu0  ;;  %v6354_v23 = vld [vmem:[#allocation3 + $0x38] ss:$0 sps:$4 sm:$0x11]  }
 0x225   : > { %v2610_v57 = vor.u32 %v2608_v10, %v2607_v21  ;;  %v2612_v48 = vrot.slane %v2607_v21, 4  ;;  %v3104_v49 = vshrl.u32 %v6335_v20, 16  ;;  %v3106_v18 = vshll.u32 %v6335_v20, 16 }
 0x226   : > { %v3126_v40 = vsel %vm1219_vm10, %v3121_v53, %v3125_v13  ;;  %v3113_v42 = vrot.slane %v3111_v59, 1  ;;  %v2332_v62 = vmax.f32 %v2300_v31, 0.0  ;;  %v2305_v60 = vadd.f32 %v6177_v55, %v2266_v6  ;;  %v2883_v53 = vld [vmem:[#allocation3 + $0x30] sm:$0xf]  ;;  %v2823_v13 = vld [vmem:[#allocation3 + $0x74] sm:$0x1]  ;;  %v2200_v6 = vpop.f32.mrf.mxu0 }
 0x227   : > { %v2611_v25 = vsel %vm5436_vm7, %v2603_v45, %v2610_v57  ;;  %v2831_v30 = vsel %vm5387_vm2, %v2612_v48, %v2830_v1  ;;  %3311 = vrot.lane.b32.xlu1 %v3126_v40, %s5304_s11  ;;  %v3108_v63 = vrot.slane %v3106_v18, 1  ;;  %v3404_v4 = vrot.slane %v6302_v41, 1 }
 0x228   : > { %2829 = vst.msk [vmem:[#allocation3 + $0x7c] sm:$0xf] %vm256_vm5, %v2611_v25  ;;  %2832 = vst [vmem:[#allocation3 + $0x80] sm:$0x1] %v2831_v30  ;;  %v2035_v17 = vadd.f32 %v4911_v7, %v6140_v26  ;;  %v4734_v45 = vpack.c.bf16 %v2332_v62, %v2332_v62  ;;  %v2337_v56 = vmax.f32 %v2305_v60, 0.0  ;;  %v2264_v39 = vadd.f32 %v2197_v14, %v2024_v15  ;;  %v4914_v15 = vpop.f32.mrf.mxu1 }
 0x229   : > { %v2027_v44 = vadd.f32 %v2026_v47, %v6144_v29  ;;  %v3109_v2 = vor.u32 %v3108_v63, %v3104_v49  ;;  %v3403_v8 = vrot.slane %v4607_v27, 1  ;;  %v4606_v10 = vcombine.low %v2930_v5, %v2878_v35  ;;  %v6357_v26 = vld [vmem:[#allocation3 + $0x34] sm:$0xf] }
 0x22a   : > { %v3401_v58 = vrot.slane %v6309_v61, 1  ;;  %v2588_v9 = vshrl.u32 %v4734_v45, 16  ;;  %v2591_v52 = vshll.u32 %v4734_v45, 16  ;;  %v4739_v50 = vpack.c.bf16 %v2337_v56, %v2337_v56  ;;  %v2039_v60 = vpop.f32.mrf.mxu1 }
 0x22b   : > { %v2303_v41 = vadd.f32 %v6177_v55, %v2264_v39  ;;  %v3114_v7 = vsel %vm1219_vm10, %v3109_v2, %v3113_v42  ;;  %v3405_v29 = vsel %vm1526_vm9, %v3403_v8, %v3404_v4  ;;  %v3400_v21 = vrot.slane %v4606_v10, 1  ;;  %v2840_v42 = vld [vmem:[#allocation3 + $0x90] sm:$0xf] }
 0x22c   : > { %v2267_v38 = vadd.f32 %v4945_v12, %v2035_v17  ;;  %v2590_v19 = vrot.slane %v2588_v9, 7  ;;  %3309 = vrot.lane.b32.xlu0 %v3114_v7, %s5304_s11  ;;  %v2631_v61 = vshrl.u32 %v4739_v50, 16  ;;  %v2634_v35 = vshll.u32 %v4739_v50, 16  ;;  %3455 = vrot.lane.b32.xlu1 %v3405_v29, %s5303_s10  ;;  %v6378_v17 = vld [vmem:[#allocation3 + $0x2c] ss:$0 sps:$4 sm:$0x11]   ;;  %v4948_v12 = vpop.f32.mrf.mxu0 }
 0x22d   : > { %v2335_v1 = vmax.f32 %v2303_v41, 0.0  ;;  %v3402_v59 = vsel %vm1526_vm9, %v3400_v21, %v3401_v58  ;;  %v6366_v48 = vcombine.low %v2883_v53, %v6357_v26  ;;  %v3147_v31 = vshll.u32 %v6354_v23, 16  ;;  %v2881_v41 = vld [vmem:[#allocation3 + $0x24] sm:$0xf] }
 0x22e   : > { %v2306_v57 = vadd.f32 %v6177_v55, %v2267_v38  ;;  %v2593_v14 = vor.u32 %v2591_v52, %v2590_v19  ;;  %v2595_v40 = vrot.slane %v2590_v19, 4  ;;  %v2633_v49 = vrot.slane %v2631_v61, 7  ;;  %v2833_v7 = vld [vmem:[#allocation3 + $0x84] sm:$0xf] }
 0x22f   : > { %v4737_v18 = vpack.c.bf16 %v2335_v1, %v2335_v1  ;;  %v3140_v25 = vshrl.u32 %v6366_v48, 16  ;;  %v3142_v30 = vshll.u32 %v6366_v48, 16  ;;  %v3149_v62 = vrot.slane %v3147_v31, 1 }
 0x230   : > { %v2338_v47 = vmax.f32 %v2306_v57, 0.0  ;;  %v2594_v46 = vsel %vm5436_vm7, %v2586_v33, %v2593_v14  ;;  %v2824_v63 = vsel %vm5387_vm2, %v2595_v40, %v2823_v13  ;;  %v2636_v27 = vor.u32 %v2634_v35, %v2633_v49  ;;  %3453 = vrot.lane.b32.xlu0 %v3402_v59, %s5303_s10  ;;  %v2844_v35 = vld [vmem:[#allocation3 + $0x98] sm:$0x1]  ;;  %v2213_v57 = vpop.f32.mrf.mxu0 }
 0x231   : > { %v2637_v4 = vrot.slane %v2633_v49, 4  ;;  %2822 = vst.msk [vmem:[#allocation3 + $0x70] sm:$0xf] %vm256_vm5, %v2594_v46  ;;  %2825 = vst [vmem:[#allocation3 + $0x74] sm:$0x1] %v2824_v63  ;;  %v2614_v45 = vshrl.u32 %v4737_v18, 16  ;;  %v2048_v2 = vadd.f32 %v4914_v15, %v6148_v32  ;;  %v2265_v8 = vadd.f32 %v2200_v6, %v2027_v44  ;;  %v4915_v32 = vpop.f32.mrf.mxu1 }
 0x232   : > { %v2617_v56 = vshll.u32 %v4737_v18, 16  ;;  %v4740_v39 = vpack.c.bf16 %v2338_v47, %v2338_v47  ;;  %v3144_v5 = vrot.slane %v3142_v30, 1  ;;  %v2841_v33 = vsel %vm5442_vm8, %v2636_v27, %v2840_v42  ;;  %v2933_v49 = vld [vmem:[#allocation3 + $0x30] sm:$0xe] }
 0x233   : > { %v2040_v10 = vadd.f32 %v2039_v60, %v6150_v3  ;;  %2842 = vst [vmem:[#allocation3 + $0x90] sm:$0xf] %v2841_v33  ;;  %v6387_v58 = vrot.slane %v2614_v45, 7  ;;  %v2304_v29 = vadd.f32 %v6177_v55, %v2265_v8  ;;  %v6391_v21 = vcombine.low %v2881_v41, %v6381_v34  ;;  %v2042_v30 = vpop.f32.mrf.mxu1  ;;  %v6415_v8 = vld [vmem:[#allocation3 + $0x50] ss:$0 sps:$4 sm:$0x11]  }
 0x234   : > { %v2639_v9 = vshrl.u32 %v4740_v39, 16  ;;  %v2642_v52 = vshll.u32 %v4740_v39, 16  ;;  %v3145_v50 = vor.u32 %v3144_v5, %v3140_v25  ;;  %v3135_v38 = vshll.u32 %v6378_v17, 16  ;;  %v4949_v5 = vpop.f32.mrf.mxu0 }
 0x235   : > { %v2270_v19 = vadd.f32 %v4948_v12, %v2048_v2  ;;  %v2619_v44 = vor.u32 %v2617_v56, %v6387_v58  ;;  %v2620_v3 = vrot.slane %v6387_v58, 4  ;;  %v2336_v1 = vmax.f32 %v2304_v29, 0.0  ;;  %v6413_v2 = vld [vmem:[#allocation3 + $0x4c] sm:$0xf]  ;;  %v4918_v29 = vpop.f32.mrf.mxu1 }
 0x236   : > { %v2641_v15 = vrot.slane %v2639_v9, 7  ;;  %v3150_v61 = vsel %vm1219_vm10, %v3145_v50, %v3149_v62  ;;  %v3128_v53 = vshrl.u32 %v6391_v21, 16  ;;  %v3130_v13 = vshll.u32 %v6391_v21, 16  ;;  %v2837_v58 = vld [vmem:[#allocation3 + $0x8c] sm:$0x1] }
 0x237   : > { %3315 = vrot.lane.b32.xlu1 %v3150_v61, %s5304_s11  ;;  %v3137_v59 = vrot.slane %v3135_v38, 1  ;;  %v2834_v31 = vsel %vm5442_vm8, %v2619_v44, %v2833_v7  ;;  %v2309_v40 = vadd.f32 %v6177_v55, %v2270_v19  ;;  %v4738_v18 = vpack.c.bf16 %v2336_v1, %v2336_v1  ;;  %v2887_v7 = vld [vmem:[#allocation3 + $0x48] sm:$0xf] }
 0x238   : > { %v2644_v6 = vor.u32 %v2642_v52, %v2641_v15  ;;  %v2646_v14 = vrot.slane %v2641_v15, 4  ;;  %2835 = vst [vmem:[#allocation3 + $0x84] sm:$0xf] %v2834_v31  ;;  %v3132_v42 = vrot.slane %v3130_v13, 1  ;;  %v4609_v47 = vcombine.low %v2933_v49, %v6357_v26  ;;  %v2932_v26 = vld [vmem:[#allocation3 + $0x24] sm:$0xe]  ;;  %v2216_v15 = vpop.f32.mrf.mxu0 }
 0x239   : > { %v3410_v25 = vrot.slane %v6354_v23, 1  ;;  %v2341_v46 = vmax.f32 %v2309_v40, 0.0  ;;  %v2051_v63 = vadd.f32 %v4915_v32, %v6154_v28  ;;  %v2622_v27 = vshrl.u32 %v4738_v18, 16  ;;  %v2894_v43 = vld [vmem:[#allocation3 + $0x70] sm:$0xf] }
 0x23a   : > { %v2645_v62 = vsel %vm5436_vm7, %v2637_v4, %v2644_v6  ;;  %v2845_v60 = vsel %vm5387_vm2, %v2646_v14, %v2844_v35  ;;  %v2625_v45 = vshll.u32 %v4738_v18, 16  ;;  %v3133_v56 = vor.u32 %v3132_v42, %v3128_v53  ;;  %v6436_v6 = vld [vmem:[#allocation3 + $0x44] ss:$0 sps:$4 sm:$0x11]   ;;  %v2055_v18 = vpop.f32.mrf.mxu1  ;;  %v6443_v42 = vld [vmem:[#allocation3 + $0x40] sm:$0xf] }
 0x23b   : > { %2843 = vst.msk [vmem:[#allocation3 + $0x94] sm:$0xf] %vm256_vm5, %v2645_v62  ;;  %2846 = vst [vmem:[#allocation3 + $0x98] sm:$0x1] %v2845_v60  ;;  %v3409_v39 = vrot.slane %v4609_v47, 1  ;;  %v4743_v23 = vpack.c.bf16 %v2341_v46, %v2341_v46  ;;  %v2268_v12 = vadd.f32 %v2213_v57, %v2040_v10  ;;  %v2043_v33 = vadd.f32 %v2042_v30, %v6158_v36  ;;  %v4952_v62 = vpop.f32.mrf.mxu0 }
 0x23c   : > { %v4608_v4 = vcombine.low %v2932_v26, %v6381_v34  ;;  %v2624_v28 = vrot.slane %v2622_v27, 7  ;;  %v3138_v9 = vsel %vm1219_vm10, %v3133_v56, %v3137_v59  ;;  %v3407_v50 = vrot.slane %v6378_v17, 1  ;;  %v2854_v59 = vld [vmem:[#allocation3 + $0xa8] sm:$0xf] }
 0x23d   : > { %v3411_v52 = vsel %vm1526_vm9, %v3409_v39, %v3410_v25  ;;  %3313 = vrot.lane.b32.xlu0 %v3138_v9, %s5304_s11  ;;  %v2665_v41 = vshrl.u32 %v4743_v23, 16  ;;  %v2668_v10 = vshll.u32 %v4743_v23, 16  ;;  %v2307_v36 = vadd.f32 %v6177_v55, %v2268_v12  ;;  %v6451_v39 = vld [vmem:[%s7051_s2] ss:$0 sm:$0xff] }
 0x23e   : > { %3459 = vrot.lane.b32.xlu1 %v3411_v52, %s5303_s10  ;;  %v3406_v34 = vrot.slane %v4608_v4, 1  ;;  %v2627_v38 = vor.u32 %v2625_v45, %v2624_v28  ;;  %v2629_v19 = vrot.slane %v2624_v28, 4  ;;  %v2271_v32 = vadd.f32 %v4949_v5, %v2051_v63  ;;  %v2885_v45 = vld [vmem:[#allocation3 + $0x3c] sm:$0xf] }
 0x23f   : > { %v6424_v44 = vcombine.low %v2887_v7, %v6413_v2  ;;  %v6426_v61 = vrot.slane %v2665_v41, 7  ;;  %v2339_v17 = vmax.f32 %v2307_v36, 0.0  ;;  %v3171_v1 = vshll.u32 %v6415_v8, 16  ;;  %v2847_v28 = vld [vmem:[#allocation3 + $0x9c] sm:$0xf]  ;;  %v4919_v41 = vpop.f32.mrf.mxu1  ;;  %v2229_v7 = vpop.f32.mrf.mxu0 }
 0x240   : > { %v3408_v35 = vsel %vm1526_vm9, %v3406_v34, %v3407_v50  ;;  %v2628_v53 = vsel %vm5436_vm7, %v2620_v3, %v2627_v38  ;;  %v2838_v13 = vsel %vm5387_vm2, %v2629_v19, %v2837_v58  ;;  %v2310_v57 = vadd.f32 %v6177_v55, %v2271_v32 }
 0x241   : > { %v3164_v31 = vshrl.u32 %v6424_v44, 16  ;;  %2836 = vst.msk [vmem:[#allocation3 + $0x88] sm:$0xf] %vm256_vm5, %v2628_v53  ;;  %2839 = vst [vmem:[#allocation3 + $0x8c] sm:$0x1] %v2838_v13  ;;  %v2670_v14 = vor.u32 %v2668_v10, %v6426_v61  ;;  %v2671_v40 = vrot.slane %v6426_v61, 4  ;;  %v4741_v49 = vpack.c.bf16 %v2339_v17, %v2339_v17  ;;  %3457 = vrot.lane.b32.xlu0 %v3408_v35, %s5303_s10 }
 0x242   : > { %v3166_v3 = vshll.u32 %v6424_v44, 16  ;;  %v2342_v55 = vmax.f32 %v2310_v57, 0.0  ;;  %v3173_v47 = vrot.slane %v3171_v1, 1  ;;  %v2064_v25 = vadd.f32 %v4918_v29, %v6162_v51  ;;  %v2858_v17 = vld [vmem:[#allocation3 + $0xb0] sm:$0x1] }
 0x243   : > { %v2269_v30 = vadd.f32 %v2216_v15, %v2043_v33  ;;  %v2855_v60 = vsel %vm5442_vm8, %v2670_v14, %v2854_v59  ;;  %v2648_v46 = vshrl.u32 %v4741_v49, 16  ;;  %v2651_v63 = vshll.u32 %v4741_v49, 16  ;;  %v2935_v15 = vld [vmem:[#allocation3 + $0x48] sm:$0xe]  ;;  %v2058_v14 = vpop.f32.mrf.mxu1 }
 0x244   : > { %v3168_v27 = vrot.slane %v3166_v3, 1  ;;  %2856 = vst [vmem:[#allocation3 + $0xa8] sm:$0xf] %v2855_v60  ;;  %v4744_v56 = vpack.c.bf16 %v2342_v55, %v2342_v55  ;;  %v2056_v51 = vadd.f32 %v2055_v18, %v6166_v54  ;;  %v6456_v5 = vcombine.low %v2885_v45, %v6443_v42  ;;  %v6481_v45 = vld [vmem:[#allocation3 + $0x68] ss:$0 sps:$4 sm:$0x11]  }
 0x245   : > { %v2308_v26 = vadd.f32 %v6451_v39, %v2269_v30  ;;  %v6458_v23 = vrot.slane %v2648_v46, 7  ;;  %v3159_v33 = vshll.u32 %v6436_v6, 16  ;;  %v2274_v4 = vadd.f32 %v4952_v62, %v2064_v25 }
 0x246   : > { %v3169_v12 = vor.u32 %v3168_v27, %v3164_v31  ;;  %v2673_v58 = vshrl.u32 %v4744_v56, 16  ;;  %v2676_v9 = vshll.u32 %v4744_v56, 16  ;;  %v3152_v50 = vshrl.u32 %v6456_v5, 16  ;;  %v2934_v27 = vld [vmem:[#allocation3 + $0x3c] sm:$0xe] }
 0x247   : > { %v2340_v52 = vmax.f32 %v2308_v26, 0.0  ;;  %v2653_v10 = vor.u32 %v2651_v63, %v6458_v23  ;;  %v2654_v54 = vrot.slane %v6458_v23, 4  ;;  %v3154_v34 = vshll.u32 %v6456_v5, 16  ;;  %v2892_v23 = vld [vmem:[#allocation3 + $0x64] sm:$0xf] }
 0x248   : > { %v3174_v36 = vsel %vm1219_vm10, %v3169_v12, %v3173_v47  ;;  %v2675_v29 = vrot.slane %v2673_v58, 7  ;;  %v3161_v19 = vrot.slane %v3159_v33, 1  ;;  %v2313_v32 = vadd.f32 %v6451_v39, %v2274_v4  ;;  %v4953_v47 = vpop.f32.mrf.mxu0  ;;  %v6488_v58 = vld [vmem:[#allocation3 + $0x58] sm:$0xf] }
 0x249   : > { %3319 = vrot.lane.b32.xlu1 %v3174_v36, %s5304_s11  ;;  %v4742_v38 = vpack.c.bf16 %v2340_v52, %v2340_v52  ;;  %v2848_v61 = vsel %vm5442_vm8, %v2653_v10, %v2847_v28  ;;  %v3156_v35 = vrot.slane %v3154_v34, 1  ;;  %v4611_v1 = vcombine.low %v2935_v15, %v6413_v2  ;;  %v2891_v10 = vld [vmem:[#allocation3 + $0x60] sm:$0xf]  ;;  %v6505_v15 = vld [vmem:[#allocation3 + $0x5c] ss:$0 sps:$4 sm:$0x11]  }
 0x24a   : > { %v3416_v53 = vrot.slane %v6415_v8, 1  ;;  %2849 = vst [vmem:[#allocation3 + $0x9c] sm:$0xf] %v2848_v61  ;;  %v2678_v13 = vor.u32 %v2676_v9, %v2675_v29  ;;  %v2680_v59 = vrot.slane %v2675_v29, 4  ;;  %v2345_v3 = vmax.f32 %v2313_v32, 0.0 }
 0x24b   : > { %v2656_v57 = vshrl.u32 %v4742_v38, 16  ;;  %v2659_v31 = vshll.u32 %v4742_v38, 16  ;;  %v3157_v49 = vor.u32 %v3156_v35, %v3152_v50  ;;  %v3415_v18 = vrot.slane %v4611_v1, 1  ;;  %v2851_v8 = vld [vmem:[#allocation3 + $0xa4] sm:$0x1] }
 0x24c   : > { %v2067_v55 = vadd.f32 %v4919_v41, %v6168_v22  ;;  %v2679_v25 = vsel %vm5436_vm7, %v2671_v40, %v2678_v13  ;;  %v2859_v2 = vsel %vm5387_vm2, %v2680_v59, %v2858_v17  ;;  %v2272_v62 = vadd.f32 %v2229_v7, %v2056_v51  ;;  %v2889_v7 = vld [vmem:[#allocation3 + $0x54] sm:$0xf]  ;;  %v2868_v29 = vld [vmem:[#allocation3 + $0xc0] sm:$0xf] }
 0x24d   : > { %v2658_v30 = vrot.slane %v2656_v57, 7  ;;  %2857 = vst.msk [vmem:[#allocation3 + $0xac] sm:$0xf] %vm256_vm5, %v2679_v25  ;;  %2860 = vst [vmem:[#allocation3 + $0xb0] sm:$0x1] %v2859_v2  ;;  %v3162_v60 = vsel %vm1219_vm10, %v3157_v49, %v3161_v19  ;;  %v4747_v46 = vpack.c.bf16 %v2345_v3, %v2345_v3  ;;  %v3417_v63 = vsel %vm1526_vm9, %v3415_v18, %v3416_v53 }
 0x24e   : > { %v2059_v22 = vadd.f32 %v2058_v14, %v6171_v11  ;;  %3317 = vrot.lane.b32.xlu0 %v3162_v60, %s5304_s11  ;;  %3463 = vrot.lane.b32.xlu1 %v3417_v63, %s5303_s10  ;;  %v2311_v26 = vadd.f32 %v6451_v39, %v2272_v62  ;;  %v4610_v51 = vcombine.low %v2934_v27, %v6443_v42  ;;  %v3413_v4 = vrot.slane %v6436_v6, 1  ;;  %v2232_v11 = vpop.f32.mrf.mxu0  ;;  %v2861_v25 = vld [vmem:[#allocation3 + $0xb4] sm:$0xf]  ;;  %v2872_v63 = vld [vmem:[#allocation3 + $0xc8] sm:$0x1] }
 0x24f   : > { %v2661_v40 = vor.u32 %v2659_v31, %v2658_v30  ;;  %v2663_v56 = vrot.slane %v2658_v30, 4  ;;  %v2699_v12 = vshrl.u32 %v4747_v46, 16  ;;  %v2702_v33 = vshll.u32 %v4747_v46, 16 }
 0x250   : > { %v2275_v28 = vadd.f32 %v4953_v47, %v2067_v55  ;;  %v2343_v50 = vmax.f32 %v2311_v26, 0.0  ;;  %v3412_v41 = vrot.slane %v4610_v51, 1  ;;  %v6498_v36 = vcombine.low %v2891_v10, %v2892_v23  ;;  %v2937_v47 = vld [vmem:[#allocation3 + $0x60] sm:$0xe]  ;;  %v2936_v51 = vld [vmem:[#allocation3 + $0x54] sm:$0xe] }
 0x251   : > { %v2662_v9 = vsel %vm5436_vm7, %v2654_v54, %v2661_v40  ;;  %v2852_v52 = vsel %vm5387_vm2, %v2663_v56, %v2851_v8  ;;  %v6495_v42 = vrot.slane %v2699_v12, 7  ;;  %v3195_v34 = vshll.u32 %v6481_v45, 16 }
 0x252   : > { %2850 = vst.msk [vmem:[#allocation3 + $0xa0] sm:$0xf] %vm256_vm5, %v2662_v9  ;;  %2853 = vst [vmem:[#allocation3 + $0xa4] sm:$0x1] %v2852_v52  ;;  %v2314_v6 = vadd.f32 %v6451_v39, %v2275_v28  ;;  %v4745_v54 = vpack.c.bf16 %v2343_v50, %v2343_v50  ;;  %v3414_v38 = vsel %vm1526_vm9, %v3412_v41, %v3413_v4  ;;  %v3188_v53 = vshrl.u32 %v6498_v36, 16 }
 0x253   : > { %v2273_v19 = vadd.f32 %v2232_v11, %v2059_v22  ;;  %v6503_v32 = vcombine.low %v2889_v7, %v6488_v58  ;;  %v2704_v61 = vor.u32 %v2702_v33, %v6495_v42  ;;  %3461 = vrot.lane.b32.xlu0 %v3414_v38, %s5303_s10  ;;  %v3190_v13 = vshll.u32 %v6498_v36, 16  ;;  %v6524_v11 = vld [vmem:[#allocation3 + $0x7c] sm:$0xf]  ;;  %v6526_v9 = vld [vmem:[#allocation3 + $0x80] ss:$0 sps:$4 sm:$0x11]  }
 0x254   : > { %v2346_v17 = vmax.f32 %v2314_v6, 0.0  ;;  %v2682_v35 = vshrl.u32 %v4745_v54, 16  ;;  %v2685_v1 = vshll.u32 %v4745_v54, 16  ;;  %v3197_v31 = vrot.slane %v3195_v34, 1 }
 0x255   : > { %v2869_v59 = vsel %vm5442_vm8, %v2704_v61, %v2868_v29  ;;  %v2312_v14 = vadd.f32 %v6451_v39, %v2273_v19  ;;  %v3192_v3 = vrot.slane %v3190_v13, 1  ;;  %v3178_v18 = vshll.u32 %v6503_v32, 16  ;;  %v6533_v29 = vld [vmem:[#allocation3 + $0x74] ss:$0 sps:$4 sm:$0x11]  }
 0x256   : > { %v4748_v57 = vpack.c.bf16 %v2346_v17, %v2346_v17  ;;  %2870 = vst [vmem:[#allocation3 + $0xc0] sm:$0xf] %v2869_v59  ;;  %v6514_v49 = vrot.slane %v2682_v35, 7  ;;  %v3183_v55 = vshll.u32 %v6505_v15, 16  ;;  %v3176_v8 = vshrl.u32 %v6503_v32, 16 }
 0x257   : > { %v2344_v30 = vmax.f32 %v2312_v14, 0.0  ;;  %v4613_v62 = vcombine.low %v2937_v47, %v2892_v23  ;;  %v3193_v39 = vor.u32 %v3192_v3, %v3188_v53  ;;  %v3180_v22 = vrot.slane %v3178_v18, 1  ;;  %v2895_v23 = vld [vmem:[#allocation3 + $0x78] sm:$0xf]  ;;  %v2893_v61 = vld [vmem:[#allocation3 + $0x6c] sm:$0xf] }
 0x258   : > { %v2707_v2 = vshrl.u32 %v4748_v57, 16  ;;  %v2687_v60 = vor.u32 %v2685_v1, %v6514_v49  ;;  %v2710_v46 = vshll.u32 %v4748_v57, 16  ;;  %v3185_v56 = vrot.slane %v3183_v55, 1  ;;  %v6551_v14 = vld [vmem:[#allocation3 + $0x94] sm:$0xf] }
 0x259   : > { %v4746_v40 = vpack.c.bf16 %v2344_v30, %v2344_v30  ;;  %v3421_v26 = vrot.slane %v4613_v62, 1  ;;  %v3198_v33 = vsel %vm1219_vm10, %v3193_v39, %v3197_v31  ;;  %v3181_v4 = vor.u32 %v3180_v22, %v3176_v8  ;;  %v2939_v31 = vld [vmem:[#allocation3 + $0x78] sm:$0xe]  ;;  %v6556_v55 = vld [vmem:[#allocation3 + $0x98] ss:$0 sps:$4 sm:$0x11]  }
 0x25a   : > { %v2709_v27 = vrot.slane %v2707_v2, 7  ;;  %v2862_v12 = vsel %vm5442_vm8, %v2687_v60, %v2861_v25  ;;  %v3422_v28 = vrot.slane %v6481_v45, 1  ;;  %v2705_v52 = vrot.slane %v6495_v42, 4  ;;  %3323 = vrot.lane.b32.xlu1 %v3198_v33, %s5304_s11  ;;  %v2938_v8 = vld [vmem:[#allocation3 + $0x6c] sm:$0xe] }
 0x25b   : > { %2863 = vst [vmem:[#allocation3 + $0xb4] sm:$0xf] %v2862_v12  ;;  %v2690_v10 = vshrl.u32 %v4746_v40, 16  ;;  %v2693_v6 = vshll.u32 %v4746_v40, 16  ;;  %v3186_v34 = vsel %vm1219_vm10, %v3181_v4, %v3185_v56  ;;  %v4612_v7 = vcombine.low %v2936_v51, %v6488_v58  ;;  %v2865_v58 = vld [vmem:[#allocation3 + $0xbc] sm:$0x1] }
 0x25c   : > { %v2712_v50 = vor.u32 %v2710_v46, %v2709_v27  ;;  %v2714_v41 = vrot.slane %v2709_v27, 4  ;;  %v3419_v45 = vrot.slane %v6505_v15, 1  ;;  %3321 = vrot.lane.b32.xlu0 %v3186_v34, %s5304_s11  ;;  %v6541_v19 = vcombine.low %v2895_v23, %v6524_v11  ;;  %v6564_v62 = vld [vmem:[#allocation3 + $0x88] sm:$0xf]  ;;  %v2899_v39 = vld [vmem:[#allocation3 + $0x90] sm:$0xf] }
 0x25d   : > { %v2692_v38 = vrot.slane %v2690_v10, 7  ;;  %v2688_v17 = vrot.slane %v6514_v49, 4  ;;  %v3423_v15 = vsel %vm1526_vm9, %v3421_v26, %v3422_v28  ;;  %v3418_v35 = vrot.slane %v4612_v7, 1  ;;  %v2897_v40 = vld [vmem:[#allocation3 + $0x84] sm:$0xf] }
 0x25e   : > { %v2713_v54 = vsel %vm5436_vm7, %v2705_v52, %v2712_v50  ;;  %v2873_v42 = vsel %vm5387_vm2, %v2714_v41, %v2872_v63  ;;  %v6546_v1 = vcombine.low %v2893_v61, %v2894_v43  ;;  %3467 = vrot.lane.b32.xlu1 %v3423_v15, %s5303_s10  ;;  %v3214_v59 = vshll.u32 %v6541_v19, 16  ;;  %v6572_v56 = vld [vmem:[#allocation3 + $0x8c] ss:$0 sps:$4 sm:$0x11]  }
 0x25f   : > { %2871 = vst.msk [vmem:[#allocation3 + $0xc4] sm:$0xf] %vm256_vm5, %v2713_v54  ;;  %2874 = vst [vmem:[#allocation3 + $0xc8] sm:$0x1] %v2873_v42  ;;  %v2695_v53 = vor.u32 %v2693_v6, %v2692_v38  ;;  %v2697_v13 = vrot.slane %v2692_v38, 4  ;;  %v3219_v57 = vshll.u32 %v6526_v9, 16  ;;  %v3420_v49 = vsel %vm1526_vm9, %v3418_v35, %v3419_v45 }
 0x260   : > { %v3202_v3 = vshll.u32 %v6546_v1, 16  ;;  %v3207_v18 = vshll.u32 %v6533_v29, 16  ;;  %3465 = vrot.lane.b32.xlu0 %v3420_v49, %s5303_s10  ;;  %v3212_v2 = vshrl.u32 %v6541_v19, 16  ;;  %v3216_v30 = vrot.slane %v3214_v59, 1  ;;  %v6581_v52 = vld [vmem:[#allocation3 + $0xac] sm:$0xf] }
 0x261   : > { %v2696_v47 = vsel %vm5436_vm7, %v2688_v17, %v2695_v53  ;;  %v2866_v25 = vsel %vm5387_vm2, %v2697_v13, %v2865_v58  ;;  %v3200_v60 = vshrl.u32 %v6546_v1, 16  ;;  %v4615_v37 = vcombine.low %v2939_v31, %v6524_v11  ;;  %v2940_v45 = vld [vmem:[#allocation3 + $0x84] sm:$0xe]  ;;  %v2903_v54 = vld [vmem:[#allocation3 + $0xa8] sm:$0xf] }
 0x262   : > { %2864 = vst.msk [vmem:[#allocation3 + $0xb8] sm:$0xf] %vm256_vm5, %v2696_v47  ;;  %2867 = vst [vmem:[#allocation3 + $0xbc] sm:$0x1] %v2866_v25  ;;  %v3204_v46 = vrot.slane %v3202_v3, 1  ;;  %v4614_v63 = vcombine.low %v2938_v8, %v2894_v43  ;;  %v3217_v0 = vor.u32 %v3216_v30, %v3212_v2  ;;  %v3221_v22 = vrot.slane %v3219_v57, 1 }
 0x263   : > { %v6570_v27 = vcombine.low %v2899_v39, %v6551_v14  ;;  %v3209_v51 = vrot.slane %v3207_v18, 1  ;;  %v3243_v12 = vshll.u32 %v6556_v55, 16  ;;  %v6576_v33 = vcombine.low %v2897_v40, %v6564_v62  ;;  %v2941_v43 = vld [vmem:[#allocation3 + $0x90] sm:$0xe]  ;;  %v2901_v17 = vld [vmem:[#allocation3 + $0x9c] sm:$0xf] }
 0x264   : > { %v3205_v26 = vor.u32 %v3204_v46, %v3200_v60  ;;  %v3222_v4 = vsel %vm1219_vm10, %v3217_v0, %v3221_v22  ;;  %v3427_v28 = vrot.slane %v4615_v37, 1  ;;  %v3428_v23 = vrot.slane %v6526_v9, 1  ;;  %v6598_v13 = vld [vmem:[#allocation3 + $0xb0] ss:$0 sps:$4 sm:$0x11]  }
 0x265   : > { %v3238_v11 = vshll.u32 %v6570_v27, 16  ;;  %3327 = vrot.lane.b32.xlu1 %v3222_v4, %s5304_s11  ;;  %v3424_v41 = vrot.slane %v4614_v63, 1  ;;  %v3425_v10 = vrot.slane %v6533_v29, 1  ;;  %v3236_v6 = vshrl.u32 %v6570_v27, 16  ;;  %v6594_v29 = vld [vmem:[#allocation3 + $0xa0] sm:$0xf] }
 0x266   : > { %v3210_v50 = vsel %vm1219_vm10, %v3205_v26, %v3209_v51  ;;  %v3226_v7 = vshll.u32 %v6576_v33, 16  ;;  %v3231_v9 = vshll.u32 %v6572_v56, 16  ;;  %v3245_v42 = vrot.slane %v3243_v12, 1  ;;  %v6612_v8 = vld [vmem:[#allocation3 + $0xc4] sm:$0xf] }
 0x267   : > { %3325 = vrot.lane.b32.xlu0 %v3210_v50, %s5304_s11  ;;  %v3240_v34 = vrot.slane %v3238_v11, 1  ;;  %v4617_v38 = vcombine.low %v2941_v43, %v6551_v14  ;;  %v6592_v61 = vcombine.low %v2903_v54, %v6581_v52  ;;  %v3429_v58 = vsel %vm1526_vm9, %v3427_v28, %v3428_v23  ;;  %v6604_v14 = vld [vmem:[#allocation3 + $0xa4] ss:$0 sps:$4 sm:$0x11]   ;;  %v2907_v22 = vld [vmem:[#allocation3 + $0xc0] sm:$0xf] }
 0x268   : > { %v3224_v35 = vshrl.u32 %v6576_v33, 16  ;;  %v3228_v53 = vrot.slane %v3226_v7, 1  ;;  %v3426_v59 = vsel %vm1526_vm9, %v3424_v41, %v3425_v10  ;;  %v4616_v57 = vcombine.low %v2940_v45, %v6564_v62  ;;  %v2905_v4 = vld [vmem:[#allocation3 + $0xb4] sm:$0xf]  ;;  %v2943_v23 = vld [vmem:[#allocation3 + $0xa8] sm:$0xe] }
 0x269   : > { %v3241_v15 = vor.u32 %v3240_v34, %v3236_v6  ;;  %3471 = vrot.lane.b32.xlu1 %v3429_v58, %s5303_s10  ;;  %v3262_v31 = vshll.u32 %v6592_v61, 16  ;;  %v3233_v18 = vrot.slane %v3231_v9, 1  ;;  %v6609_v47 = vcombine.low %v2901_v17, %v6594_v29  ;;  %v6618_v63 = vld [vmem:[#allocation3 + $0xb8] sm:$0xf]  ;;  %v2942_v11 = vld [vmem:[#allocation3 + $0x9c] sm:$0xe] }
 0x26a   : > { %v3229_v3 = vor.u32 %v3228_v53, %v3224_v35  ;;  %v3433_v25 = vrot.slane %v4617_v38, 1  ;;  %v3434_v2 = vrot.slane %v6556_v55, 1  ;;  %v3260_v60 = vshrl.u32 %v6592_v61, 16  ;;  %v6632_v41 = vld [vmem:[#allocation3 + $0x4] sm:$0xf] }
 0x26b   : > { %3469 = vrot.lane.b32.xlu0 %v3426_v59, %s5303_s10  ;;  %v3246_v49 = vsel %vm1219_vm10, %v3241_v15, %v3245_v42  ;;  %v3264_v30 = vrot.slane %v3262_v31, 1  ;;  %v3267_v46 = vshll.u32 %v6598_v13, 16  ;;  %v3250_v37 = vshll.u32 %v6609_v47, 16  ;;  %v6637_v10 = vld [vmem:[%s7052_s3 + $0x10] sm:$0x3f]  }
 0x26c   : > { %v3234_v62 = vsel %vm1219_vm10, %v3229_v3, %v3233_v18  ;;  %v3430_v39 = vrot.slane %v4616_v57, 1  ;;  %v3431_v0 = vrot.slane %v6572_v56, 1  ;;  %v3255_v55 = vshll.u32 %v6604_v14, 16  ;;  %v2875_v56 = vld [vmem:[#allocation3] sm:$0xf] }
 0x26d   : > { %3331 = vrot.lane.b32.xlu1 %v3246_v49, %s5304_s11  ;;  %v3265_v40 = vor.u32 %v3264_v30, %v3260_v60  ;;  %v3248_v26 = vshrl.u32 %v6609_v47, 16  ;;  %v3252_v51 = vrot.slane %v3250_v37, 1  ;;  %v6626_v12 = vcombine.low %v2907_v22, %v6612_v8  ;;  %v6640_v7 = vld [vmem:[#allocation3 + $0xc8] ss:$0 sps:$4 sm:$0x11]  }
 0x26e   : > { %v3435_v28 = vsel %vm1526_vm9, %v3433_v25, %v3434_v2  ;;  %v6630_v50 = vcombine.low %v2905_v4, %v6618_v63  ;;  %v3269_v43 = vrot.slane %v3267_v46, 1  ;;  %v4619_v34 = vcombine.low %v2943_v23, %v6581_v52  ;;  %v6646_v38 = vld [vmem:[#allocation3 + $0xbc] ss:$0 sps:$4 sm:$0x11]   ;;  %v5207_v15 = vld [vmem:[%s7052_s3 + $0x8] sm:$0x3f]  }
 0x26f   : > { %3329 = vrot.lane.b32.xlu0 %v3234_v62, %s5304_s11  ;;  %v3253_v6 = vor.u32 %v3252_v51, %v3248_v26  ;;  %v3286_v9 = vshll.u32 %v6626_v12, 16  ;;  %v3432_v45 = vsel %vm1526_vm9, %v3430_v39, %v3431_v0  ;;  %v3257_v54 = vrot.slane %v3255_v55, 1  ;;  %v5199_v18 = vld [vmem:[#allocation3 + $0x8] ss:$0 sps:$4 sm:$0x11]  }
 0x270   : > { %v4618_v42 = vcombine.low %v2942_v11, %v6594_v29  ;;  %v3274_v17 = vshll.u32 %v6630_v50, 16  ;;  %v3270_v58 = vsel %vm1219_vm10, %v3265_v40, %v3269_v43  ;;  %v3602_v35 = vsel %vm1734_vm11, %v5207_v15, 0  ;;  %v2909_v60 = vld [vmem:[#allocation3 + $0xcc] sm:$0xf]  ;;  %v2910_v46 = vld [vmem:[#allocation3 + $0xd0] sm:$0xf] }
 0x271   : > { %3475 = vrot.lane.b32.xlu1 %v3435_v28, %s5303_s10  ;;  %v3288_v52 = vrot.slane %v3286_v9, 1  ;;  %v3258_v53 = vsel %vm1219_vm10, %v3253_v6, %v3257_v54  ;;  %v3440_v59 = vrot.slane %v6598_v13, 1  ;;  %4955 = vmatpush3.bf16.msra.mxu1 %v3602_v35  ;;  %v3439_v57 = vrot.slane %v4619_v34, 1  ;;  %v2945_v39 = vld [vmem:[#allocation3 + $0xc0] sm:$0xe] }
 0x272   : > { %v3276_v29 = vrot.slane %v3274_v17, 1  ;;  %v3284_v31 = vshrl.u32 %v6626_v12, 16  ;;  %v3291_v49 = vshll.u32 %v6640_v7, 16  ;;  %v6660_v3 = vcombine.low %v2875_v56, %v6632_v41  ;;  %5061 = vmatprep.subr.msk.bf16.mxu1 %vm1734_vm11, %v6637_v10  ;;  %v2929_v55 = vld [vmem:[#allocation3] sm:$0xe] }
 0x273   : > { %3473 = vrot.lane.b32.xlu0 %v3432_v45, %s5303_s10  ;;  %v3436_v25 = vrot.slane %v4618_v42, 1  ;;  %v3437_v2 = vrot.slane %v6604_v14, 1  ;;  %v3272_v13 = vshrl.u32 %v6630_v50, 16  ;;  %v3279_v30 = vshll.u32 %v6646_v38, 16  ;;  %v2944_v14 = vld [vmem:[#allocation3 + $0xb4] sm:$0xe] }
 0x274   : > { %v3289_v62 = vor.u32 %v3288_v52, %v3284_v31  ;;  %v3094_v0 = vshll.u32 %v6660_v3, 16  ;;  %v3441_v22 = vsel %vm1526_vm9, %v3439_v57, %v3440_v59  ;;  %v3293_v40 = vrot.slane %v3291_v49, 1  ;;  %v5204_v6 = vld [vmem:[#allocation3 + $0xd4] ss:$0 sps:$4 sm:$0x11]  }
 0x275   : > { %3335 = vrot.lane.b32.xlu1 %v3270_v58, %s5304_s11  ;;  %v3277_v37 = vor.u32 %v3276_v29, %v3272_v13  ;;  %v4621_v26 = vcombine.low %v2945_v39, %v6612_v8  ;;  %v3773_v51 = vsel %vm1734_vm11, %v6320_v16, 0  ;;  %v3438_v4 = vsel %vm1526_vm9, %v3436_v25, %v3437_v2  ;;  %v2946_v54 = vld [vmem:[#allocation3 + $0xcc] sm:$0xe] }
 0x276   : > { %v3281_v28 = vrot.slane %v3279_v30, 1  ;;  %v4620_v23 = vcombine.low %v2944_v14, %v6618_v63  ;;  %4989 = vmatpush3.bf16.msra.mxu0 %v3773_v51  ;;  %v6677_v11 = vcombine.low %v2909_v60, %v2910_v46  ;;  %v3294_v56 = vsel %vm1219_vm10, %v3289_v62, %v3293_v40 }
 0x277   : > { %3333 = vrot.lane.b32.xlu0 %v3258_v53, %s5304_s11  ;;  %v3099_v43 = vshll.u32 %v5199_v18, 16  ;;  %v4605_v8 = vcombine.low %v2929_v55, %v6632_v41  ;;  %v3092_v34 = vshrl.u32 %v6660_v3, 16  ;;  %v3096_v9 = vrot.slane %v3094_v0, 1 }
 0x278   : > { %v3282_v16 = vsel %vm1219_vm10, %v3277_v37, %v3281_v28  ;;  %v3298_v45 = vshll.u32 %v6677_v11, 16  ;;  %v3445_v63 = vrot.slane %v4621_v26, 1  ;;  %v3446_v42 = vrot.slane %v6640_v7, 1 }
 0x279   : > { %3479 = vrot.lane.b32.xlu1 %v3441_v22, %s5303_s10  ;;  %v3442_v17 = vrot.slane %v4620_v23, 1  ;;  %v3443_v58 = vrot.slane %v6646_v38, 1  ;;  %v3101_v41 = vrot.slane %v3099_v43, 1  ;;  %v3397_v52 = vrot.slane %v4605_v8, 1 }
 0x27a   : > { %v3398_v15 = vrot.slane %v5199_v18, 1  ;;  %v4622_v35 = vcombine.low %v2946_v54, %v2910_v46  ;;  %v3097_v53 = vor.u32 %v3096_v9, %v3092_v34  ;;  %v3296_v59 = vshrl.u32 %v6677_v11, 16 }
 0x27b   : > { %3477 = vrot.lane.b32.xlu0 %v3438_v4, %s5303_s10  ;;  %v3300_v29 = vrot.slane %v3298_v45, 1  ;;  %v3303_v57 = vshll.u32 %v5204_v6, 16  ;;  %v3447_v31 = vsel %vm1526_vm9, %v3445_v63, %v3446_v42  ;;  %v3444_v7 = vsel %vm1526_vm9, %v3442_v17, %v3443_v58 }
 0x27c   : > { %v3399_v38 = vsel %vm1526_vm9, %v3397_v52, %v3398_v15  ;;  %v3448_v49 = vrot.slane %v4622_v35, 1  ;;  %v3449_v25 = vrot.slane %v5204_v6, 1  ;;  %v3102_v18 = vsel %vm1219_vm10, %v3097_v53, %v3101_v41 }
 0x27d   : > { %3339 = vrot.lane.b32.xlu1 %v3294_v56, %s5304_s11  ;;  %v3301_v2 = vor.u32 %v3300_v29, %v3296_v59  ;;  %v3305_v13 = vrot.slane %v3303_v57, 1  ;;  %v3947_v40 = vsel %vm1734_vm11, %v6637_v10, 0 }
 0x27e   : > { %v3450_v30 = vsel %vm1526_vm9, %v3448_v49, %v3449_v25 }
 0x27f   : > { %3337 = vrot.lane.b32.xlu0 %v3282_v16, %s5304_s11  ;;  %v3306_v62 = vsel %vm1219_vm10, %v3301_v2, %v3305_v13 }
 0x281   : > { %3483 = vrot.lane.b32.xlu1 %v3447_v31, %s5303_s10 }
 0x283   : > { %3481 = vrot.lane.b32.xlu0 %v3444_v7, %s5303_s10 }
 0x285   : > { %3451 = vrot.lane.b32.xlu1 %v3399_v38, %s5303_s10 }
 0x287   : > { %3307 = vrot.lane.b32.xlu0 %v3102_v18, %s5304_s11 }
 0x289   : > { %3485 = vrot.lane.b32.xlu1 %v3450_v30, %s5303_s10 }
 0x28b   : > { %3341 = vrot.lane.b32.xlu0 %v3306_v62, %s5304_s11 }
 0x299   : > { %v3312_v60 = vpop.permute.xlu1 %3311 }
 0x29a   : > { %v3492_v55 = vsel %vm1617_vm12, %v6296_v24, %v3312_v60 }
 0x29e   : > { %v3310_v46 = vpop.permute.xlu0 %3309  ;;  %v3456_v37 = vpop.permute.xlu1 %3455 }
 0x29f   : > { %v3490_v39 = vsel %vm1617_vm12, %v6335_v20, %v3310_v46  ;;  %v6712_v26 = vsel %vm1654_vm13, %v3492_v55, %v3456_v37 }
 0x2a2   : > { %v3454_v0 = vpop.permute.xlu0 %3453 }
 0x2a3   : > { %v6707_v22 = vsel %vm1654_vm13, %v3490_v39, %v3454_v0 }
 0x2a4   : > { %4956 = vmatprep.mubr.msk.bf16.mxu1 %vm1701_vm14, %v6707_v22 }
 0x2a5   : > { %4957 = vmatmul.mubr.msk.bf16.vlgmr.msra.gmra.mxu1 %vm1701_vm14, %v6712_v26 }
 0x2a6   : > { %5023 = vmatpush3.bf16.msra.mxu1 %v3947_v40 }
 0x2a9   : > { %v3316_v20 = vpop.permute.xlu1 %3315 }
 0x2aa   : > { %v3496_v10 = vsel %vm1617_vm12, %v6366_v48, %v3316_v20 }
 0x2af   : > { %v3314_v14 = vpop.permute.xlu0 %3313 }
 0x2b0   : > { %v3460_v51 = vpop.permute.xlu1 %3459  ;;  %v3494_v24 = vsel %vm1617_vm12, %v6391_v21, %v3314_v14 }
 0x2b1   : > { %v6726_v23 = vsel %vm1654_vm13, %v3496_v10, %v3460_v51 }
 0x2b3   : > { %v3458_v4 = vpop.permute.xlu0 %3457 }
 0x2b4   : > { %v6723_v28 = vsel %vm1654_vm13, %v3494_v24, %v3458_v4 }
 0x2b5   : > { %4960 = vmatprep.mubr.msk.bf16.mxu1 %vm1701_vm14, %v6723_v28 }
 0x2b6   : > { %4961 = vmatmul.mubr.msk.bf16.gmra.mxu1 %vm1701_vm14, %v6726_v23 }
 0x2bb   : > { %v3320_v56 = vpop.permute.xlu1 %3319 }
 0x2bc   : > { %v3500_v48 = vsel %vm1617_vm12, %v6424_v44, %v3320_v56 }
 0x2c0   : > { %v3318_v43 = vpop.permute.xlu0 %3317  ;;  %v3464_v8 = vpop.permute.xlu1 %3463 }
 0x2c1   : > { %v3498_v21 = vsel %vm1617_vm12, %v6456_v5, %v3318_v43  ;;  %v6740_v34 = vsel %vm1654_vm13, %v3500_v48, %v3464_v8 }
 0x2c5   : > { %v3462_v6 = vpop.permute.xlu0 %3461 }
 0x2c6   : > { %v6737_v16 = vsel %vm1654_vm13, %v3498_v21, %v3462_v6 }
 0x2c7   : > { %4964 = vmatprep.mubr.msk.bf16.mxu1 %vm1701_vm14, %v6737_v16 }
 0x2c8   : > { %4965 = vmatmul.mubr.msk.bf16.gmra.mxu1 %vm1701_vm14, %v6740_v34 }
 0x2cc   : > { %v3324_v9 = vpop.permute.xlu1 %3323 }
 0x2cd   : > { %v3504_v44 = vsel %vm1617_vm12, %v6498_v36, %v3324_v9 }
 0x2ce   : > { %v3322_v45 = vpop.permute.xlu0 %3321 }
 0x2cf   : > { %v3502_v5 = vsel %vm1617_vm12, %v6503_v32, %v3322_v45 }
 0x2d0   : > { %v3468_v54 = vpop.permute.xlu1 %3467 }
 0x2d1   : > { %v3540_v17 = vsel %vm1654_vm13, %v3504_v44, %v3468_v54 }
 0x2d2   : > { %v3466_v63 = vpop.permute.xlu0 %3465 }
 0x2d3   : > { %v3538_v42 = vsel %vm1654_vm13, %v3502_v5, %v3466_v63 }
 0x2d4   : > { %4968 = vmatprep.mubr.msk.bf16.mxu1 %vm1701_vm14, %v3538_v42 }
 0x2d5   : > { %4969 = vmatmul.mubr.msk.bf16.gmra.mxu1 %vm1701_vm14, %v3540_v17 }
 0x2d7   : > { %v3328_v58 = vpop.permute.xlu1 %3327 }
 0x2d8   : > { %v3508_v32 = vsel %vm1617_vm12, %v6541_v19, %v3328_v58 }
 0x2d9   : > { %v3326_v41 = vpop.permute.xlu0 %3325 }
 0x2da   : > { %v3506_v15 = vsel %vm1617_vm12, %v6546_v1, %v3326_v41 }
 0x2db   : > { %v3472_v52 = vpop.permute.xlu1 %3471 }
 0x2dc   : > { %v3544_v53 = vsel %vm1654_vm13, %v3508_v32, %v3472_v52 }
 0x2dd   : > { %v3470_v35 = vpop.permute.xlu0 %3469 }
 0x2de   : > { %v3542_v36 = vsel %vm1654_vm13, %v3506_v15, %v3470_v35 }
 0x2df   : > { %4972 = vmatprep.mubr.msk.bf16.mxu1 %vm1701_vm14, %v3542_v36  ;;  %v3332_v59 = vpop.permute.xlu1 %3331 }
 0x2e0   : > { %4973 = vmatmul.mubr.msk.bf16.gmra.mxu1 %vm1701_vm14, %v3544_v53  ;;  %v3512_v1 = vsel %vm1617_vm12, %v6570_v27, %v3332_v59 }
 0x2e1   : > { %v3330_v29 = vpop.permute.xlu0 %3329 }
 0x2e2   : > { %v3510_v31 = vsel %vm1617_vm12, %v6576_v33, %v3330_v29 }
 0x2e3   : > { %v3476_v57 = vpop.permute.xlu1 %3475 }
 0x2e4   : > { %v3548_v38 = vsel %vm1654_vm13, %v3512_v1, %v3476_v57 }
 0x2e5   : > { %v3474_v7 = vpop.permute.xlu0 %3473 }
 0x2e6   : > { %v3546_v19 = vsel %vm1654_vm13, %v3510_v31, %v3474_v7 }
 0x2e7   : > { %4976 = vmatprep.mubr.msk.bf16.mxu1 %vm1701_vm14, %v3546_v19  ;;  %v3336_v49 = vpop.permute.xlu1 %3335 }
 0x2e8   : > { %4977 = vmatmul.mubr.msk.bf16.gmra.mxu1 %vm1701_vm14, %v3548_v38  ;;  %v3516_v33 = vsel %vm1617_vm12, %v6592_v61, %v3336_v49 }
 0x2e9   : > { %v3334_v25 = vpop.permute.xlu0 %3333 }
 0x2ea   : > { %v3514_v2 = vsel %vm1617_vm12, %v6609_v47, %v3334_v25 }
 0x2eb   : > { %v3480_v18 = vpop.permute.xlu1 %3479 }
 0x2ec   : > { %v3552_v30 = vsel %vm1654_vm13, %v3516_v33, %v3480_v18  ;;  %v6892_v18 = vld [vmem:[%s7053_s4] ss:$0 sm:$0xff] }
 0x2ed   : > { %v3478_v13 = vpop.permute.xlu0 %3477 }
 0x2ee   : > { %v3550_v27 = vsel %vm1654_vm13, %v3514_v2, %v3478_v13 }
 0x2ef   : > { %4980 = vmatprep.mubr.msk.bf16.mxu1 %vm1701_vm14, %v3550_v27  ;;  %v3340_v62 = vpop.permute.xlu1 %3339 }
 0x2f0   : > { %4981 = vmatmul.mubr.msk.bf16.gmra.mxu1 %vm1701_vm14, %v3552_v30  ;;  %v3520_v47 = vsel %vm1617_vm12, %v6626_v12, %v3340_v62 }
 0x2f1   : > { %v3338_v60 = vpop.permute.xlu0 %3337 }
 0x2f2   : > { %v3518_v37 = vsel %vm1617_vm12, %v6630_v50, %v3338_v60 }
 0x2f3   : > { %v3484_v46 = vpop.permute.xlu1 %3483 }
 0x2f4   : > { %v3556_v0 = vsel %vm1654_vm13, %v3520_v47, %v3484_v46 }
 0x2f5   : > { %v3482_v39 = vpop.permute.xlu0 %3481 }
 0x2f6   : > { %v3554_v61 = vsel %vm1654_vm13, %v3518_v37, %v3482_v39  ;;  %v5208_v37 = vld [vmem:[%s5419_s9] sm:$0xff] }
 0x2f7   : > { %4984 = vmatprep.mubr.msk.bf16.mxu1 %vm1701_vm14, %v3554_v61  ;;  %v3452_v55 = vpop.permute.xlu1 %3451 }
 0x2f8   : > { %4985 = vmatmul.mubr.msk.bf16.gmra.mxu1 %vm1701_vm14, %v3556_v0 }
 0x2f9   : > { %5024 = vmatprep.mubr.msk.bf16.mxu1 %vm1701_vm14, %v6712_v26  ;;  %v3308_v40 = vpop.permute.xlu0 %3307 }
 0x2fa   : > { %v3488_v50 = vsel %vm1617_vm12, %v6660_v3, %v3308_v40 }
 0x2fb   : > { %v3524_v20 = vsel %vm1654_vm13, %v3488_v50, %v3452_v55 }
 0x2fc   : > { %4990 = vmatprep.mubr.msk.bf16.mxu0 %vm1701_vm14, %v3524_v20 }
 0x2fd   : > { %4991 = vmatmul.mubr.msk.bf16.vlgmr.msra.gmra.mxu0 %vm1701_vm14, %v6707_v22  ;;  %v3342_v12 = vpop.permute.xlu0 %3341  ;;  %v3486_v22 = vpop.permute.xlu1 %3485 }
 0x2fe   : > { %4994 = vmatprep.mubr.msk.bf16.mxu0 %vm1701_vm14, %v6712_v26  ;;  %v3522_v3 = vsel %vm1617_vm12, %v6677_v11, %v3342_v12 }
 0x2ff   : > { %v3558_v26 = vsel %vm1654_vm13, %v3522_v3, %v3486_v22  ;;  %v5209_v22 = vld [vmem:[%s5419_s9 + $0x8] sm:$0xff] }
 0x300   : > { %5025 = vmatmul.mubr.msk.bf16.vlgmr.msra.gmra.mxu1 %vm1701_vm14, %v6723_v28 }
 0x301   : > { %5028 = vmatprep.mubr.msk.bf16.mxu1 %vm1701_vm14, %v6726_v23 }
 0x305   : > { %4995 = vmatmul.mubr.msk.bf16.gmra.mxu0 %vm1701_vm14, %v6723_v28 }
 0x306   : > { %4998 = vmatprep.mubr.msk.bf16.mxu0 %vm1701_vm14, %v6726_v23 }
 0x308   : > { %5029 = vmatmul.mubr.msk.bf16.gmra.mxu1 %vm1701_vm14, %v6737_v16 }
 0x309   : > { %5032 = vmatprep.mubr.msk.bf16.mxu1 %vm1701_vm14, %v6740_v34 }
 0x30d   : > { %4999 = vmatmul.mubr.msk.bf16.gmra.mxu0 %vm1701_vm14, %v6737_v16 }
 0x30e   : > { %5002 = vmatprep.mubr.msk.bf16.mxu0 %vm1701_vm14, %v6740_v34 }
 0x310   : > { %5033 = vmatmul.mubr.msk.bf16.gmra.mxu1 %vm1701_vm14, %v3538_v42 }
 0x311   : > { %5036 = vmatprep.mubr.msk.bf16.mxu1 %vm1701_vm14, %v3540_v17 }
 0x315   : > { %5003 = vmatmul.mubr.msk.bf16.gmra.mxu0 %vm1701_vm14, %v3538_v42 }
 0x316   : > { %5006 = vmatprep.mubr.msk.bf16.mxu0 %vm1701_vm14, %v3540_v17 }
 0x318   : > { %5037 = vmatmul.mubr.msk.bf16.gmra.mxu1 %vm1701_vm14, %v3542_v36 }
 0x319   : > { %5040 = vmatprep.mubr.msk.bf16.mxu1 %vm1701_vm14, %v3544_v53 }
 0x31d   : > { %5007 = vmatmul.mubr.msk.bf16.gmra.mxu0 %vm1701_vm14, %v3542_v36 }
 0x31e   : > { %5010 = vmatprep.mubr.msk.bf16.mxu0 %vm1701_vm14, %v3544_v53 }
 0x320   : > { %5041 = vmatmul.mubr.msk.bf16.gmra.mxu1 %vm1701_vm14, %v3546_v19 }
 0x321   : > { %5044 = vmatprep.mubr.msk.bf16.mxu1 %vm1701_vm14, %v3548_v38 }
 0x325   : > { %5011 = vmatmul.mubr.msk.bf16.gmra.mxu0 %vm1701_vm14, %v3546_v19 }
 0x326   : > { %5014 = vmatprep.mubr.msk.bf16.mxu0 %vm1701_vm14, %v3548_v38 }
 0x328   : > { %5045 = vmatmul.mubr.msk.bf16.gmra.mxu1 %vm1701_vm14, %v3550_v27 }
 0x329   : > { %5048 = vmatprep.mubr.msk.bf16.mxu1 %vm1701_vm14, %v3552_v30 }
 0x32d   : > { %5015 = vmatmul.mubr.msk.bf16.gmra.mxu0 %vm1701_vm14, %v3550_v27 }
 0x32e   : > { %5018 = vmatprep.mubr.msk.bf16.mxu0 %vm1701_vm14, %v3552_v30 }
 0x330   : > { %5049 = vmatmul.mubr.msk.bf16.gmra.mxu1 %vm1701_vm14, %v3554_v61 }
 0x331   : > { %5052 = vmatprep.mubr.msk.bf16.mxu1 %vm1701_vm14, %v3556_v0 }
 0x335   : > { %5019 = vmatmul.mubr.msk.bf16.gmra.mxu0 %vm1701_vm14, %v3554_v61 }
 0x338   : > { %5053 = vmatmul.mubr.msk.bf16.gmra.mxu1 %vm1701_vm14, %v3558_v26 }
 0x365   : > { %v4958_v14 = vpop.f32.mrf.mxu1 }
 0x367   : > { %v3638_v51 = vpop.f32.mrf.mxu1 }
 0x369   : > { %v4959_v24 = vpop.f32.mrf.mxu1 }
 0x36b   : > { %v3641_v4 = vpop.f32.mrf.mxu1 }
 0x376   : > { %v6835_v10 = vpop.f32.mrf.mxu1 }
 0x378   : > { %v3654_v28 = vpop.f32.mrf.mxu1 }
 0x37a   : > { %v6837_v23 = vpop.f32.mrf.mxu1 }
 0x37c   : > { %v6839_v56 = vpop.f32.mrf.mxu1 }
 0x388   : > { %v6841_v43 = vpop.f32.mrf.mxu1 }
 0x38a   : > { %v6843_v11 = vpop.f32.mrf.mxu1 }
 0x38c   : > { %v6845_v8 = vpop.f32.mrf.mxu1 }
 0x38e   : > { %v6847_v21 = vpop.f32.mrf.mxu1 }
 0x395   : > { %v6849_v6 = vpop.f32.mrf.mxu1 }
 0x397   : > { %v6851_v48 = vpop.f32.mrf.mxu1 }
 0x399   : > { %v6853_v16 = vpop.f32.mrf.mxu1 }
 0x39b   : > { %v6855_v34 = vpop.f32.mrf.mxu1 }
 0x3a0   : > { %v6857_v9 = vpop.f32.mrf.mxu1 }
 0x3a2   : > { %v6859_v45 = vpop.f32.mrf.mxu1 }
 0x3a4   : > { %v6861_v54 = vpop.f32.mrf.mxu1 }
 0x3a6   : > { %v6863_v5 = vpop.f32.mrf.mxu1 }
 0x3a8   : > { %v6865_v63 = vpop.f32.mrf.mxu1 }
 0x3aa   : > { %v6867_v44 = vpop.f32.mrf.mxu1 }
 0x3ac   : > { %v6869_v42 = vpop.f32.mrf.mxu1 }
 0x3ae   : > { %v6871_v17 = vpop.f32.mrf.mxu1 }
 0x3b0   : > { %v6873_v58 = vpop.f32.mrf.mxu1 }
 0x3b2   : > { %v6875_v41 = vpop.f32.mrf.mxu1 }
 0x3b4   : > { %v6877_v52 = vpop.f32.mrf.mxu1 }
 0x3b6   : > { %v6879_v15 = vpop.f32.mrf.mxu1 }
 0x3b8   : > { %v6881_v35 = vpop.f32.mrf.mxu1 }
 0x3ba   : > { %v6883_v32 = vpop.f32.mrf.mxu1 }
 0x3bc   : > { %v6885_v36 = vpop.f32.mrf.mxu1 }
 0x3bd   : > { %v4992_v53 = vpop.f32.mrf.mxu0 }
 0x3be   : > { %v6887_v59 = vpop.f32.mrf.mxu1  ;;  %v3818_v57 = vadd.f32 %v4992_v53, %v4958_v14 }
 0x3bf   : > { %v3809_v29 = vpop.f32.mrf.mxu0 }
 0x3c0   : > { %v3810_v31 = vadd.f32 %v3809_v29, %v3638_v51  ;;  %v5026_v7 = vpop.f32.mrf.mxu1  ;;  %v5210_v51 = vld [vmem:[%s5419_s9 + $0x10] sm:$0xff] }
 0x3c1   : > { %v4993_v1 = vpop.f32.mrf.mxu0  ;;  %v4112_v25 = vadd.f32 %v5026_v7, %v3818_v57 }
 0x3c2   : > { %v3983_v19 = vpop.f32.mrf.mxu1  ;;  %v3821_v33 = vadd.f32 %v4993_v1, %v4959_v24 }
 0x3c3   : > { %v4110_v38 = vadd.f32 %v3983_v19, %v3810_v31  ;;  %v3812_v49 = vpop.f32.mrf.mxu0  ;;  %v4151_v47 = vadd.f32 %v6892_v18, %v4112_v25 }
 0x3c4   : > { %v3813_v2 = vadd.f32 %v3812_v49, %v3641_v4  ;;  %v5027_v13 = vpop.f32.mrf.mxu1 }
 0x3c5   : > { %v4149_v27 = vadd.f32 %v6892_v18, %v4110_v38  ;;  %v4996_v30 = vpop.f32.mrf.mxu0  ;;  %v4113_v0 = vadd.f32 %v5027_v13, %v3821_v33  ;;  %v4183_v24 = vadd.f32 %v5210_v51, %v4151_v47  ;;  %v5211_v13 = vld [vmem:[%s5419_s9 + $0x18] sm:$0xff] }
 0x3c6   : > { %v3986_v62 = vpop.f32.mrf.mxu1  ;;  %v3834_v1 = vadd.f32 %v4996_v30, %v6835_v10 }
 0x3c7   : > { %v4111_v60 = vadd.f32 %v3986_v62, %v3813_v2  ;;  %v3825_v46 = vpop.f32.mrf.mxu0  ;;  %v4181_v39 = vadd.f32 %v5208_v37, %v4149_v27  ;;  %v4152_v4 = vadd.f32 %v6892_v18, %v4113_v0  ;;  %v4215_v2 = vmax.f32 %v4183_v24, 0.0 }
 0x3c8   : > { %v5030_v61 = vpop.f32.mrf.mxu1  ;;  %v3826_v40 = vadd.f32 %v3825_v46, %v3654_v28 }
 0x3c9   : > { %v4150_v55 = vadd.f32 %v6892_v18, %v4111_v60  ;;  %v4997_v50 = vpop.f32.mrf.mxu0  ;;  %v4213_v20 = vmax.f32 %v4181_v39, 0.0  ;;  %v4184_v33 = vadd.f32 %v5211_v13, %v4152_v4  ;;  %v5212_v39 = vld [vmem:[%s5419_s9 + $0x20] sm:$0xff] }
 0x3ca   : > { %v3999_v12 = vpop.f32.mrf.mxu1  ;;  %v3837_v46 = vadd.f32 %v4997_v50, %v6837_v23  ;;  %v5213_v50 = vld [vmem:[%s5419_s9 + $0x28] sm:$0xff] }
 0x3cb   : > { %v3828_v3 = vpop.f32.mrf.mxu0  ;;  %4245 = vxpose.xlu0.b32.start [1/16] (narrow) %v4213_v20, 8  ;;  %v4182_v26 = vadd.f32 %v5209_v22, %v4150_v55  ;;  %v4114_v53 = vadd.f32 %v3999_v12, %v3826_v40  ;;  %v4216_v30 = vmax.f32 %v4184_v33, 0.0 }
 0x3cc   : > { %v5031_v14 = vpop.f32.mrf.mxu1  ;;  %v3829_v29 = vadd.f32 %v3828_v3, %v6839_v56  ;;  %v4116_v56 = vadd.f32 %v5030_v61, %v3834_v1 }
 0x3cd   : > { %v5000_v57 = vpop.f32.mrf.mxu0  ;;  %v4214_v31 = vmax.f32 %v4182_v26, 0.0  ;;  %v4153_v38 = vadd.f32 %v6892_v18, %v4114_v53  ;;  %v4117_v12 = vadd.f32 %v5031_v14, %v3837_v46 }
 0x3ce   : > { %v4002_v7 = vpop.f32.mrf.mxu1  ;;  %v4155_v61 = vadd.f32 %v6892_v18, %v4116_v56  ;;  %v3850_v1 = vadd.f32 %v5000_v57, %v6841_v43  ;;  %v5215_v56 = vld [vmem:[%s5419_s9 + $0x38] sm:$0xff] }
 0x3cf   : > { %v3841_v28 = vpop.f32.mrf.mxu0  ;;  %4246 = vxpose.xlu0.b32.cont [2/16] (narrow) %v4214_v31, 8  ;;  %v4115_v49 = vadd.f32 %v4002_v7, %v3829_v29  ;;  %v4185_v47 = vadd.f32 %v5212_v39, %v4153_v38  ;;  %v5214_v7 = vld [vmem:[%s5419_s9 + $0x30] sm:$0xff] }
 0x3d0   : > { %v5034_v19 = vpop.f32.mrf.mxu1  ;;  %v3842_v40 = vadd.f32 %v3841_v28, %v6843_v11  ;;  %v4156_v11 = vadd.f32 %v6892_v18, %v4117_v12  ;;  %v4187_v14 = vadd.f32 %v5214_v7, %v4155_v61 }
 0x3d1   : > { %v5001_v25 = vpop.f32.mrf.mxu0  ;;  %v4154_v37 = vadd.f32 %v6892_v18, %v4115_v49  ;;  %v4217_v23 = vmax.f32 %v4185_v47, 0.0 }
 0x3d2   : > { %v4015_v27 = vpop.f32.mrf.mxu1  ;;  %v4188_v46 = vadd.f32 %v5215_v56, %v4156_v11  ;;  %v3853_v39 = vadd.f32 %v5001_v25, %v6845_v8  ;;  %v5217_v11 = vld [vmem:[%s5419_s9 + $0x80] sm:$0xff] }
 0x3d3   : > { %v3844_v62 = vpop.f32.mrf.mxu0  ;;  %4247 = vxpose.xlu0.b32.cont [3/16] (narrow) %v4215_v2, 8  ;;  %v4186_v22 = vadd.f32 %v5213_v50, %v4154_v37  ;;  %v4118_v24 = vadd.f32 %v4015_v27, %v3842_v40 }
 0x3d4   : > { %v5035_v60 = vpop.f32.mrf.mxu1  ;;  %v3845_v4 = vadd.f32 %v3844_v62, %v6847_v21  ;;  %v4219_v62 = vmax.f32 %v4187_v14, 0.0  ;;  %v4220_v50 = vmax.f32 %v4188_v46, 0.0  ;;  %v5218_v14 = vld [vmem:[%s5419_s9 + $0x48] sm:$0xff] }
 0x3d5   : > { %v6907_v10 = vpop.f32.mrf.mxu0  ;;  %v4218_v31 = vmax.f32 %v4186_v22, 0.0  ;;  %v4157_v49 = vadd.f32 %v6892_v18, %v4118_v24  ;;  %v4121_v22 = vadd.f32 %v5035_v60, %v3853_v39 }
 0x3d6   : > { %v4018_v0 = vpop.f32.mrf.mxu1 }
 0x3d7   : > { %v3857_v55 = vpop.f32.mrf.mxu0  ;;  %4248 = vxpose.xlu0.b32.cont [4/16] (narrow) %v4216_v30, 8  ;;  %v4119_v2 = vadd.f32 %v4018_v0, %v3845_v4  ;;  %v4120_v30 = vadd.f32 %v5034_v19, %v3850_v1 }
 0x3d8   : > { %v6911_v20 = vpop.f32.mrf.mxu1  ;;  %v3858_v8 = vadd.f32 %v3857_v55, %v6851_v48 }
 0x3d9   : > { %v6914_v3 = vpop.f32.mrf.mxu0  ;;  %v4158_v47 = vadd.f32 %v6892_v18, %v4119_v2 }
 0x3da   : > { %v4031_v26 = vpop.f32.mrf.mxu1 }
 0x3db   : > { %v3860_v51 = vpop.f32.mrf.mxu0  ;;  %4249 = vxpose.xlu0.b32.cont [5/16] (narrow) %v4217_v23, 8  ;;  %v4190_v1 = vadd.f32 %v5218_v14, %v4158_v47  ;;  %v4122_v2 = vadd.f32 %v4031_v26, %v3858_v8 }
 0x3dc   : > { %v6918_v53 = vpop.f32.mrf.mxu1 }
 0x3dd   : > { %v5008_v29 = vpop.f32.mrf.mxu0 }
 0x3de   : > { %v6922_v28 = vpop.f32.mrf.mxu1  ;;  %v3882_v33 = vadd.f32 %v5008_v29, %v6857_v9  ;;  %v5216_v9 = vld [vmem:[%s5419_s9 + $0x40] sm:$0xff] }
 0x3df   : > { %v3873_v38 = vpop.f32.mrf.mxu0  ;;  %4250 = vxpose.xlu0.b32.cont [6/16] (narrow) %v4218_v31, 8  ;;  %v4189_v61 = vadd.f32 %v5216_v9, %v4157_v49 }
 0x3e0   : > { %v3874_v21 = vadd.f32 %v3873_v38, %v6859_v45  ;;  %v5042_v13 = vpop.f32.mrf.mxu1 }
 0x3e1   : > { %v5009_v27 = vpop.f32.mrf.mxu0  ;;  %v4128_v12 = vadd.f32 %v5042_v13, %v3882_v33  ;;  %v4221_v7 = vmax.f32 %v4189_v61, 0.0  ;;  %v4160_v13 = vadd.f32 %v6892_v18, %v4121_v22  ;;  %v3861_v33 = vadd.f32 %v3860_v51, %v6855_v34 }
 0x3e2   : > { %v4047_v37 = vpop.f32.mrf.mxu1  ;;  %v3885_v45 = vadd.f32 %v5009_v27, %v6861_v54  ;;  %v3866_v51 = vadd.f32 %v6907_v10, %v6849_v6  ;;  %v5223_v6 = vld [vmem:[%s5419_s9 + $0x98] sm:$0xff] }
 0x3e3   : > { %v4126_v43 = vadd.f32 %v4047_v37, %v3874_v21  ;;  %v3876_v57 = vpop.f32.mrf.mxu0  ;;  %4251 = vxpose.xlu0.b32.cont [7/16] (narrow) %v4219_v62, 8  ;;  %v4167_v38 = vadd.f32 %v6892_v18, %v4128_v12  ;;  %v5219_v62 = vld [vmem:[%s5419_s9 + $0x88] sm:$0xff]  ;;  %v4123_v61 = vadd.f32 %v6922_v28, %v3861_v33  ;;  %v5225_v33 = vld [vmem:[%s5419_s9 + $0xa0] sm:$0xff] }
 0x3e4   : > { %v3877_v0 = vadd.f32 %v3876_v57, %v6863_v5  ;;  %v5043_v40 = vpop.f32.mrf.mxu1  ;;  %v4159_v5 = vadd.f32 %v6892_v18, %v4120_v30  ;;  %v4222_v30 = vmax.f32 %v4190_v1, 0.0 }
 0x3e5   : > { %v4165_v23 = vadd.f32 %v6892_v18, %v4126_v43  ;;  %v5012_v19 = vpop.f32.mrf.mxu0  ;;  %v4129_v29 = vadd.f32 %v5043_v40, %v3885_v45  ;;  %v5221_v45 = vld [vmem:[%s5419_s9 + $0x90] sm:$0xff] }
 0x3e6   : > { %v4050_v25 = vpop.f32.mrf.mxu1  ;;  %v4199_v34 = vadd.f32 %v5221_v45, %v4167_v38 }
 0x3e7   : > { %v4127_v24 = vadd.f32 %v4050_v25, %v3877_v0  ;;  %v3889_v4 = vpop.f32.mrf.mxu0  ;;  %4252 = vxpose.xlu0.b32.cont [8/16] (narrow) %v4220_v50, 8  ;;  %v4197_v54 = vadd.f32 %v5217_v11, %v4165_v23  ;;  %v4168_v46 = vadd.f32 %v6892_v18, %v4129_v29  ;;  %v4161_v0 = vadd.f32 %v6892_v18, %v4122_v2  ;;  %v5222_v23 = vld [vmem:[%s5419_s9 + $0x58] sm:$0xff] }
 0x3e8   : > { %v6938_v31 = vpop.f32.mrf.mxu1  ;;  %v3890_v60 = vadd.f32 %v3889_v4, %v6867_v44  ;;  %v5220_v44 = vld [vmem:[%s5419_s9 + $0x50] sm:$0xff]  ;;  %v3898_v50 = vadd.f32 %v5012_v19, %v6865_v63  ;;  %v4231_v28 = vmax.f32 %v4199_v34, 0.0  ;;  %v5224_v19 = vld [vmem:[%s5419_s9 + $0x60] sm:$0xff] }
 0x3e9   : > { %v4166_v48 = vadd.f32 %v6892_v18, %v4127_v24  ;;  %v5013_v55 = vpop.f32.mrf.mxu0  ;;  %v4229_v49 = vmax.f32 %v4197_v54, 0.0  ;;  %v4191_v39 = vadd.f32 %v5220_v44, %v4159_v5  ;;  %v4200_v10 = vadd.f32 %v5223_v6, %v4168_v46 }
 0x3ea   : > { %v4063_v21 = vpop.f32.mrf.mxu1  ;;  %v4124_v54 = vadd.f32 %v6911_v20, %v3866_v51  ;;  %v3869_v5 = vadd.f32 %v6914_v3, %v6853_v16  ;;  %v4132_v20 = vadd.f32 %v6938_v31, %v3898_v50  ;;  %v3901_v16 = vadd.f32 %v5013_v55, %v6869_v42  ;;  %v5227_v51 = vld [vmem:[%s5419_s9 + $0xa8] sm:$0xff] }
 0x3eb   : > { %v3892_v27 = vpop.f32.mrf.mxu0  ;;  %4277 = vxpose.xlu1.b32.start [1/16] (narrow) %v4229_v49, 8  ;;  %4253 = vxpose.xlu0.b32.cont [9/16] (narrow) %v4221_v7, 8  ;;  %v4198_v56 = vadd.f32 %v5219_v62, %v4166_v48  ;;  %v4130_v26 = vadd.f32 %v4063_v21, %v3890_v60  ;;  %v4223_v22 = vmax.f32 %v4191_v39, 0.0  ;;  %v4162_v7 = vadd.f32 %v6892_v18, %v4123_v61 }
 0x3ec   : > { %v6948_v37 = vpop.f32.mrf.mxu1  ;;  %v3893_v43 = vadd.f32 %v3892_v27, %v6871_v17  ;;  %v4192_v17 = vadd.f32 %v5222_v23, %v4160_v13  ;;  %v4232_v60 = vmax.f32 %v4200_v10, 0.0  ;;  %v4163_v62 = vadd.f32 %v6892_v18, %v4124_v54 }
 0x3ed   : > { %v5016_v57 = vpop.f32.mrf.mxu0  ;;  %v4230_v47 = vmax.f32 %v4198_v56, 0.0  ;;  %v4169_v24 = vadd.f32 %v6892_v18, %v4130_v26  ;;  %v4125_v42 = vadd.f32 %v6918_v53, %v3869_v5  ;;  %v4171_v44 = vadd.f32 %v6892_v18, %v4132_v20 }
 0x3ee   : > { %v3914_v40 = vadd.f32 %v5016_v57, %v6873_v58  ;;  %v4066_v9 = vpop.f32.mrf.mxu1  ;;  %v4224_v48 = vmax.f32 %v4192_v17, 0.0  ;;  %v4133_v39 = vadd.f32 %v6948_v37, %v3901_v16  ;;  %v5233_v16 = vld [vmem:[%s5419_s9 + $0xc8] sm:$0xff] }
 0x3ef   : > { %v3905_v12 = vpop.f32.mrf.mxu0  ;;  %4278 = vxpose.xlu1.b32.cont [2/16] (narrow) %v4230_v47, 8  ;;  %4254 = vxpose.xlu0.b32.cont [10/16] (narrow) %v4222_v30, 8  ;;  %v4131_v58 = vadd.f32 %v4066_v9, %v3893_v43  ;;  %v4201_v27 = vadd.f32 %v5225_v33, %v4169_v24  ;;  %v4164_v17 = vadd.f32 %v6892_v18, %v4125_v42  ;;  %v5236_v33 = vld [vmem:[%s5419_s9 + $0xe0] sm:$0xff] }
 0x3f0   : > { %v3906_v8 = vadd.f32 %v3905_v12, %v6875_v41  ;;  %v5050_v25 = vpop.f32.mrf.mxu1  ;;  %v4193_v41 = vadd.f32 %v5224_v19, %v4161_v0  ;;  %v5231_v19 = vld [vmem:[%s5419_s9 + $0x78] sm:$0xff] }
 0x3f1   : > { %v4136_v4 = vadd.f32 %v5050_v25, %v3914_v40  ;;  %v5017_v11 = vpop.f32.mrf.mxu0  ;;  %v4170_v49 = vadd.f32 %v6892_v18, %v4131_v58  ;;  %v4233_v34 = vmax.f32 %v4201_v27, 0.0 }
 0x3f2   : > { %v3917_v29 = vadd.f32 %v5017_v11, %v6877_v52  ;;  %v4079_v63 = vpop.f32.mrf.mxu1  ;;  %v4225_v30 = vmax.f32 %v4193_v41, 0.0  ;;  %v4196_v41 = vadd.f32 %v5231_v19, %v4164_v17 }
 0x3f3   : > { %v6970_v14 = vadd.f32 %v6892_v18, %v4136_v4  ;;  %v4134_v1 = vadd.f32 %v4079_v63, %v3906_v8  ;;  %v3908_v38 = vpop.f32.mrf.mxu0  ;;  %4279 = vxpose.xlu1.b32.cont [3/16] (narrow) %v4231_v28, 8  ;;  %4255 = vxpose.xlu0.b32.cont [11/16] (narrow) %v4223_v22, 8  ;;  %v4202_v0 = vadd.f32 %v5227_v51, %v4170_v49  ;;  %v5229_v22 = vld [vmem:[%s5419_s9 + $0xb0] sm:$0xff] }
 0x3f4   : > { %v3909_v52 = vadd.f32 %v3908_v38, %v6879_v15  ;;  %v5051_v3 = vpop.f32.mrf.mxu1  ;;  %v4203_v6 = vadd.f32 %v5229_v22, %v4171_v44  ;;  %v5232_v38 = vld [vmem:[%s5419_s9 + $0xc0] sm:$0xff] }
 0x3f5   : > { %v6977_v2 = vadd.f32 %v6892_v18, %v4134_v1  ;;  %v4137_v21 = vadd.f32 %v5051_v3, %v3917_v29  ;;  %v5020_v13 = vpop.f32.mrf.mxu0  ;;  %v4234_v58 = vmax.f32 %v4202_v0, 0.0  ;;  %v5230_v29 = vld [vmem:[%s5419_s9 + $0xb8] sm:$0xff]  ;;  %v4228_v1 = vmax.f32 %v4196_v41, 0.0  ;;  %v5234_v3 = vld [vmem:[%s5419_s9 + $0xd0] sm:$0xff] }
 0x3f6   : > { %v3930_v31 = vadd.f32 %v5020_v13, %v6881_v35  ;;  %v4082_v56 = vpop.f32.mrf.mxu1  ;;  %v5226_v35 = vld [vmem:[%s5419_s9 + $0x68] sm:$0xff]  ;;  %v4235_v5 = vmax.f32 %v4203_v6, 0.0 }
 0x3f7   : > { %v6984_v15 = vadd.f32 %v6892_v18, %v4137_v21  ;;  %v4135_v55 = vadd.f32 %v4082_v56, %v3909_v52  ;;  %v3921_v46 = vpop.f32.mrf.mxu0  ;;  %4280 = vxpose.xlu1.b32.cont [4/16] (narrow) %v4232_v60, 8  ;;  %4256 = vxpose.xlu0.b32.cont [12/16] (narrow) %v4224_v48, 8  ;;  %v4194_v57 = vadd.f32 %v5226_v35, %v4162_v7  ;;  %v5235_v21 = vld [vmem:[%s5419_s9 + $0xd8] sm:$0xff] }
 0x3f8   : > { %v3922_v26 = vadd.f32 %v3921_v46, %v6883_v32  ;;  %v5054_v43 = vpop.f32.mrf.mxu1  ;;  %v5228_v32 = vld [vmem:[%s5419_s9 + $0x70] sm:$0xff]  ;;  %v4205_v48 = vadd.f32 %v5232_v38, %v6977_v2  ;;  %v4207_v60 = vadd.f32 %v5234_v3, %v6970_v14 }
 0x3f9   : > { %v4174_v53 = vadd.f32 %v6892_v18, %v4135_v55  ;;  %v4140_v47 = vadd.f32 %v5054_v43, %v3930_v31  ;;  %v5021_v45 = vpop.f32.mrf.mxu0  ;;  %v4195_v23 = vadd.f32 %v5228_v32, %v4163_v62  ;;  %v4226_v25 = vmax.f32 %v4194_v57, 0.0  ;;  %v5237_v31 = vld [vmem:[%s5419_s9 + $0xe8] sm:$0xff]  ;;  %v5238_v55 = vld [vmem:[%s5419_s9 + $0xf0] sm:$0xff] }
 0x3fa   : > { %v3933_v40 = vadd.f32 %v5021_v45, %v6885_v36  ;;  %v4095_v9 = vpop.f32.mrf.mxu1  ;;  %v4172_v36 = vadd.f32 %v6892_v18, %v4133_v39  ;;  %v4237_v20 = vmax.f32 %v4205_v48, 0.0  ;;  %v4239_v49 = vmax.f32 %v4207_v60, 0.0 }
 0x3fb   : > { %v4179_v61 = vadd.f32 %v6892_v18, %v4140_v47  ;;  %v4138_v37 = vadd.f32 %v4095_v9, %v3922_v26  ;;  %v3924_v12 = vpop.f32.mrf.mxu0  ;;  %4281 = vxpose.xlu1.b32.cont [5/16] (narrow) %v4233_v34, 8  ;;  %4257 = vxpose.xlu0.b32.cont [13/16] (narrow) %v4225_v30, 8  ;;  %v4208_v13 = vadd.f32 %v5235_v21, %v6984_v15  ;;  %v5239_v30 = vld [vmem:[%s5419_s9 + $0xf8] sm:$0xff]  ;;  %s4315_s9 = scalar_lea.sflag [#allocation5], %s215_s17 }
 0x3fc   : > { %v3925_v50 = vadd.f32 %v3924_v12, %v6887_v59  ;;  %v5055_v8 = vpop.f32.mrf.mxu1  ;;  %v4227_v59 = vmax.f32 %v4195_v23, 0.0  ;;  %v4204_v63 = vadd.f32 %v5230_v29, %v4172_v36 }
 0x3fd   : > { %v4177_v10 = vadd.f32 %v6892_v18, %v4138_v37  ;;  %v4141_v24 = vadd.f32 %v5055_v8, %v3933_v40  ;;  %v4240_v2 = vmax.f32 %v4208_v13, 0.0  ;;  %v4211_v14 = vadd.f32 %v5238_v55, %v4179_v61 }
 0x3fe   : > { %v4098_v4 = vpop.f32.mrf.mxu1  ;;  %v4236_v7 = vmax.f32 %v4204_v63, 0.0 }
 0x3ff   : > { %v4180_v11 = vadd.f32 %v6892_v18, %v4141_v24  ;;  %v4139_v28 = vadd.f32 %v4098_v4, %v3925_v50  ;;  %4282 = vxpose.xlu1.b32.cont [6/16] (narrow) %v4234_v58, 8  ;;  %4258 = vxpose.xlu0.b32.cont [14/16] (narrow) %v4226_v25, 8  ;;  %v4209_v27 = vadd.f32 %v5236_v33, %v4177_v10  ;;  %v4243_v46 = vmax.f32 %v4211_v14, 0.0 }
 0x401   : > { %v4178_v54 = vadd.f32 %v6892_v18, %v4139_v28  ;;  %v4206_v18 = vadd.f32 %v5233_v16, %v4174_v53  ;;  %v4241_v62 = vmax.f32 %v4209_v27, 0.0  ;;  %v4212_v44 = vadd.f32 %v5239_v30, %v4180_v11 }
 0x403   : > { %4283 = vxpose.xlu1.b32.cont [7/16] (narrow) %v4235_v5, 8  ;;  %4259 = vxpose.xlu0.b32.cont [15/16] (narrow) %v4227_v59, 8  ;;  %v4238_v52 = vmax.f32 %v4206_v18, 0.0  ;;  %v4210_v56 = vadd.f32 %v5237_v31, %v4178_v54  ;;  %v4244_v15 = vmax.f32 %v4212_v44, 0.0 }
 0x405   : > { %v4242_v42 = vmax.f32 %v4210_v56, 0.0 }
 0x407   : > { %4284 = vxpose.xlu1.b32.cont [8/16] (narrow) %v4236_v7, 8  ;;  %4260 = vxpose.xlu0.b32.end [16/16] (narrow) %v4228_v1, 8 }
 0x40b   : > { %4285 = vxpose.xlu1.b32.cont [9/16] (narrow) %v4237_v20, 8 }
 0x40f   : > { %4286 = vxpose.xlu1.b32.cont [10/16] (narrow) %v4238_v52, 8 }
 0x413   : > { %4287 = vxpose.xlu1.b32.cont [11/16] (narrow) %v4239_v49, 8 }
 0x417   : > { %4288 = vxpose.xlu1.b32.cont [12/16] (narrow) %v4240_v2, 8 }
 0x41b   : > { %4289 = vxpose.xlu1.b32.cont [13/16] (narrow) %v4241_v62, 8 }
 0x41f   : > { %4290 = vxpose.xlu1.b32.cont [14/16] (narrow) %v4242_v42, 8 }
 0x423   : > { %4291 = vxpose.xlu1.b32.cont [15/16] (narrow) %v4243_v46, 8 }
 0x427   : > { %4292 = vxpose.xlu1.b32.end [16/16] (narrow) %v4244_v15, 8 }
 0x447   : > { %v4261_v39 = vpop.trf.xlu0 }
 0x467   : > { %v4293_v26 = vpop.trf.xlu1 }
 0x468   : > { %v4311_v43 = vcombine.low %v4261_v39, %v4293_v26 }
 0x46a   : > { %4313 = vst [vmem:[%s217_s26] sm:$0xff] %v4311_v43 }
 0x46b   : > { %5253 = shalt.err (!%p5250_p3)
}
 0x46c   : > { %s5254_s15 = scalar_lea.hbm %s4327_s8, 128  ;;  %s5258_s11 = scalar_lea.hbm %s7054_s5, 256 }
 0x46d   : > { %p5255_p4 = scmp.ne.s32.totalorder %s4327_s8, %s5254_s15  ;;  %p5259_p9 = scmp.lt.s32.totalorder %s4327_s8, %s7054_s5 }
 0x46e   : > { %p5260_p10 = scmp.lt.s32.totalorder %s5258_s11, %s5254_s15 }
 0x46f   : > { %p5256_p7 = pnand %p5255_p4, %p5374_p5 }
 0x470   : > { %p5261_p11 = por %p5260_p10, %p5259_p9 }
 0x471   : > { %p5257_p8 = pneg %p5256_p7 }
 0x473   : > { %p5262_p12 = pnand %p5261_p11, %p5257_p8 }
 0x475   : > { %5265 = shalt.err (!%p5262_p12)
}
 0x476   : > { %5062 = dma.vmem_to_hbm [thread:$0]  (%p5374_p5), %s4330_s30, 128, %s4327_s8, %s4315_s9  }
 0x477 PF: > { %p5068_p13 = scmp.ge.s32.totalorder %s5300_s21, 2  ;;  %s4341_s25 = sand.u32 1, %s5288_s18  }
 0x478   : > { %s4342_s26 = scalar_lea.sflag [#allocation5], %s4341_s25 }
 0x479   : > { %p5065_p0 = pnand %p5068_p13, %p5378_p6 }
 0x47b   : > { %p5066_p1 = pneg %p5065_p0 }
 0x47d   : > { %5283 = dma.done.wait (%p5066_p1), %s4342_s26, 128  }
 0x47e   : > { %5285 = vsyncadd (%p5066_p1), %s4342_s26, 4294967168  ;;  %p15_p2 = scmp.ge.s32.totalorder %s5361_s24, 4   ;;  %s7065_s18 = smov %s5292_s19 }
 0x47f   : > { %s7066_s19 = smov %s5296_s20  ;;  %s7067_s20 = smov %s5372_s27 }
 0x480   : > { %s7068_s21 = smov %s5361_s24  ;;  %17 = sbr.rel (!%p15_p2) target bundleno = 3 (0x3), region = 83 }
 0x485   :  { %4347 = vsyncpa [#allocation5], 1 }
 0x486   :  { %4349 = vsyncpa [#allocation5 + $0x1], 1 }

</bundles_post_ra>
